<compile_context>
chip_gen: v7x
topology: tpu7x:2x2x1
jax: 0.10.0
libtpu: 0.0.40
codegen_flags: <defaults>
</compile_context>

<pallas_src>
import functools

import numpy as np
import jax
import jax.numpy as jnp
from jax import lax
from jax.experimental import pallas as pl
from jax.experimental.pallas import tpu as pltpu

_TB = 64          # batch elements per grid step (64-128 recommended; 64 keeps demo small)
_N_CLASSES = 10
_N_PAD_CLS = 128  # lane-dense padded class dimension


def _tree_sum(parts):
    parts = list(parts)
    while len(parts) > 1:
        nxt = [parts[i] + parts[i + 1] for i in range(0, len(parts) - 1, 2)]
        if len(parts) % 2:
            nxt.append(parts[-1])
        parts = nxt
    return parts[0]


# ----------------------------------------------------------------------------
# Fused kernel: one batch tile (TB samples) per grid step.
# Row layout of all conv activations: row = spatial_row * TB + batch_in_tile.
# ----------------------------------------------------------------------------
def _fused_forward_kernel(a1_ref, w1t_ref, b1_ref, w2t_ref, b2_ref,
                          wcomb_ref, bcomb_ref, wc2_ref, bc2_ref, out_ref):
    f32 = jnp.float32
    cdt = w1t_ref.dtype                         # bf16 compute dtype for MXU operands
    dot = functools.partial(jnp.dot, preferred_element_type=f32)
    TB = out_ref.shape[0]

    # --- conv1: Conv2d(1, c, k=4, s=2, p=1) + ReLU, 28x28 -> 14x14, one matmul ---
    a1 = a1_ref[0]                                           # (14*TB, 120) bf16
    h1 = dot(a1, w1t_ref[...]) + b1_ref[...]                 # (14*TB, 14c) f32
    h1 = jnp.maximum(h1, 0.0).astype(cdt)

    # --- conv2 + ReLU, then fc_mu folded with classifier Linear #1 ---
    z_parts = []
    for oh in range(7):
        acc = None
        for kh in range(4):
            r = 2 * oh + kh - 1                              # conv2 input row
            if 0 <= r < 14:                                  # height zero-padding: skip
                p = dot(h1[r * TB:(r + 1) * TB, :], w2t_ref[kh])   # (TB, 7*2c)
                acc = p if acc is None else acc + p
        h2 = jnp.maximum(acc + b2_ref[...], 0.0).astype(cdt)       # (TB, 7*2c)
        z_parts.append(dot(h2, wcomb_ref[oh]))                     # (TB, 128) f32

    z = jnp.maximum(_tree_sum(z_parts) + bcomb_ref[...], 0.0)      # (TB, 128) f32

    # --- classifier Linear #2 (padded to 128 classes) + Softmax ---
    logits = dot(z.astype(cdt), wc2_ref[...]) + bc2_ref[...]       # (TB, 128) f32
    m = jnp.max(logits, axis=-1, keepdims=True)
    e = jnp.exp(logits - m)
    out_ref[...] = (e / jnp.sum(e, axis=-1, keepdims=True)).astype(out_ref.dtype)


# ----------------------------------------------------------------------------
# Forward wrapper (jitted): host glue gathers conv1 row strips and batch-tiles.
# ----------------------------------------------------------------------------
@jax.jit
def vae_classification_forward(prep, x):
    """x: (B, 1, 28, 28) float32 NCHW.  Returns (B, 10) class probabilities."""
    B = x.shape[0]
    TB = _TB
    NB = -(-B // TB)
    Bpad = NB * TB

    # conv1 patch strips: a1[b, oh, kh*30 + j] = xpad[b, 2*oh + kh, j]
    xpad = jnp.pad(x[:, 0].astype(jnp.float32), ((0, 0), (1, 1), (1, 1)))  # (B,30,30)
    a1 = jnp.stack([xpad[:, kh:kh + 27:2, :] for kh in range(4)], axis=2)  # (B,14,4,30)
    a1 = a1.reshape(B, 14, 120)
    if Bpad != B:
        a1 = jnp.pad(a1, ((0, Bpad - B), (0, 0), (0, 0)))
    # batch-tiled layout: rows = (conv1-out-row, batch-in-tile) -> (NB, 14*TB, 120)
    a1 = a1.reshape(NB, TB, 14, 120).transpose(0, 2, 1, 3).reshape(NB, 14 * TB, 120)
    a1 = a1.astype(prep["w1t"].dtype)

    out = pl.pallas_call(
        _fused_forward_kernel,
        out_shape=jax.ShapeDtypeStruct((Bpad, _N_PAD_CLS), jnp.float32),
        grid=(NB,),
        in_specs=[
            pl.BlockSpec((1, 14 * TB, 120), lambda b: (b, 0, 0)),   # a1 (per batch tile)
            pl.BlockSpec(prep["w1t"].shape, lambda b: (0, 0)),      # conv1 Toeplitz
            pl.BlockSpec(prep["b1"].shape, lambda b: (0, 0)),
            pl.BlockSpec(prep["w2t"].shape, lambda b: (0, 0, 0)),   # conv2 Toeplitz (4 taps)
            pl.BlockSpec(prep["b2"].shape, lambda b: (0, 0)),
            pl.BlockSpec(prep["wcomb"].shape, lambda b: (0, 0, 0)), # fc_mu @ cls1 folded
            pl.BlockSpec(prep["bcomb"].shape, lambda b: (0, 0)),
            pl.BlockSpec(prep["wc2"].shape, lambda b: (0, 0)),      # cls2 (padded to 128)
            pl.BlockSpec(prep["bc2"].shape, lambda b: (0, 0)),
        ],
        out_specs=pl.BlockSpec((TB, _N_PAD_CLS), lambda b: (b, 0)),
        compiler_params=pltpu.CompilerParams(
            dimension_semantics=("parallel",)),
    )(a1, prep["w1t"], prep["b1"], prep["w2t"], prep["b2"],
      prep["wcomb"], prep["bcomb"], prep["wc2"], prep["bc2"])
    return out[:B, :_N_CLASSES]


# ----------------------------------------------------------------------------
# Parameters: PyTorch-layout init + one-time re-layout / folding for the kernel.
# ----------------------------------------------------------------------------
def init_params(key, capacity, latent_dims):
    c = capacity
    ks = jax.random.split(key, 10)
    s = 0.1
    return {
        "conv1_w": jax.random.normal(ks[0], (c, 1, 4, 4), jnp.float32) * s,
        "conv1_b": jax.random.normal(ks[1], (c,), jnp.float32) * s,
        "conv2_w": jax.random.normal(ks[2], (2 * c, c, 4, 4), jnp.float32) * s,
        "conv2_b": jax.random.normal(ks[3], (2 * c,), jnp.float32) * s,
        "fc_mu_w": jax.random.normal(ks[4], (latent_dims, 2 * c * 7 * 7), jnp.float32) * s,
        "fc_mu_b": jax.random.normal(ks[5], (latent_dims,), jnp.float32) * s,
        "cls1_w": jax.random.normal(ks[6], (128, latent_dims), jnp.float32) * s,
        "cls1_b": jax.random.normal(ks[7], (128,), jnp.float32) * s,
        "cls2_w": jax.random.normal(ks[8], (10, 128), jnp.float32) * s,
        "cls2_b": jax.random.normal(ks[9], (10,), jnp.float32) * s,
    }


def prepare_params(params, capacity, latent_dims, compute_dtype=jnp.bfloat16):
    """One-time weight re-layout/folding so the fused kernel only does matmuls."""
    c = capacity
    w1 = np.asarray(params["conv1_w"], np.float32)      # (c, 1, 4, 4)
    b1 = np.asarray(params["conv1_b"], np.float32)
    w2 = np.asarray(params["conv2_w"], np.float32)      # (2c, c, 4, 4)
    b2 = np.asarray(params["conv2_b"], np.float32)
    fcw = np.asarray(params["fc_mu_w"], np.float32)     # (latent, 2c*7*7)
    fcb = np.asarray(params["fc_mu_b"], np.float32)
    c1w = np.asarray(params["cls1_w"], np.float32)      # (nhid, latent)
    c1b = np.asarray(params["cls1_b"], np.float32)
    c2w = np.asarray(params["cls2_w"], np.float32)      # (10, nhid)
    c2b = np.asarray(params["cls2_b"], np.float32)
    nhid = c1w.shape[0]

    # conv1 width-Toeplitz: h1[., ow*c+co] = sum_{kh,j} a1[., kh*30+j] * w1t[kh*30+j, ow*c+co]
    w1t = np.zeros((4 * 30, 14 * c), np.float32)
    for kh in range(4):
        for kw in range(4):
            for ow in range(14):
                w1t[kh * 30 + 2 * ow + kw, ow * c:(ow + 1) * c] = w1[:, 0, kh, kw]
    b1r = np.tile(b1, 14).reshape(1, 14 * c)

    # conv2 width-Toeplitz per height tap (width zero-padding absorbed by skipped cols)
    w2t = np.zeros((4, 14 * c, 7 * 2 * c), np.float32)
    for kh in range(4):
        for kw in range(4):
            for ow in range(7):
                j = 2 * ow + kw - 1
                if 0 <= j < 14:
                    w2t[kh, j * c:(j + 1) * c, ow * 2 * c:(ow + 1) * 2 * c] = \
                        w2[:, :, kh, kw].T
    b2r = np.tile(b2, 7).reshape(1, 7 * 2 * c)

    # fc_mu re-laid to (oh, (ow, co)) lanes; PyTorch flattens NCHW as co*49 + oh*7 + ow.
    wmu = np.zeros((7, 7 * 2 * c, latent_dims), np.float32)
    for oh in range(7):
        for ow in range(7):
            for co in range(2 * c):
                wmu[oh, ow * 2 * c + co, :] = fcw[:, co * 49 + oh * 7 + ow]
    # Fold fc_mu with classifier Linear #1 (no nonlinearity between them -> exact).
    wc1 = c1w.T                                            # (latent, nhid)
    wcomb = np.einsum("okl,lf->okf", wmu, wc1)             # (7, 7*2c, nhid)
    bcomb = (fcb @ wc1 + c1b).reshape(1, nhid)

    # classifier Linear #2, padded to a lane-dense 128-class output.
    wc2p = np.zeros((nhid, _N_PAD_CLS), np.float32)
    wc2p[:, :_N_CLASSES] = c2w.T
    bc2p = np.full((1, _N_PAD_CLS), -1e30, np.float32)     # -1e30 (not -inf): exp -> 0, no NaN
    bc2p[0, :_N_CLASSES] = c2b

    return {
        "w1t": jnp.asarray(w1t, compute_dtype), "b1": jnp.asarray(b1r),
        "w2t": jnp.asarray(w2t, compute_dtype), "b2": jnp.asarray(b2r),
        "wcomb": jnp.asarray(wcomb, compute_dtype), "bcomb": jnp.asarray(bcomb),
        "wc2": jnp.asarray(wc2p, compute_dtype), "bc2": jnp.asarray(bc2p),
    }


# ----------------------------------------------------------------------------
# Pure-JAX reference (PyTorch semantics, float32) for correctness checking.
# ----------------------------------------------------------------------------
def reference_forward(params, x):
    dn = ("NCHW", "OIHW", "NCHW")
    hp = lax.Precision.HIGHEST
    h = lax.conv_general_dilated(x, params["conv1_w"], (2, 2), ((1, 1), (1, 1)),
                                 dimension_numbers=dn, precision=hp)
    h = jax.nn.relu(h + params["conv1_b"][None, :, None, None])
    h = lax.conv_general_dilated(h, params["conv2_w"], (2, 2), ((1, 1), (1, 1)),
                                 dimension_numbers=dn, precision=hp)
    h = jax.nn.relu(h + params["conv2_b"][None, :, None, None])
    flat = h.reshape(x.shape[0], -1)
    mu = jnp.dot(flat, params["fc_mu_w"].T, precision=hp) + params["fc_mu_b"]
    z = jax.nn.relu(jnp.dot(mu, params["cls1_w"].T, precision=hp) + params["cls1_b"])
    logits = jnp.dot(z, params["cls2_w"].T, precision=hp) + params["cls2_b"]
    return jax.nn.softmax(logits, axis=-1)


if __name__ == "__main__":
    capacity, latent_dims = 4, 16
    batch = 96   # not a multiple of TB=64: exercises batch padding and a 2-step parallel grid

    key = jax.random.PRNGKey(0)
    pkey, xkey = jax.random.split(key)
    params = init_params(pkey, capacity, latent_dims)
    prep = prepare_params(params, capacity, latent_dims)

    # MNIST-like NCHW input; 28x28 is required by the encoder's 2c*7*7 flatten.
    x = jax.random.uniform(xkey, (batch, 1, 28, 28), jnp.float32)

    y = jax.block_until_ready(vae_classification_forward(prep, x))

    assert y.shape == (batch, 10)
    assert bool(jnp.all(jnp.isfinite(y)))
    assert bool(jnp.allclose(jnp.sum(y, axis=1), 1.0, atol=1e-5))

    # Check against the pure-JAX float32 reference of the PyTorch forward.
    # (bf16 MXU operands in the kernel -> looser tolerance than the fp32 version.)
    y_ref = reference_forward(params, x)
    max_err = float(jnp.max(jnp.abs(y - y_ref)))
    assert max_err < 1e-2, max_err

    print("KERNEL_OK")
</pallas_src>

<mosaic_0001>
module attributes {stable_mosaic.version = 11 : i64} {
  func.func @_fused_forward_kernel(%arg0: i32, %arg1: memref<1x896x120xbf16, #tpu.memory_space<vmem>>, %arg2: memref<120x56xbf16, #tpu.memory_space<vmem>>, %arg3: memref<1x56xf32, #tpu.memory_space<vmem>>, %arg4: memref<4x56x56xbf16, #tpu.memory_space<vmem>>, %arg5: memref<1x56xf32, #tpu.memory_space<vmem>>, %arg6: memref<7x56x128xbf16, #tpu.memory_space<vmem>>, %arg7: memref<1x128xf32, #tpu.memory_space<vmem>>, %arg8: memref<128x128xbf16, #tpu.memory_space<vmem>>, %arg9: memref<1x128xf32, #tpu.memory_space<vmem>>, %arg10: memref<64x128xf32, #tpu.memory_space<vmem>>) attributes {dimension_semantics = [#tpu.dimension_semantics<parallel>], iteration_bounds = array<i64: 2>, scalar_prefetch = 0 : i64, scratch_operands = 0 : i64, tpu.core_type = #tpu.core_type<tc>, window_params = [{transform_indices = @transform_0, window_bounds = array<i64: 1, 896, 120>}, {pipeline_mode = #tpu.pipeline_mode<synchronous>, transform_indices = @transform_1, window_bounds = array<i64: 120, 56>}, {pipeline_mode = #tpu.pipeline_mode<synchronous>, transform_indices = @transform_2, window_bounds = array<i64: 1, 56>}, {pipeline_mode = #tpu.pipeline_mode<synchronous>, transform_indices = @transform_3, window_bounds = array<i64: 4, 56, 56>}, {pipeline_mode = #tpu.pipeline_mode<synchronous>, transform_indices = @transform_4, window_bounds = array<i64: 1, 56>}, {pipeline_mode = #tpu.pipeline_mode<synchronous>, transform_indices = @transform_5, window_bounds = array<i64: 7, 56, 128>}, {pipeline_mode = #tpu.pipeline_mode<synchronous>, transform_indices = @transform_6, window_bounds = array<i64: 1, 128>}, {pipeline_mode = #tpu.pipeline_mode<synchronous>, transform_indices = @transform_7, window_bounds = array<i64: 128, 128>}, {pipeline_mode = #tpu.pipeline_mode<synchronous>, transform_indices = @transform_8, window_bounds = array<i64: 1, 128>}, {transform_indices = @transform_9, window_bounds = array<i64: 64, 128>}]} {
    %c0 = arith.constant 0 : index
    %c0_0 = arith.constant 0 : index
    %c0_1 = arith.constant 0 : index
    %0 = vector.load %arg1[%c0, %c0_0, %c0_1] : memref<1x896x120xbf16, #tpu.memory_space<vmem>>, vector<1x896x120xbf16>
    %1 = vector.shape_cast %0 : vector<1x896x120xbf16> to vector<896x120xbf16>
    %c0_2 = arith.constant 0 : index
    %c0_3 = arith.constant 0 : index
    %2 = vector.load %arg2[%c0_2, %c0_3] : memref<120x56xbf16, #tpu.memory_space<vmem>>, vector<120x56xbf16>
    %cst = arith.constant dense<0.000000e+00> : vector<896x56xf32>
    %3 = tpu.matmul %1, %2, %cst {dimension_numbers = #tpu.dot_dimension_numbers<[1], [0], [0], [1], [0, 0, 1, 1], [], []>} : vector<896x120xbf16>, vector<120x56xbf16>, vector<896x56xf32> -> vector<896x56xf32>
    %c0_4 = arith.constant 0 : index
    %c0_5 = arith.constant 0 : index
    %4 = vector.load %arg3[%c0_4, %c0_5] : memref<1x56xf32, #tpu.memory_space<vmem>>, vector<1x56xf32>
    %5 = vector.broadcast %4 : vector<1x56xf32> to vector<896x56xf32>
    %6 = arith.addf %3, %5 : vector<896x56xf32>
    %cst_6 = arith.constant 0.000000e+00 : f32
    %7 = vector.broadcast %cst_6 : f32 to vector<896x56xf32>
    %8 = arith.maximumf %6, %7 : vector<896x56xf32>
    %9 = arith.truncf %8 : vector<896x56xf32> to vector<896x56xbf16>
    %10 = vector.extract_strided_slice %9 {offsets = [0, 0], sizes = [64, 56], strides = [1, 1]} : vector<896x56xbf16> to vector<64x56xbf16>
    %c1 = arith.constant 1 : index
    %c0_7 = arith.constant 0 : index
    %c0_8 = arith.constant 0 : index
    %11 = vector.load %arg4[%c1, %c0_7, %c0_8] : memref<4x56x56xbf16, #tpu.memory_space<vmem>>, vector<1x56x56xbf16>
    %12 = vector.shape_cast %11 : vector<1x56x56xbf16> to vector<56x56xbf16>
    %cst_9 = arith.constant dense<0.000000e+00> : vector<64x56xf32>
    %13 = tpu.matmul %10, %12, %cst_9 {dimension_numbers = #tpu.dot_dimension_numbers<[1], [0], [0], [1], [0, 0, 1, 1], [], []>} : vector<64x56xbf16>, vector<56x56xbf16>, vector<64x56xf32> -> vector<64x56xf32>
    %14 = vector.extract_strided_slice %9 {offsets = [64, 0], sizes = [64, 56], strides = [1, 1]} : vector<896x56xbf16> to vector<64x56xbf16>
    %c2 = arith.constant 2 : index
    %c0_10 = arith.constant 0 : index
    %c0_11 = arith.constant 0 : index
    %15 = vector.load %arg4[%c2, %c0_10, %c0_11] : memref<4x56x56xbf16, #tpu.memory_space<vmem>>, vector<1x56x56xbf16>
    %16 = vector.shape_cast %15 : vector<1x56x56xbf16> to vector<56x56xbf16>
    %cst_12 = arith.constant dense<0.000000e+00> : vector<64x56xf32>
    %17 = tpu.matmul %14, %16, %cst_12 {dimension_numbers = #tpu.dot_dimension_numbers<[1], [0], [0], [1], [0, 0, 1, 1], [], []>} : vector<64x56xbf16>, vector<56x56xbf16>, vector<64x56xf32> -> vector<64x56xf32>
    %18 = arith.addf %13, %17 : vector<64x56xf32>
    %19 = vector.extract_strided_slice %9 {offsets = [128, 0], sizes = [64, 56], strides = [1, 1]} : vector<896x56xbf16> to vector<64x56xbf16>
    %c3 = arith.constant 3 : index
    %c0_13 = arith.constant 0 : index
    %c0_14 = arith.constant 0 : index
    %20 = vector.load %arg4[%c3, %c0_13, %c0_14] : memref<4x56x56xbf16, #tpu.memory_space<vmem>>, vector<1x56x56xbf16>
    %21 = vector.shape_cast %20 : vector<1x56x56xbf16> to vector<56x56xbf16>
    %cst_15 = arith.constant dense<0.000000e+00> : vector<64x56xf32>
    %22 = tpu.matmul %19, %21, %cst_15 {dimension_numbers = #tpu.dot_dimension_numbers<[1], [0], [0], [1], [0, 0, 1, 1], [], []>} : vector<64x56xbf16>, vector<56x56xbf16>, vector<64x56xf32> -> vector<64x56xf32>
    %23 = arith.addf %18, %22 : vector<64x56xf32>
    %c0_16 = arith.constant 0 : index
    %c0_17 = arith.constant 0 : index
    %24 = vector.load %arg5[%c0_16, %c0_17] : memref<1x56xf32, #tpu.memory_space<vmem>>, vector<1x56xf32>
    %25 = vector.broadcast %24 : vector<1x56xf32> to vector<64x56xf32>
    %26 = arith.addf %23, %25 : vector<64x56xf32>
    %cst_18 = arith.constant 0.000000e+00 : f32
    %27 = vector.broadcast %cst_18 : f32 to vector<64x56xf32>
    %28 = arith.maximumf %26, %27 : vector<64x56xf32>
    %29 = arith.truncf %28 : vector<64x56xf32> to vector<64x56xbf16>
    %c0_19 = arith.constant 0 : index
    %c0_20 = arith.constant 0 : index
    %c0_21 = arith.constant 0 : index
    %30 = vector.load %arg6[%c0_19, %c0_20, %c0_21] : memref<7x56x128xbf16, #tpu.memory_space<vmem>>, vector<1x56x128xbf16>
    %31 = vector.shape_cast %30 : vector<1x56x128xbf16> to vector<56x128xbf16>
    %cst_22 = arith.constant dense<0.000000e+00> : vector<64x128xf32>
    %32 = tpu.matmul %29, %31, %cst_22 {dimension_numbers = #tpu.dot_dimension_numbers<[1], [0], [0], [1], [0, 0, 1, 1], [], []>} : vector<64x56xbf16>, vector<56x128xbf16>, vector<64x128xf32> -> vector<64x128xf32>
    %33 = vector.extract_strided_slice %9 {offsets = [64, 0], sizes = [64, 56], strides = [1, 1]} : vector<896x56xbf16> to vector<64x56xbf16>
    %c0_23 = arith.constant 0 : index
    %c0_24 = arith.constant 0 : index
    %c0_25 = arith.constant 0 : index
    %34 = vector.load %arg4[%c0_23, %c0_24, %c0_25] : memref<4x56x56xbf16, #tpu.memory_space<vmem>>, vector<1x56x56xbf16>
    %35 = vector.shape_cast %34 : vector<1x56x56xbf16> to vector<56x56xbf16>
    %cst_26 = arith.constant dense<0.000000e+00> : vector<64x56xf32>
    %36 = tpu.matmul %33, %35, %cst_26 {dimension_numbers = #tpu.dot_dimension_numbers<[1], [0], [0], [1], [0, 0, 1, 1], [], []>} : vector<64x56xbf16>, vector<56x56xbf16>, vector<64x56xf32> -> vector<64x56xf32>
    %37 = vector.extract_strided_slice %9 {offsets = [128, 0], sizes = [64, 56], strides = [1, 1]} : vector<896x56xbf16> to vector<64x56xbf16>
    %c1_27 = arith.constant 1 : index
    %c0_28 = arith.constant 0 : index
    %c0_29 = arith.constant 0 : index
    %38 = vector.load %arg4[%c1_27, %c0_28, %c0_29] : memref<4x56x56xbf16, #tpu.memory_space<vmem>>, vector<1x56x56xbf16>
    %39 = vector.shape_cast %38 : vector<1x56x56xbf16> to vector<56x56xbf16>
    %cst_30 = arith.constant dense<0.000000e+00> : vector<64x56xf32>
    %40 = tpu.matmul %37, %39, %cst_30 {dimension_numbers = #tpu.dot_dimension_numbers<[1], [0], [0], [1], [0, 0, 1, 1], [], []>} : vector<64x56xbf16>, vector<56x56xbf16>, vector<64x56xf32> -> vector<64x56xf32>
    %41 = arith.addf %36, %40 : vector<64x56xf32>
    %42 = vector.extract_strided_slice %9 {offsets = [192, 0], sizes = [64, 56], strides = [1, 1]} : vector<896x56xbf16> to vector<64x56xbf16>
    %c2_31 = arith.constant 2 : index
    %c0_32 = arith.constant 0 : index
    %c0_33 = arith.constant 0 : index
    %43 = vector.load %arg4[%c2_31, %c0_32, %c0_33] : memref<4x56x56xbf16, #tpu.memory_space<vmem>>, vector<1x56x56xbf16>
    %44 = vector.shape_cast %43 : vector<1x56x56xbf16> to vector<56x56xbf16>
    %cst_34 = arith.constant dense<0.000000e+00> : vector<64x56xf32>
    %45 = tpu.matmul %42, %44, %cst_34 {dimension_numbers = #tpu.dot_dimension_numbers<[1], [0], [0], [1], [0, 0, 1, 1], [], []>} : vector<64x56xbf16>, vector<56x56xbf16>, vector<64x56xf32> -> vector<64x56xf32>
    %46 = arith.addf %41, %45 : vector<64x56xf32>
    %47 = vector.extract_strided_slice %9 {offsets = [256, 0], sizes = [64, 56], strides = [1, 1]} : vector<896x56xbf16> to vector<64x56xbf16>
    %c3_35 = arith.constant 3 : index
    %c0_36 = arith.constant 0 : index
    %c0_37 = arith.constant 0 : index
    %48 = vector.load %arg4[%c3_35, %c0_36, %c0_37] : memref<4x56x56xbf16, #tpu.memory_space<vmem>>, vector<1x56x56xbf16>
    %49 = vector.shape_cast %48 : vector<1x56x56xbf16> to vector<56x56xbf16>
    %cst_38 = arith.constant dense<0.000000e+00> : vector<64x56xf32>
    %50 = tpu.matmul %47, %49, %cst_38 {dimension_numbers = #tpu.dot_dimension_numbers<[1], [0], [0], [1], [0, 0, 1, 1], [], []>} : vector<64x56xbf16>, vector<56x56xbf16>, vector<64x56xf32> -> vector<64x56xf32>
    %51 = arith.addf %46, %50 : vector<64x56xf32>
    %c0_39 = arith.constant 0 : index
    %c0_40 = arith.constant 0 : index
    %52 = vector.load %arg5[%c0_39, %c0_40] : memref<1x56xf32, #tpu.memory_space<vmem>>, vector<1x56xf32>
    %53 = vector.broadcast %52 : vector<1x56xf32> to vector<64x56xf32>
    %54 = arith.addf %51, %53 : vector<64x56xf32>
    %cst_41 = arith.constant 0.000000e+00 : f32
    %55 = vector.broadcast %cst_41 : f32 to vector<64x56xf32>
    %56 = arith.maximumf %54, %55 : vector<64x56xf32>
    %57 = arith.truncf %56 : vector<64x56xf32> to vector<64x56xbf16>
    %c1_42 = arith.constant 1 : index
    %c0_43 = arith.constant 0 : index
    %c0_44 = arith.constant 0 : index
    %58 = vector.load %arg6[%c1_42, %c0_43, %c0_44] : memref<7x56x128xbf16, #tpu.memory_space<vmem>>, vector<1x56x128xbf16>
    %59 = vector.shape_cast %58 : vector<1x56x128xbf16> to vector<56x128xbf16>
    %cst_45 = arith.constant dense<0.000000e+00> : vector<64x128xf32>
    %60 = tpu.matmul %57, %59, %cst_45 {dimension_numbers = #tpu.dot_dimension_numbers<[1], [0], [0], [1], [0, 0, 1, 1], [], []>} : vector<64x56xbf16>, vector<56x128xbf16>, vector<64x128xf32> -> vector<64x128xf32>
    %61 = vector.extract_strided_slice %9 {offsets = [192, 0], sizes = [64, 56], strides = [1, 1]} : vector<896x56xbf16> to vector<64x56xbf16>
    %c0_46 = arith.constant 0 : index
    %c0_47 = arith.constant 0 : index
    %c0_48 = arith.constant 0 : index
    %62 = vector.load %arg4[%c0_46, %c0_47, %c0_48] : memref<4x56x56xbf16, #tpu.memory_space<vmem>>, vector<1x56x56xbf16>
    %63 = vector.shape_cast %62 : vector<1x56x56xbf16> to vector<56x56xbf16>
    %cst_49 = arith.constant dense<0.000000e+00> : vector<64x56xf32>
    %64 = tpu.matmul %61, %63, %cst_49 {dimension_numbers = #tpu.dot_dimension_numbers<[1], [0], [0], [1], [0, 0, 1, 1], [], []>} : vector<64x56xbf16>, vector<56x56xbf16>, vector<64x56xf32> -> vector<64x56xf32>
    %65 = vector.extract_strided_slice %9 {offsets = [256, 0], sizes = [64, 56], strides = [1, 1]} : vector<896x56xbf16> to vector<64x56xbf16>
    %c1_50 = arith.constant 1 : index
    %c0_51 = arith.constant 0 : index
    %c0_52 = arith.constant 0 : index
    %66 = vector.load %arg4[%c1_50, %c0_51, %c0_52] : memref<4x56x56xbf16, #tpu.memory_space<vmem>>, vector<1x56x56xbf16>
    %67 = vector.shape_cast %66 : vector<1x56x56xbf16> to vector<56x56xbf16>
    %cst_53 = arith.constant dense<0.000000e+00> : vector<64x56xf32>
    %68 = tpu.matmul %65, %67, %cst_53 {dimension_numbers = #tpu.dot_dimension_numbers<[1], [0], [0], [1], [0, 0, 1, 1], [], []>} : vector<64x56xbf16>, vector<56x56xbf16>, vector<64x56xf32> -> vector<64x56xf32>
    %69 = arith.addf %64, %68 : vector<64x56xf32>
    %70 = vector.extract_strided_slice %9 {offsets = [320, 0], sizes = [64, 56], strides = [1, 1]} : vector<896x56xbf16> to vector<64x56xbf16>
    %c2_54 = arith.constant 2 : index
    %c0_55 = arith.constant 0 : index
    %c0_56 = arith.constant 0 : index
    %71 = vector.load %arg4[%c2_54, %c0_55, %c0_56] : memref<4x56x56xbf16, #tpu.memory_space<vmem>>, vector<1x56x56xbf16>
    %72 = vector.shape_cast %71 : vector<1x56x56xbf16> to vector<56x56xbf16>
    %cst_57 = arith.constant dense<0.000000e+00> : vector<64x56xf32>
    %73 = tpu.matmul %70, %72, %cst_57 {dimension_numbers = #tpu.dot_dimension_numbers<[1], [0], [0], [1], [0, 0, 1, 1], [], []>} : vector<64x56xbf16>, vector<56x56xbf16>, vector<64x56xf32> -> vector<64x56xf32>
    %74 = arith.addf %69, %73 : vector<64x56xf32>
    %75 = vector.extract_strided_slice %9 {offsets = [384, 0], sizes = [64, 56], strides = [1, 1]} : vector<896x56xbf16> to vector<64x56xbf16>
    %c3_58 = arith.constant 3 : index
    %c0_59 = arith.constant 0 : index
    %c0_60 = arith.constant 0 : index
    %76 = vector.load %arg4[%c3_58, %c0_59, %c0_60] : memref<4x56x56xbf16, #tpu.memory_space<vmem>>, vector<1x56x56xbf16>
    %77 = vector.shape_cast %76 : vector<1x56x56xbf16> to vector<56x56xbf16>
    %cst_61 = arith.constant dense<0.000000e+00> : vector<64x56xf32>
    %78 = tpu.matmul %75, %77, %cst_61 {dimension_numbers = #tpu.dot_dimension_numbers<[1], [0], [0], [1], [0, 0, 1, 1], [], []>} : vector<64x56xbf16>, vector<56x56xbf16>, vector<64x56xf32> -> vector<64x56xf32>
    %79 = arith.addf %74, %78 : vector<64x56xf32>
    %c0_62 = arith.constant 0 : index
    %c0_63 = arith.constant 0 : index
    %80 = vector.load %arg5[%c0_62, %c0_63] : memref<1x56xf32, #tpu.memory_space<vmem>>, vector<1x56xf32>
    %81 = vector.broadcast %80 : vector<1x56xf32> to vector<64x56xf32>
    %82 = arith.addf %79, %81 : vector<64x56xf32>
    %cst_64 = arith.constant 0.000000e+00 : f32
    %83 = vector.broadcast %cst_64 : f32 to vector<64x56xf32>
    %84 = arith.maximumf %82, %83 : vector<64x56xf32>
    %85 = arith.truncf %84 : vector<64x56xf32> to vector<64x56xbf16>
    %c2_65 = arith.constant 2 : index
    %c0_66 = arith.constant 0 : index
    %c0_67 = arith.constant 0 : index
    %86 = vector.load %arg6[%c2_65, %c0_66, %c0_67] : memref<7x56x128xbf16, #tpu.memory_space<vmem>>, vector<1x56x128xbf16>
    %87 = vector.shape_cast %86 : vector<1x56x128xbf16> to vector<56x128xbf16>
    %cst_68 = arith.constant dense<0.000000e+00> : vector<64x128xf32>
    %88 = tpu.matmul %85, %87, %cst_68 {dimension_numbers = #tpu.dot_dimension_numbers<[1], [0], [0], [1], [0, 0, 1, 1], [], []>} : vector<64x56xbf16>, vector<56x128xbf16>, vector<64x128xf32> -> vector<64x128xf32>
    %89 = vector.extract_strided_slice %9 {offsets = [320, 0], sizes = [64, 56], strides = [1, 1]} : vector<896x56xbf16> to vector<64x56xbf16>
    %c0_69 = arith.constant 0 : index
    %c0_70 = arith.constant 0 : index
    %c0_71 = arith.constant 0 : index
    %90 = vector.load %arg4[%c0_69, %c0_70, %c0_71] : memref<4x56x56xbf16, #tpu.memory_space<vmem>>, vector<1x56x56xbf16>
    %91 = vector.shape_cast %90 : vector<1x56x56xbf16> to vector<56x56xbf16>
    %cst_72 = arith.constant dense<0.000000e+00> : vector<64x56xf32>
    %92 = tpu.matmul %89, %91, %cst_72 {dimension_numbers = #tpu.dot_dimension_numbers<[1], [0], [0], [1], [0, 0, 1, 1], [], []>} : vector<64x56xbf16>, vector<56x56xbf16>, vector<64x56xf32> -> vector<64x56xf32>
    %93 = vector.extract_strided_slice %9 {offsets = [384, 0], sizes = [64, 56], strides = [1, 1]} : vector<896x56xbf16> to vector<64x56xbf16>
    %c1_73 = arith.constant 1 : index
    %c0_74 = arith.constant 0 : index
    %c0_75 = arith.constant 0 : index
    %94 = vector.load %arg4[%c1_73, %c0_74, %c0_75] : memref<4x56x56xbf16, #tpu.memory_space<vmem>>, vector<1x56x56xbf16>
    %95 = vector.shape_cast %94 : vector<1x56x56xbf16> to vector<56x56xbf16>
    %cst_76 = arith.constant dense<0.000000e+00> : vector<64x56xf32>
    %96 = tpu.matmul %93, %95, %cst_76 {dimension_numbers = #tpu.dot_dimension_numbers<[1], [0], [0], [1], [0, 0, 1, 1], [], []>} : vector<64x56xbf16>, vector<56x56xbf16>, vector<64x56xf32> -> vector<64x56xf32>
    %97 = arith.addf %92, %96 : vector<64x56xf32>
    %98 = vector.extract_strided_slice %9 {offsets = [448, 0], sizes = [64, 56], strides = [1, 1]} : vector<896x56xbf16> to vector<64x56xbf16>
    %c2_77 = arith.constant 2 : index
    %c0_78 = arith.constant 0 : index
    %c0_79 = arith.constant 0 : index
    %99 = vector.load %arg4[%c2_77, %c0_78, %c0_79] : memref<4x56x56xbf16, #tpu.memory_space<vmem>>, vector<1x56x56xbf16>
    %100 = vector.shape_cast %99 : vector<1x56x56xbf16> to vector<56x56xbf16>
    %cst_80 = arith.constant dense<0.000000e+00> : vector<64x56xf32>
    %101 = tpu.matmul %98, %100, %cst_80 {dimension_numbers = #tpu.dot_dimension_numbers<[1], [0], [0], [1], [0, 0, 1, 1], [], []>} : vector<64x56xbf16>, vector<56x56xbf16>, vector<64x56xf32> -> vector<64x56xf32>
    %102 = arith.addf %97, %101 : vector<64x56xf32>
    %103 = vector.extract_strided_slice %9 {offsets = [512, 0], sizes = [64, 56], strides = [1, 1]} : vector<896x56xbf16> to vector<64x56xbf16>
    %c3_81 = arith.constant 3 : index
    %c0_82 = arith.constant 0 : index
    %c0_83 = arith.constant 0 : index
    %104 = vector.load %arg4[%c3_81, %c0_82, %c0_83] : memref<4x56x56xbf16, #tpu.memory_space<vmem>>, vector<1x56x56xbf16>
    %105 = vector.shape_cast %104 : vector<1x56x56xbf16> to vector<56x56xbf16>
    %cst_84 = arith.constant dense<0.000000e+00> : vector<64x56xf32>
    %106 = tpu.matmul %103, %105, %cst_84 {dimension_numbers = #tpu.dot_dimension_numbers<[1], [0], [0], [1], [0, 0, 1, 1], [], []>} : vector<64x56xbf16>, vector<56x56xbf16>, vector<64x56xf32> -> vector<64x56xf32>
    %107 = arith.addf %102, %106 : vector<64x56xf32>
    %c0_85 = arith.constant 0 : index
    %c0_86 = arith.constant 0 : index
    %108 = vector.load %arg5[%c0_85, %c0_86] : memref<1x56xf32, #tpu.memory_space<vmem>>, vector<1x56xf32>
    %109 = vector.broadcast %108 : vector<1x56xf32> to vector<64x56xf32>
    %110 = arith.addf %107, %109 : vector<64x56xf32>
    %cst_87 = arith.constant 0.000000e+00 : f32
    %111 = vector.broadcast %cst_87 : f32 to vector<64x56xf32>
    %112 = arith.maximumf %110, %111 : vector<64x56xf32>
    %113 = arith.truncf %112 : vector<64x56xf32> to vector<64x56xbf16>
    %c3_88 = arith.constant 3 : index
    %c0_89 = arith.constant 0 : index
    %c0_90 = arith.constant 0 : index
    %114 = vector.load %arg6[%c3_88, %c0_89, %c0_90] : memref<7x56x128xbf16, #tpu.memory_space<vmem>>, vector<1x56x128xbf16>
    %115 = vector.shape_cast %114 : vector<1x56x128xbf16> to vector<56x128xbf16>
    %cst_91 = arith.constant dense<0.000000e+00> : vector<64x128xf32>
    %116 = tpu.matmul %113, %115, %cst_91 {dimension_numbers = #tpu.dot_dimension_numbers<[1], [0], [0], [1], [0, 0, 1, 1], [], []>} : vector<64x56xbf16>, vector<56x128xbf16>, vector<64x128xf32> -> vector<64x128xf32>
    %117 = vector.extract_strided_slice %9 {offsets = [448, 0], sizes = [64, 56], strides = [1, 1]} : vector<896x56xbf16> to vector<64x56xbf16>
    %c0_92 = arith.constant 0 : index
    %c0_93 = arith.constant 0 : index
    %c0_94 = arith.constant 0 : index
    %118 = vector.load %arg4[%c0_92, %c0_93, %c0_94] : memref<4x56x56xbf16, #tpu.memory_space<vmem>>, vector<1x56x56xbf16>
    %119 = vector.shape_cast %118 : vector<1x56x56xbf16> to vector<56x56xbf16>
    %cst_95 = arith.constant dense<0.000000e+00> : vector<64x56xf32>
    %120 = tpu.matmul %117, %119, %cst_95 {dimension_numbers = #tpu.dot_dimension_numbers<[1], [0], [0], [1], [0, 0, 1, 1], [], []>} : vector<64x56xbf16>, vector<56x56xbf16>, vector<64x56xf32> -> vector<64x56xf32>
    %121 = vector.extract_strided_slice %9 {offsets = [512, 0], sizes = [64, 56], strides = [1, 1]} : vector<896x56xbf16> to vector<64x56xbf16>
    %c1_96 = arith.constant 1 : index
    %c0_97 = arith.constant 0 : index
    %c0_98 = arith.constant 0 : index
    %122 = vector.load %arg4[%c1_96, %c0_97, %c0_98] : memref<4x56x56xbf16, #tpu.memory_space<vmem>>, vector<1x56x56xbf16>
    %123 = vector.shape_cast %122 : vector<1x56x56xbf16> to vector<56x56xbf16>
    %cst_99 = arith.constant dense<0.000000e+00> : vector<64x56xf32>
    %124 = tpu.matmul %121, %123, %cst_99 {dimension_numbers = #tpu.dot_dimension_numbers<[1], [0], [0], [1], [0, 0, 1, 1], [], []>} : vector<64x56xbf16>, vector<56x56xbf16>, vector<64x56xf32> -> vector<64x56xf32>
    %125 = arith.addf %120, %124 : vector<64x56xf32>
    %126 = vector.extract_strided_slice %9 {offsets = [576, 0], sizes = [64, 56], strides = [1, 1]} : vector<896x56xbf16> to vector<64x56xbf16>
    %c2_100 = arith.constant 2 : index
    %c0_101 = arith.constant 0 : index
    %c0_102 = arith.constant 0 : index
    %127 = vector.load %arg4[%c2_100, %c0_101, %c0_102] : memref<4x56x56xbf16, #tpu.memory_space<vmem>>, vector<1x56x56xbf16>
    %128 = vector.shape_cast %127 : vector<1x56x56xbf16> to vector<56x56xbf16>
    %cst_103 = arith.constant dense<0.000000e+00> : vector<64x56xf32>
    %129 = tpu.matmul %126, %128, %cst_103 {dimension_numbers = #tpu.dot_dimension_numbers<[1], [0], [0], [1], [0, 0, 1, 1], [], []>} : vector<64x56xbf16>, vector<56x56xbf16>, vector<64x56xf32> -> vector<64x56xf32>
    %130 = arith.addf %125, %129 : vector<64x56xf32>
    %131 = vector.extract_strided_slice %9 {offsets = [640, 0], sizes = [64, 56], strides = [1, 1]} : vector<896x56xbf16> to vector<64x56xbf16>
    %c3_104 = arith.constant 3 : index
    %c0_105 = arith.constant 0 : index
    %c0_106 = arith.constant 0 : index
    %132 = vector.load %arg4[%c3_104, %c0_105, %c0_106] : memref<4x56x56xbf16, #tpu.memory_space<vmem>>, vector<1x56x56xbf16>
    %133 = vector.shape_cast %132 : vector<1x56x56xbf16> to vector<56x56xbf16>
    %cst_107 = arith.constant dense<0.000000e+00> : vector<64x56xf32>
    %134 = tpu.matmul %131, %133, %cst_107 {dimension_numbers = #tpu.dot_dimension_numbers<[1], [0], [0], [1], [0, 0, 1, 1], [], []>} : vector<64x56xbf16>, vector<56x56xbf16>, vector<64x56xf32> -> vector<64x56xf32>
    %135 = arith.addf %130, %134 : vector<64x56xf32>
    %c0_108 = arith.constant 0 : index
    %c0_109 = arith.constant 0 : index
    %136 = vector.load %arg5[%c0_108, %c0_109] : memref<1x56xf32, #tpu.memory_space<vmem>>, vector<1x56xf32>
    %137 = vector.broadcast %136 : vector<1x56xf32> to vector<64x56xf32>
    %138 = arith.addf %135, %137 : vector<64x56xf32>
    %cst_110 = arith.constant 0.000000e+00 : f32
    %139 = vector.broadcast %cst_110 : f32 to vector<64x56xf32>
    %140 = arith.maximumf %138, %139 : vector<64x56xf32>
    %141 = arith.truncf %140 : vector<64x56xf32> to vector<64x56xbf16>
    %c4 = arith.constant 4 : index
    %c0_111 = arith.constant 0 : index
    %c0_112 = arith.constant 0 : index
    %142 = vector.load %arg6[%c4, %c0_111, %c0_112] : memref<7x56x128xbf16, #tpu.memory_space<vmem>>, vector<1x56x128xbf16>
    %143 = vector.shape_cast %142 : vector<1x56x128xbf16> to vector<56x128xbf16>
    %cst_113 = arith.constant dense<0.000000e+00> : vector<64x128xf32>
    %144 = tpu.matmul %141, %143, %cst_113 {dimension_numbers = #tpu.dot_dimension_numbers<[1], [0], [0], [1], [0, 0, 1, 1], [], []>} : vector<64x56xbf16>, vector<56x128xbf16>, vector<64x128xf32> -> vector<64x128xf32>
    %145 = vector.extract_strided_slice %9 {offsets = [576, 0], sizes = [64, 56], strides = [1, 1]} : vector<896x56xbf16> to vector<64x56xbf16>
    %c0_114 = arith.constant 0 : index
    %c0_115 = arith.constant 0 : index
    %c0_116 = arith.constant 0 : index
    %146 = vector.load %arg4[%c0_114, %c0_115, %c0_116] : memref<4x56x56xbf16, #tpu.memory_space<vmem>>, vector<1x56x56xbf16>
    %147 = vector.shape_cast %146 : vector<1x56x56xbf16> to vector<56x56xbf16>
    %cst_117 = arith.constant dense<0.000000e+00> : vector<64x56xf32>
    %148 = tpu.matmul %145, %147, %cst_117 {dimension_numbers = #tpu.dot_dimension_numbers<[1], [0], [0], [1], [0, 0, 1, 1], [], []>} : vector<64x56xbf16>, vector<56x56xbf16>, vector<64x56xf32> -> vector<64x56xf32>
    %149 = vector.extract_strided_slice %9 {offsets = [640, 0], sizes = [64, 56], strides = [1, 1]} : vector<896x56xbf16> to vector<64x56xbf16>
    %c1_118 = arith.constant 1 : index
    %c0_119 = arith.constant 0 : index
    %c0_120 = arith.constant 0 : index
    %150 = vector.load %arg4[%c1_118, %c0_119, %c0_120] : memref<4x56x56xbf16, #tpu.memory_space<vmem>>, vector<1x56x56xbf16>
    %151 = vector.shape_cast %150 : vector<1x56x56xbf16> to vector<56x56xbf16>
    %cst_121 = arith.constant dense<0.000000e+00> : vector<64x56xf32>
    %152 = tpu.matmul %149, %151, %cst_121 {dimension_numbers = #tpu.dot_dimension_numbers<[1], [0], [0], [1], [0, 0, 1, 1], [], []>} : vector<64x56xbf16>, vector<56x56xbf16>, vector<64x56xf32> -> vector<64x56xf32>
    %153 = arith.addf %148, %152 : vector<64x56xf32>
    %154 = vector.extract_strided_slice %9 {offsets = [704, 0], sizes = [64, 56], strides = [1, 1]} : vector<896x56xbf16> to vector<64x56xbf16>
    %c2_122 = arith.constant 2 : index
    %c0_123 = arith.constant 0 : index
    %c0_124 = arith.constant 0 : index
    %155 = vector.load %arg4[%c2_122, %c0_123, %c0_124] : memref<4x56x56xbf16, #tpu.memory_space<vmem>>, vector<1x56x56xbf16>
    %156 = vector.shape_cast %155 : vector<1x56x56xbf16> to vector<56x56xbf16>
    %cst_125 = arith.constant dense<0.000000e+00> : vector<64x56xf32>
    %157 = tpu.matmul %154, %156, %cst_125 {dimension_numbers = #tpu.dot_dimension_numbers<[1], [0], [0], [1], [0, 0, 1, 1], [], []>} : vector<64x56xbf16>, vector<56x56xbf16>, vector<64x56xf32> -> vector<64x56xf32>
    %158 = arith.addf %153, %157 : vector<64x56xf32>
    %159 = vector.extract_strided_slice %9 {offsets = [768, 0], sizes = [64, 56], strides = [1, 1]} : vector<896x56xbf16> to vector<64x56xbf16>
    %c3_126 = arith.constant 3 : index
    %c0_127 = arith.constant 0 : index
    %c0_128 = arith.constant 0 : index
    %160 = vector.load %arg4[%c3_126, %c0_127, %c0_128] : memref<4x56x56xbf16, #tpu.memory_space<vmem>>, vector<1x56x56xbf16>
    %161 = vector.shape_cast %160 : vector<1x56x56xbf16> to vector<56x56xbf16>
    %cst_129 = arith.constant dense<0.000000e+00> : vector<64x56xf32>
    %162 = tpu.matmul %159, %161, %cst_129 {dimension_numbers = #tpu.dot_dimension_numbers<[1], [0], [0], [1], [0, 0, 1, 1], [], []>} : vector<64x56xbf16>, vector<56x56xbf16>, vector<64x56xf32> -> vector<64x56xf32>
    %163 = arith.addf %158, %162 : vector<64x56xf32>
    %c0_130 = arith.constant 0 : index
    %c0_131 = arith.constant 0 : index
    %164 = vector.load %arg5[%c0_130, %c0_131] : memref<1x56xf32, #tpu.memory_space<vmem>>, vector<1x56xf32>
    %165 = vector.broadcast %164 : vector<1x56xf32> to vector<64x56xf32>
    %166 = arith.addf %163, %165 : vector<64x56xf32>
    %cst_132 = arith.constant 0.000000e+00 : f32
    %167 = vector.broadcast %cst_132 : f32 to vector<64x56xf32>
    %168 = arith.maximumf %166, %167 : vector<64x56xf32>
    %169 = arith.truncf %168 : vector<64x56xf32> to vector<64x56xbf16>
    %c5 = arith.constant 5 : index
    %c0_133 = arith.constant 0 : index
    %c0_134 = arith.constant 0 : index
    %170 = vector.load %arg6[%c5, %c0_133, %c0_134] : memref<7x56x128xbf16, #tpu.memory_space<vmem>>, vector<1x56x128xbf16>
    %171 = vector.shape_cast %170 : vector<1x56x128xbf16> to vector<56x128xbf16>
    %cst_135 = arith.constant dense<0.000000e+00> : vector<64x128xf32>
    %172 = tpu.matmul %169, %171, %cst_135 {dimension_numbers = #tpu.dot_dimension_numbers<[1], [0], [0], [1], [0, 0, 1, 1], [], []>} : vector<64x56xbf16>, vector<56x128xbf16>, vector<64x128xf32> -> vector<64x128xf32>
    %173 = vector.extract_strided_slice %9 {offsets = [704, 0], sizes = [64, 56], strides = [1, 1]} : vector<896x56xbf16> to vector<64x56xbf16>
    %c0_136 = arith.constant 0 : index
    %c0_137 = arith.constant 0 : index
    %c0_138 = arith.constant 0 : index
    %174 = vector.load %arg4[%c0_136, %c0_137, %c0_138] : memref<4x56x56xbf16, #tpu.memory_space<vmem>>, vector<1x56x56xbf16>
    %175 = vector.shape_cast %174 : vector<1x56x56xbf16> to vector<56x56xbf16>
    %cst_139 = arith.constant dense<0.000000e+00> : vector<64x56xf32>
    %176 = tpu.matmul %173, %175, %cst_139 {dimension_numbers = #tpu.dot_dimension_numbers<[1], [0], [0], [1], [0, 0, 1, 1], [], []>} : vector<64x56xbf16>, vector<56x56xbf16>, vector<64x56xf32> -> vector<64x56xf32>
    %177 = vector.extract_strided_slice %9 {offsets = [768, 0], sizes = [64, 56], strides = [1, 1]} : vector<896x56xbf16> to vector<64x56xbf16>
    %c1_140 = arith.constant 1 : index
    %c0_141 = arith.constant 0 : index
    %c0_142 = arith.constant 0 : index
    %178 = vector.load %arg4[%c1_140, %c0_141, %c0_142] : memref<4x56x56xbf16, #tpu.memory_space<vmem>>, vector<1x56x56xbf16>
    %179 = vector.shape_cast %178 : vector<1x56x56xbf16> to vector<56x56xbf16>
    %cst_143 = arith.constant dense<0.000000e+00> : vector<64x56xf32>
    %180 = tpu.matmul %177, %179, %cst_143 {dimension_numbers = #tpu.dot_dimension_numbers<[1], [0], [0], [1], [0, 0, 1, 1], [], []>} : vector<64x56xbf16>, vector<56x56xbf16>, vector<64x56xf32> -> vector<64x56xf32>
    %181 = arith.addf %176, %180 : vector<64x56xf32>
    %182 = vector.extract_strided_slice %9 {offsets = [832, 0], sizes = [64, 56], strides = [1, 1]} : vector<896x56xbf16> to vector<64x56xbf16>
    %c2_144 = arith.constant 2 : index
    %c0_145 = arith.constant 0 : index
    %c0_146 = arith.constant 0 : index
    %183 = vector.load %arg4[%c2_144, %c0_145, %c0_146] : memref<4x56x56xbf16, #tpu.memory_space<vmem>>, vector<1x56x56xbf16>
    %184 = vector.shape_cast %183 : vector<1x56x56xbf16> to vector<56x56xbf16>
    %cst_147 = arith.constant dense<0.000000e+00> : vector<64x56xf32>
    %185 = tpu.matmul %182, %184, %cst_147 {dimension_numbers = #tpu.dot_dimension_numbers<[1], [0], [0], [1], [0, 0, 1, 1], [], []>} : vector<64x56xbf16>, vector<56x56xbf16>, vector<64x56xf32> -> vector<64x56xf32>
    %186 = arith.addf %181, %185 : vector<64x56xf32>
    %c0_148 = arith.constant 0 : index
    %c0_149 = arith.constant 0 : index
    %187 = vector.load %arg5[%c0_148, %c0_149] : memref<1x56xf32, #tpu.memory_space<vmem>>, vector<1x56xf32>
    %188 = vector.broadcast %187 : vector<1x56xf32> to vector<64x56xf32>
    %189 = arith.addf %186, %188 : vector<64x56xf32>
    %cst_150 = arith.constant 0.000000e+00 : f32
    %190 = vector.broadcast %cst_150 : f32 to vector<64x56xf32>
    %191 = arith.maximumf %189, %190 : vector<64x56xf32>
    %192 = arith.truncf %191 : vector<64x56xf32> to vector<64x56xbf16>
    %c6 = arith.constant 6 : index
    %c0_151 = arith.constant 0 : index
    %c0_152 = arith.constant 0 : index
    %193 = vector.load %arg6[%c6, %c0_151, %c0_152] : memref<7x56x128xbf16, #tpu.memory_space<vmem>>, vector<1x56x128xbf16>
    %194 = vector.shape_cast %193 : vector<1x56x128xbf16> to vector<56x128xbf16>
    %cst_153 = arith.constant dense<0.000000e+00> : vector<64x128xf32>
    %195 = tpu.matmul %192, %194, %cst_153 {dimension_numbers = #tpu.dot_dimension_numbers<[1], [0], [0], [1], [0, 0, 1, 1], [], []>} : vector<64x56xbf16>, vector<56x128xbf16>, vector<64x128xf32> -> vector<64x128xf32>
    %196 = arith.addf %32, %60 : vector<64x128xf32>
    %197 = arith.addf %88, %116 : vector<64x128xf32>
    %198 = arith.addf %144, %172 : vector<64x128xf32>
    %199 = arith.addf %196, %197 : vector<64x128xf32>
    %200 = arith.addf %198, %195 : vector<64x128xf32>
    %201 = arith.addf %199, %200 : vector<64x128xf32>
    %c0_154 = arith.constant 0 : index
    %c0_155 = arith.constant 0 : index
    %202 = vector.load %arg7[%c0_154, %c0_155] : memref<1x128xf32, #tpu.memory_space<vmem>>, vector<1x128xf32>
    %203 = vector.broadcast %202 : vector<1x128xf32> to vector<64x128xf32>
    %204 = arith.addf %201, %203 : vector<64x128xf32>
    %cst_156 = arith.constant 0.000000e+00 : f32
    %205 = vector.broadcast %cst_156 : f32 to vector<64x128xf32>
    %206 = arith.maximumf %204, %205 : vector<64x128xf32>
    %207 = arith.truncf %206 : vector<64x128xf32> to vector<64x128xbf16>
    %c0_157 = arith.constant 0 : index
    %c0_158 = arith.constant 0 : index
    %208 = vector.load %arg8[%c0_157, %c0_158] : memref<128x128xbf16, #tpu.memory_space<vmem>>, vector<128x128xbf16>
    %cst_159 = arith.constant dense<0.000000e+00> : vector<64x128xf32>
    %209 = tpu.matmul %207, %208, %cst_159 {dimension_numbers = #tpu.dot_dimension_numbers<[1], [0], [0], [1], [0, 0, 1, 1], [], []>} : vector<64x128xbf16>, vector<128x128xbf16>, vector<64x128xf32> -> vector<64x128xf32>
    %c0_160 = arith.constant 0 : index
    %c0_161 = arith.constant 0 : index
    %210 = vector.load %arg9[%c0_160, %c0_161] : memref<1x128xf32, #tpu.memory_space<vmem>>, vector<1x128xf32>
    %211 = vector.broadcast %210 : vector<1x128xf32> to vector<64x128xf32>
    %212 = arith.addf %209, %211 : vector<64x128xf32>
    %cst_162 = arith.constant dense<0xFF800000> : vector<64xf32>
    %213 = vector.multi_reduction <maximumf>, %212, %cst_162 [1] : vector<64x128xf32> to vector<64xf32>
    %214 = vector.shape_cast %213 : vector<64xf32> to vector<64x1xf32>
    %215 = vector.broadcast %214 : vector<64x1xf32> to vector<64x128xf32>
    %216 = arith.subf %212, %215 : vector<64x128xf32>
    %217 = math.exp %216 : vector<64x128xf32>
    %cst_163 = arith.constant dense<0.000000e+00> : vector<64xf32>
    %218 = vector.multi_reduction <add>, %217, %cst_163 [1] : vector<64x128xf32> to vector<64xf32>
    %219 = vector.shape_cast %218 : vector<64xf32> to vector<64x1xf32>
    %220 = vector.broadcast %219 : vector<64x1xf32> to vector<64x128xf32>
    %221 = arith.divf %217, %220 : vector<64x128xf32>
    %c0_164 = arith.constant 0 : index
    %c0_165 = arith.constant 0 : index
    %222 = vector.load %arg10[%c0_164, %c0_165] : memref<64x128xf32, #tpu.memory_space<vmem>>, vector<64x128xf32>
    tpu.vector_store %arg10[%c0_164, %c0_165], %221 {strides = array<i32>} : memref<64x128xf32, #tpu.memory_space<vmem>>, vector<64x128xf32>,
    return
  }
  func.func @transform_0(%arg0: i32) -> (i32, i32, i32) {
    %c0_i32 = arith.constant 0 : i32
    %c0_i32_0 = arith.constant 0 : i32
    %c0_i32_1 = arith.constant 0 : i32
    return %arg0, %c0_i32, %c0_i32_0 : i32, i32, i32
  }
  func.func @transform_1(%arg0: i32) -> (i32, i32) {
    %c0_i32 = arith.constant 0 : i32
    %c0_i32_0 = arith.constant 0 : i32
    %c0_i32_1 = arith.constant 0 : i32
    return %c0_i32, %c0_i32_0 : i32, i32
  }
  func.func @transform_2(%arg0: i32) -> (i32, i32) {
    %c0_i32 = arith.constant 0 : i32
    %c0_i32_0 = arith.constant 0 : i32
    %c0_i32_1 = arith.constant 0 : i32
    return %c0_i32, %c0_i32_0 : i32, i32
  }
  func.func @transform_3(%arg0: i32) -> (i32, i32, i32) {
    %c0_i32 = arith.constant 0 : i32
    %c0_i32_0 = arith.constant 0 : i32
    %c0_i32_1 = arith.constant 0 : i32
    %c0_i32_2 = arith.constant 0 : i32
    return %c0_i32, %c0_i32_0, %c0_i32_1 : i32, i32, i32
  }
  func.func @transform_4(%arg0: i32) -> (i32, i32) {
    %c0_i32 = arith.constant 0 : i32
    %c0_i32_0 = arith.constant 0 : i32
    %c0_i32_1 = arith.constant 0 : i32
    return %c0_i32, %c0_i32_0 : i32, i32
  }
  func.func @transform_5(%arg0: i32) -> (i32, i32, i32) {
    %c0_i32 = arith.constant 0 : i32
    %c0_i32_0 = arith.constant 0 : i32
    %c0_i32_1 = arith.constant 0 : i32
    %c0_i32_2 = arith.constant 0 : i32
    return %c0_i32, %c0_i32_0, %c0_i32_1 : i32, i32, i32
  }
  func.func @transform_6(%arg0: i32) -> (i32, i32) {
    %c0_i32 = arith.constant 0 : i32
    %c0_i32_0 = arith.constant 0 : i32
    %c0_i32_1 = arith.constant 0 : i32
    return %c0_i32, %c0_i32_0 : i32, i32
  }
  func.func @transform_7(%arg0: i32) -> (i32, i32) {
    %c0_i32 = arith.constant 0 : i32
    %c0_i32_0 = arith.constant 0 : i32
    %c0_i32_1 = arith.constant 0 : i32
    return %c0_i32, %c0_i32_0 : i32, i32
  }
  func.func @transform_8(%arg0: i32) -> (i32, i32) {
    %c0_i32 = arith.constant 0 : i32
    %c0_i32_0 = arith.constant 0 : i32
    %c0_i32_1 = arith.constant 0 : i32
    return %c0_i32, %c0_i32_0 : i32, i32
  }
  func.func @transform_9(%arg0: i32) -> (i32, i32) {
    %c0_i32 = arith.constant 0 : i32
    %c0_i32_0 = arith.constant 0 : i32
    return %arg0, %c0_i32 : i32, i32
  }
}

</mosaic_0001>

<bundles_post_ra>
// kernel: vae_classification_forward.1
= control target key start
LH: loop header
LB: loop body
LE: loop exit
PB: predicated region body
PF: predicated region fallthrough
CT: control target
= control target key end

     0   :  { %s6797_s30 = smov 0   ;;  %s8025_s0 = inlined_call_operand.vmem [shape: bf16[2,896,120], index: 0, kind: input, shape index: {}]   ;;  %s8026_s1 = inlined_call_operand.vmem [shape: bf16[120,56], index: 1, kind: input, shape index: {}]   ;;  %s8027_s2 = inlined_call_operand.vmem [shape: f32[1,56], index: 2, kind: input, shape index: {}]   ;;  %s8028_s3 = inlined_call_operand.vmem [shape: bf16[4,56,56], index: 3, kind: input, shape index: {}]   ;;  %s8029_s4 = inlined_call_operand.vmem [shape: f32[1,56], index: 4, kind: input, shape index: {}]   ;;  %s8030_s5 = inlined_call_operand.vmem [shape: bf16[7,56,128], index: 5, kind: input, shape index: {}]   ;;  %s8031_s6 = inlined_call_operand.vmem [shape: f32[1,128], index: 6, kind: input, shape index: {}]   ;;  %s8032_s7 = inlined_call_operand.vmem [shape: bf16[128,128], index: 7, kind: input, shape index: {}]   ;;  %s8033_s8 = inlined_call_operand.vmem [shape: f32[1,128], index: 8, kind: input, shape index: {}]   ;;  %s8034_s9 = inlined_call_operand.vmem [shape: f32[128,128], index: 9, kind: output, shape index: {}]  }
   0x1 LB: > { %s6803_s10 = sadd.s32 4294967295, %s6745_s30   ;;  %p4934_p0 = scmp.ge.s32.totalorder %s6745_s30, 1  ;;  %s6745_s30 = sphi %s6797_s30, %s19_s30  }
   0x2   : > { %p287_p1 = scmp.lt.s32.totalorder %s6745_s30, 3 }
   0x4   : > { %p288_p2 = pnand %p4934_p0, %p287_p1 }
   0x6   : > { %291 = sbr.rel (%p288_p2) target bundleno = 2051 (0x803), region = 56 }
   0xd   : > { %v6574_v0 = vld [vmem:[%s8026_s1] sm:$0xff]   ;;  %v6575_v1 = vld [vmem:[%s8026_s1 + $0x8] sm:$0xff]   ;;  %p323_p3 = scmp.lt.s32.totalorder %s6803_s10, 1  ;;  %v6576_v2 = vld [vmem:[%s8026_s1 + $0x10] sm:$0xff]   ;;  %vm794_vm0 = vcmask 982016   ;;  %vm963_vm1 = vcmask 1043456  }
   0xe   : > { %5651 = vmatprep.subr.bf16.mxu0 %v6574_v0  ;;  %v6577_v3 = vld [vmem:[%s8026_s1 + $0x18] sm:$0xff]   ;;  %v6578_v5 = vld [vmem:[%s8026_s1 + $0x20] sm:$0xff]   ;;  %v6579_v6 = vld [vmem:[%s8026_s1 + $0x28] sm:$0xff]   ;;  %vm1653_vm2 = vcmask 457728   ;;  %s4936_s27 = sshll.u32 %s6803_s10, 3 }
   0xf   : > { %5652 = vmatpush3.bf16.msra.mxu0 %v6574_v0  ;;  %s324_s15 = scalar_select %p323_p3, %s6803_s10, 1  ;;  %v6580_v7 = vld [vmem:[%s8026_s1 + $0x30] sm:$0xff]   ;;  %v6581_v8 = vld [vmem:[%s8026_s1 + $0x38] ss:$0 sps:$4 sm:$0xff]   ;;  %v6880_v28 = vld [vmem:[%s8028_s3 + $0x1c] sm:$0xff]  }
  0x10   : > { %5653 = vmatprep.subr.bf16.mxu0 %v6575_v1  ;;  %v965_v9 = vsel %vm963_vm1, %v6581_v8, 0  ;;  %v6885_v29 = vld [vmem:[%s8028_s3 + $0x24] sm:$0xff]   ;;  %5795 = vmatprep.subr.bf16.mxu1 %v6880_v28  ;;  %v6904_v35 = vld [vmem:[%s8028_s3 + $0x2c] sm:$0xff]   ;;  %v6913_v37 = vld [vmem:[%s8028_s3 + $0x34] ss:$0 sps:$4 sm:$0xff]   ;;  %p329_p4 = scmp.lt.s32.totalorder %s4936_s27, 15 }
  0x11   : > { %s6565_s18 = smul.u32 448, %s324_s15  ;;  %5796 = vmatpush3.bf16.msra.mxu1 %v6880_v28  ;;  %v6920_v38 = vsel %vm963_vm1, %v6913_v37, 0  ;;  %v6927_v40 = vld [vmem:[%s8028_s3 + $0x38] sm:$0xff]   ;;  %v6936_v42 = vld [vmem:[%s8028_s3 + $0x40] sm:$0xff]   ;;  %v6945_v44 = vld [vmem:[%s8028_s3 + $0x48] sm:$0xff]  }
  0x12   : > { %5797 = vmatprep.subr.bf16.mxu1 %v6885_v29  ;;  %v6954_v46 = vld [vmem:[%s8028_s3 + $0x50] ss:$0 sps:$4 sm:$0xff]   ;;  %v6968_v49 = vld [vmem:[%s8028_s3 + $0x54] sm:$0xff]   ;;  %s8084_s27 = smov (!%p329_p4, %s4936_s27), 15 }
  0x13   : > { %5654 = vmatpush3.bf16.msra.mxu0 %v6575_v1  ;;  %s6824_s23 = scalar_lea.vmem %s8025_s0, %s6565_s18  ;;  %v6961_v47 = vsel %vm963_vm1, %v6954_v46, 0  ;;  %s4937_s28 = sshll.u32 %s8084_s27, 3 }
  0x14   : > { %5655 = vmatprep.subr.bf16.mxu0 %v6576_v2  ;;  %v6582_v4 = vld [vmem:[%s6824_s23] sm:$0xff]   ;;  %v6583_v10 = vld [vmem:[%s6824_s23 + $0x8] sm:$0xff]   ;;  %v6584_v11 = vld [vmem:[%s6824_s23 + $0x10] sm:$0xff]   ;;  %s332_s12 = scalar_lea.vmem %s8034_s9, %s4937_s28 }
  0x15   : > { %5667 = vmatprep.mubr.msk.bf16.mxu0 %vm794_vm0, %v6582_v4  ;;  %v6585_v12 = vld [vmem:[%s6824_s23 + $0x18] sm:$0xff]   ;;  %v6586_v13 = vld [vmem:[%s6824_s23 + $0x20] sm:$0xff]   ;;  %v6587_v14 = vld [vmem:[%s6824_s23 + $0x28] sm:$0xff]   ;;  %5798 = vmatpush3.bf16.msra.mxu1 %v6885_v29 }
  0x16   : > { %v6588_v15 = vld [vmem:[%s6824_s23 + $0x30] sm:$0xff]   ;;  %v6589_v16 = vld [vmem:[%s6824_s23 + $0x38] sm:$0xff]   ;;  %v6590_v17 = vld [vmem:[%s6824_s23 + $0x40] sm:$0xff]   ;;  %5799 = vmatprep.subr.bf16.mxu1 %v6904_v35 }
  0x17   : > { %5656 = vmatpush3.bf16.msra.mxu0 %v6576_v2  ;;  %v6591_v18 = vld [vmem:[%s6824_s23 + $0x48] sm:$0xff]   ;;  %v6592_v19 = vld [vmem:[%s6824_s23 + $0x50] sm:$0xff]   ;;  %v6593_v20 = vld [vmem:[%s6824_s23 + $0x58] sm:$0xff]  }
  0x18   : > { %5657 = vmatprep.subr.bf16.mxu0 %v6577_v3  ;;  %v6594_v21 = vld [vmem:[%s6824_s23 + $0x60] sm:$0xff]   ;;  %v6595_v22 = vld [vmem:[%s6824_s23 + $0x68] sm:$0xff]   ;;  %v6596_v23 = vld [vmem:[%s6824_s23 + $0x70] sm:$0xff]  }
  0x19   : > { %v6597_v24 = vld [vmem:[%s6824_s23 + $0x78] sm:$0xff]   ;;  %v6598_v25 = vld [vmem:[%s6824_s23 + $0x80] sm:$0xff]   ;;  %v6599_v26 = vld [vmem:[%s6824_s23 + $0x88] sm:$0xff]   ;;  %5800 = vmatpush3.bf16.msra.mxu1 %v6904_v35 }
  0x1a   : > { %v6600_v27 = vld [vmem:[%s6824_s23 + $0x90] sm:$0xff]   ;;  %v6601_v30 = vld [vmem:[%s6824_s23 + $0x98] sm:$0xff]   ;;  %v6602_v31 = vld [vmem:[%s6824_s23 + $0xa0] sm:$0xff]   ;;  %6533 = vmatprep.subr.msk.bf16.mxu1 %vm963_vm1, %v6913_v37 }
  0x1b   : > { %5658 = vmatpush3.bf16.msra.mxu0 %v6577_v3  ;;  %v6603_v32 = vld [vmem:[%s6824_s23 + $0xa8] sm:$0xff]   ;;  %v6604_v33 = vld [vmem:[%s6824_s23 + $0xb0] sm:$0xff]   ;;  %v6605_v34 = vld [vmem:[%s6824_s23 + $0xb8] sm:$0xff]  }
  0x1c   : > { %5659 = vmatprep.subr.bf16.mxu0 %v6578_v5  ;;  %v6606_v36 = vld [vmem:[%s6824_s23 + $0xc0] sm:$0xff]   ;;  %v6607_v39 = vld [vmem:[%s6824_s23 + $0xc8] sm:$0xff]   ;;  %v6608_v41 = vld [vmem:[%s6824_s23 + $0xd0] sm:$0xff]  }
  0x1d   : > { %5802 = vmatpush3.bf16.msra.mxu1 %v6920_v38  ;;  %v6609_v43 = vld [vmem:[%s6824_s23 + $0xd8] sm:$0xff]   ;;  %v6610_v45 = vld [vmem:[%s6824_s23 + $0xe0] sm:$0xff]   ;;  %v6611_v48 = vld [vmem:[%s6824_s23 + $0xe8] sm:$0xff]  }
  0x1e   : > { %v6612_v50 = vld [vmem:[%s6824_s23 + $0xf0] sm:$0xff]   ;;  %5811 = vmatprep.subr.bf16.mxu1 %v6968_v49  ;;  %v6613_v51 = vld [vmem:[%s6824_s23 + $0xf8] sm:$0xff]   ;;  %v6614_v52 = vld [vmem:[%s6824_s23 + $0x100] sm:$0xff]  }
  0x1f   : > { %5660 = vmatpush3.bf16.msra.mxu0 %v6578_v5  ;;  %v6615_v53 = vld [vmem:[%s6824_s23 + $0x108] sm:$0xff]   ;;  %v6616_v54 = vld [vmem:[%s6824_s23 + $0x110] sm:$0xff]   ;;  %v6617_v55 = vld [vmem:[%s6824_s23 + $0x118] sm:$0xff]  }
  0x20   : > { %5661 = vmatprep.subr.bf16.mxu0 %v6579_v6  ;;  %v6618_v56 = vld [vmem:[%s6824_s23 + $0x120] sm:$0xff]   ;;  %v6619_v57 = vld [vmem:[%s6824_s23 + $0x128] sm:$0xff]   ;;  %v6620_v58 = vld [vmem:[%s6824_s23 + $0x130] sm:$0xff]  }
  0x21   : > { %v6621_v59 = vld [vmem:[%s6824_s23 + $0x138] sm:$0xff]   ;;  %v6622_v60 = vld [vmem:[%s6824_s23 + $0x140] sm:$0xff]   ;;  %v6623_v61 = vld [vmem:[%s6824_s23 + $0x148] sm:$0xff]  }
  0x22   : > { %v6624_v62 = vld [vmem:[%s6824_s23 + $0x150] sm:$0xff]   ;;  %v6625_v63 = vld [vmem:[%s6824_s23 + $0x158] sm:$0xff]   ;;  %v6626_v0 = vld [vmem:[%s6824_s23 + $0x160] sm:$0xff]  }
  0x23   : > { %5662 = vmatpush3.bf16.msra.mxu0 %v6579_v6  ;;  %v6627_v1 = vld [vmem:[%s6824_s23 + $0x168] sm:$0xff]   ;;  %v6628_v2 = vld [vmem:[%s6824_s23 + $0x170] sm:$0xff]   ;;  %v6629_v3 = vld [vmem:[%s6824_s23 + $0x178] sm:$0xff]  }
  0x24   : > { %5663 = vmatprep.subr.bf16.mxu0 %v6580_v7  ;;  %v6630_v4 = vld [vmem:[%s6824_s23 + $0x180] sm:$0xff]   ;;  %v6631_v5 = vld [vmem:[%s6824_s23 + $0x188] sm:$0xff]   ;;  %v6634_v6 = vld [vmem:[%s6824_s23 + $0x190] sm:$0xff]  }
  0x27   : > { %5664 = vmatpush3.bf16.msra.mxu0 %v6580_v7  ;;  %v6635_v7 = vld [vmem:[%s6824_s23 + $0x198] sm:$0xff]  }
  0x28   : > { %6531 = vmatprep.subr.msk.bf16.mxu0 %vm963_vm1, %v6581_v8  ;;  %v6638_v8 = vld [vmem:[%s6824_s23 + $0x1a0] sm:$0xff]  }
  0x2b   : > { %5666 = vmatpush3.bf16.msra.mxu0 %v965_v9  ;;  %v6639_v9 = vld [vmem:[%s6824_s23 + $0x1a8] sm:$0xff]  }
  0x2c   : > { %5779 = vmatprep.subr.bf16.mxu0 %v6927_v40 }
  0x2e   : > { %5668 = vmatmul.mubr.msk.bf16.vlgmr.msra.gmra.mrb[0].mxu0 %vm794_vm0, %v6583_v10  ;;  %v6642_v10 = vld [vmem:[%s6824_s23 + $0x1b0] sm:$0xff]  }
  0x2f   : > { %5671 = vmatprep.mubr.msk.bf16.mxu0 %vm794_vm0, %v6584_v11  ;;  %5780 = vmatpush3.bf16.msra.mxu0 %v6927_v40  ;;  %v7025_v11 = vld [vmem:[%s8027_s2] ss:$0 sm:$0xff] }
  0x30   : > { %5781 = vmatprep.subr.bf16.mxu0 %v6936_v42 }
  0x33   : > { %5782 = vmatpush3.bf16.msra.mxu0 %v6936_v42 }
  0x34   : > { %5783 = vmatprep.subr.bf16.mxu0 %v6945_v44 }
  0x36   : > { %5672 = vmatmul.mubr.msk.bf16.gmra.mrb[4].mxu0 %vm794_vm0, %v6585_v12 }
  0x37   : > { %5675 = vmatprep.mubr.msk.bf16.mxu0 %vm794_vm0, %v6586_v13  ;;  %5784 = vmatpush3.bf16.msra.mxu0 %v6945_v44 }
  0x38   : > { %6532 = vmatprep.subr.msk.bf16.mxu0 %vm963_vm1, %v6954_v46 }
  0x3b   : > { %5786 = vmatpush3.bf16.msra.mxu0 %v6961_v47 }
  0x3c   : > { %6051 = vmatprep.subr.bf16.mxu0 %v6880_v28 }
  0x3e   : > { %5676 = vmatmul.mubr.msk.bf16.gmra.mrb[8].mxu0 %vm794_vm0, %v6587_v14 }
  0x3f   : > { %5679 = vmatprep.mubr.msk.bf16.mxu0 %vm794_vm0, %v6588_v15  ;;  %v6643_v15 = vld [vmem:[%s6824_s23 + $0x1b8] sm:$0xff]  }
  0x46   : > { %5680 = vmatmul.mubr.msk.bf16.gmra.mrb[12].mxu0 %vm794_vm0, %v6589_v16 }
  0x47   : > { %5683 = vmatprep.mubr.msk.bf16.mxu0 %vm794_vm0, %v6590_v17 }
  0x4e   : > { %5684 = vmatmul.mubr.msk.bf16.gmra.mrb[16].mxu0 %vm794_vm0, %v6591_v18 }
  0x4f   : > { %5687 = vmatprep.mubr.msk.bf16.mxu0 %vm794_vm0, %v6592_v19 }
  0x56   : > { %5688 = vmatmul.mubr.msk.bf16.gmra.mrb[20].mxu0 %vm794_vm0, %v6593_v20 }
  0x57   : > { %5691 = vmatprep.mubr.msk.bf16.mxu0 %vm794_vm0, %v6594_v21 }
  0x5e   : > { %5692 = vmatmul.mubr.msk.bf16.gmra.mrb[24].mxu0 %vm794_vm0, %v6595_v22 }
  0x5f   : > { %5695 = vmatprep.mubr.msk.bf16.mxu0 %vm794_vm0, %v6596_v23 }
  0x66   : > { %5696 = vmatmul.mubr.msk.bf16.gmra.mrb[28].mxu0 %vm794_vm0, %v6597_v24 }
  0x67   : > { %5699 = vmatprep.mubr.msk.bf16.mxu0 %vm794_vm0, %v6598_v25 }
  0x6e   : > { %5700 = vmatmul.mubr.msk.bf16.gmra.mrb[32].mxu0 %vm794_vm0, %v6599_v26 }
  0x6f   : > { %5703 = vmatprep.mubr.msk.bf16.mxu0 %vm794_vm0, %v6600_v27 }
  0x76   : > { %5704 = vmatmul.mubr.msk.bf16.gmra.mrb[36].mxu0 %vm794_vm0, %v6601_v30 }
  0x77   : > { %5707 = vmatprep.mubr.msk.bf16.mxu0 %vm794_vm0, %v6602_v31 }
  0x7e   : > { %5708 = vmatmul.mubr.msk.bf16.gmra.mrb[40].mxu0 %vm794_vm0, %v6603_v32  ;;  %v7038_v32 = vld [vmem:[%s8028_s3 + $0x5c] sm:$0xff]  }
  0x7f   : > { %5711 = vmatprep.mubr.msk.bf16.mxu0 %vm794_vm0, %v6604_v33 }
  0x86   : > { %5712 = vmatmul.mubr.msk.bf16.gmra.mrb[44].mxu0 %vm794_vm0, %v6605_v34 }
  0x87   : > { %5715 = vmatprep.mubr.msk.bf16.mxu0 %vm794_vm0, %v6606_v36 }
  0x8e   : > { %5716 = vmatmul.mubr.msk.bf16.gmra.mrb[48].mxu0 %vm794_vm0, %v6607_v39 }
  0x8f   : > { %5719 = vmatprep.mubr.msk.bf16.mxu0 %vm794_vm0, %v6608_v41 }
  0x96   : > { %5720 = vmatmul.mubr.msk.bf16.gmra.mrb[52].mxu0 %vm794_vm0, %v6609_v43 }
  0x97   : > { %5723 = vmatprep.mubr.msk.bf16.mxu0 %vm794_vm0, %v6610_v45 }
  0x9e   : > { %5724 = vmatmul.mubr.msk.bf16.gmra.mrb[56].mxu0 %vm794_vm0, %v6611_v48  ;;  %v7050_v48 = vld [vmem:[%s8028_s3 + $0x64] sm:$0xff]  }
  0x9f   : > { %5727 = vmatprep.mubr.msk.bf16.mxu0 %vm794_vm0, %v6612_v50 }
  0xa6   : > { %5728 = vmatmul.mubr.msk.bf16.gmra.mrb[60].mxu0 %vm794_vm0, %v6613_v51 }
  0xa7   : > { %5731 = vmatprep.mubr.msk.bf16.mxu0 %vm794_vm0, %v6614_v52 }
  0xae   : > { %5732 = vmatmul.mubr.msk.bf16.gmra.mrb[64].mxu0 %vm794_vm0, %v6615_v53 }
  0xaf   : > { %5735 = vmatprep.mubr.msk.bf16.mxu0 %vm794_vm0, %v6616_v54 }
  0xb6   : > { %5736 = vmatmul.mubr.msk.bf16.gmra.mrb[68].mxu0 %vm794_vm0, %v6617_v55 }
  0xb7   : > { %5739 = vmatprep.mubr.msk.bf16.mxu0 %vm794_vm0, %v6618_v56 }
  0xbe   : > { %5740 = vmatmul.mubr.msk.bf16.gmra.mrb[72].mxu0 %vm794_vm0, %v6619_v57  ;;  %v7058_v57 = vld [vmem:[%s8028_s3 + $0x6c] ss:$0 sps:$4 sm:$0xff]  }
  0xbf   : > { %5743 = vmatprep.mubr.msk.bf16.mxu0 %vm794_vm0, %v6620_v58 }
  0xc6   : > { %5744 = vmatmul.mubr.msk.bf16.gmra.mrb[76].mxu0 %vm794_vm0, %v6621_v59 }
  0xc7   : > { %5747 = vmatprep.mubr.msk.bf16.mxu0 %vm794_vm0, %v6622_v60 }
  0xce   : > { %5748 = vmatmul.mubr.msk.bf16.gmra.mrb[80].mxu0 %vm794_vm0, %v6623_v61 }
  0xcf   : > { %5751 = vmatprep.mubr.msk.bf16.mxu0 %vm794_vm0, %v6624_v62 }
  0xd6   : > { %5752 = vmatmul.mubr.msk.bf16.gmra.mrb[84].mxu0 %vm794_vm0, %v6625_v63 }
  0xd7   : > { %5755 = vmatprep.mubr.msk.bf16.mxu0 %vm794_vm0, %v6626_v0 }
  0xde   : > { %5756 = vmatmul.mubr.msk.bf16.gmra.mrb[88].mxu0 %vm794_vm0, %v6627_v1  ;;  %v7070_v1 = vsel %vm963_vm1, %v7058_v57, 0 }
  0xdf   : > { %5759 = vmatprep.mubr.msk.bf16.mxu0 %vm794_vm0, %v6628_v2 }
  0xe6   : > { %5760 = vmatmul.mubr.msk.bf16.gmra.mrb[92].mxu0 %vm794_vm0, %v6629_v3 }
  0xe7   : > { %5763 = vmatprep.mubr.msk.bf16.mxu0 %vm794_vm0, %v6630_v4 }
  0xee   : > { %5764 = vmatmul.mubr.msk.bf16.gmra.mrb[96].mxu0 %vm794_vm0, %v6631_v5 }
  0xef   : > { %5767 = vmatprep.mubr.msk.bf16.mxu0 %vm794_vm0, %v6634_v6 }
  0xf6   : > { %5768 = vmatmul.mubr.msk.bf16.gmra.mrb[100].mxu0 %vm794_vm0, %v6635_v7 }
  0xf7   : > { %5771 = vmatprep.mubr.msk.bf16.mxu0 %vm794_vm0, %v6638_v8 }
  0xfe   : > { %5772 = vmatmul.mubr.msk.bf16.gmra.mrb[104].mxu0 %vm794_vm0, %v6639_v9 }
  0xff   : > { %5775 = vmatprep.mubr.msk.bf16.mxu0 %vm794_vm0, %v6642_v10 }
 0x101   : > { %v5669_v12 = vpop.f32.mrb[0].mxu0 }
 0x102   : > { %v1010_v13 = vadd.f32 %v5669_v12, %v7025_v11  ;;  %v1001_v14 = vpop.f32.mrb[1].mxu0 }
 0x103   : > { %v1002_v16 = vadd.f32 %v7025_v11, %v1001_v14  ;;  %v5670_v17 = vpop.f32.mrb[2].mxu0 }
 0x104   : > { %v1013_v18 = vadd.f32 %v5670_v17, %v7025_v11  ;;  %v1004_v19 = vpop.f32.mrb[3].mxu0  ;;  %v1450_v21 = vmax.f32 %v1010_v13, 0.0 }
 0x105   : > { %v1005_v20 = vadd.f32 %v7025_v11, %v1004_v19  ;;  %v1448_v23 = vmax.f32 %v1002_v16, 0.0 }
 0x106   : > { %v1451_v22 = vmax.f32 %v1013_v18, 0.0  ;;  %5776 = vmatmul.mubr.msk.bf16.gmra.mrb[108].mxu0 %vm794_vm0, %v6643_v15 }
 0x107   : > { %v1449_v24 = vmax.f32 %v1005_v20, 0.0 }
 0x108   : > { %v1561_v25 = vpack.c.bf16 %v1451_v22, %v1450_v21 }
 0x109   : > { %v5673_v26 = vpop.f32.mrb[4].mxu0  ;;  %v1560_v27 = vpack.c.bf16 %v1449_v24, %v1448_v23 }
 0x10a   : > { %v1026_v30 = vadd.f32 %v5673_v26, %v7025_v11  ;;  %v1017_v31 = vpop.f32.mrb[5].mxu0 }
 0x10b   : > { %v1018_v33 = vadd.f32 %v7025_v11, %v1017_v31  ;;  %v5674_v34 = vpop.f32.mrb[6].mxu0  ;;  %5803 = vmatprep.mubr.msk.bf16.mxu1 %vm1653_vm2, %v1560_v27 }
 0x10c   : > { %v1029_v36 = vadd.f32 %v5674_v34, %v7025_v11  ;;  %v1020_v39 = vpop.f32.mrb[7].mxu0  ;;  %5804 = vmatmul.mubr.msk.bf16.vlgmr.msra.gmra.mrb[0].mxu1 %vm1653_vm2, %v1561_v25  ;;  %v1454_v43 = vmax.f32 %v1026_v30, 0.0 }
 0x10d   : > { %v1021_v41 = vadd.f32 %v7025_v11, %v1020_v39  ;;  %5812 = vmatpush3.bf16.msra.mxu1 %v6968_v49  ;;  %v1452_v50 = vmax.f32 %v1018_v33, 0.0 }
 0x10e   : > { %v1455_v45 = vmax.f32 %v1029_v36, 0.0  ;;  %5813 = vmatprep.subr.bf16.mxu1 %v7038_v32 }
 0x10f   : > { %v1453_v51 = vmax.f32 %v1021_v41, 0.0  ;;  %v7108_v41 = vld [vmem:[%s8028_s3] sm:$0xff]  }
 0x110   : > { %v1563_v52 = vpack.c.bf16 %v1455_v45, %v1454_v43 }
 0x111   : > { %v1562_v53 = vpack.c.bf16 %v1453_v51, %v1452_v50  ;;  %v5677_v54 = vpop.f32.mrb[8].mxu0  ;;  %5814 = vmatpush3.bf16.msra.mxu1 %v7038_v32 }
 0x112   : > { %v1042_v55 = vadd.f32 %v5677_v54, %v7025_v11  ;;  %v1033_v56 = vpop.f32.mrb[9].mxu0  ;;  %5815 = vmatprep.subr.bf16.mxu1 %v7050_v48 }
 0x113   : > { %v1034_v58 = vadd.f32 %v7025_v11, %v1033_v56  ;;  %v5678_v59 = vpop.f32.mrb[10].mxu0  ;;  %5807 = vmatprep.mubr.msk.bf16.mxu1 %vm1653_vm2, %v1562_v53 }
 0x114   : > { %v1045_v60 = vadd.f32 %v5678_v59, %v7025_v11  ;;  %v1036_v61 = vpop.f32.mrb[11].mxu0  ;;  %5808 = vmatmul.mubr.msk.bf16.gmra.mrb[4].mxu1 %vm1653_vm2, %v1563_v52  ;;  %v1458_v63 = vmax.f32 %v1042_v55, 0.0 }
 0x115   : > { %v1037_v62 = vadd.f32 %v7025_v11, %v1036_v61  ;;  %5816 = vmatpush3.bf16.msra.mxu1 %v7050_v48  ;;  %v1456_v2 = vmax.f32 %v1034_v58, 0.0 }
 0x116   : > { %v1459_v0 = vmax.f32 %v1045_v60, 0.0  ;;  %6534 = vmatprep.subr.msk.bf16.mxu1 %vm963_vm1, %v7058_v57 }
 0x117   : > { %v1457_v3 = vmax.f32 %v1037_v62, 0.0 }
 0x118   : > { %v7072_v4 = vpack.c.bf16 %v1459_v0, %v1458_v63 }
 0x119   : > { %v7074_v5 = vpack.c.bf16 %v1457_v3, %v1456_v2  ;;  %v5681_v6 = vpop.f32.mrb[12].mxu0  ;;  %5818 = vmatpush3.bf16.msra.mxu1 %v7070_v1 }
 0x11a   : > { %v1058_v7 = vadd.f32 %v5681_v6, %v7025_v11  ;;  %v1049_v8 = vpop.f32.mrb[13].mxu0  ;;  %5827 = vmatprep.subr.bf16.mxu1 %v6880_v28 }
 0x11b   : > { %v1050_v9 = vadd.f32 %v7025_v11, %v1049_v8  ;;  %v5682_v10 = vpop.f32.mrb[14].mxu0  ;;  %5787 = vmatprep.mubr.msk.bf16.mxu0 %vm1653_vm2, %v7074_v5 }
 0x11c   : > { %v1061_v12 = vadd.f32 %v5682_v10, %v7025_v11  ;;  %v1052_v13 = vpop.f32.mrb[15].mxu0  ;;  %5788 = vmatmul.mubr.msk.bf16.vlgmr.msra.gmra.mrb[112].mxu0 %vm1653_vm2, %v7072_v4  ;;  %v1462_v15 = vmax.f32 %v1058_v7, 0.0 }
 0x11d   : > { %v1053_v14 = vadd.f32 %v7025_v11, %v1052_v13  ;;  %6052 = vmatpush3.bf16.msra.mxu0 %v6880_v28  ;;  %v1460_v17 = vmax.f32 %v1050_v9, 0.0 }
 0x11e   : > { %v1463_v16 = vmax.f32 %v1061_v12, 0.0  ;;  %6053 = vmatprep.subr.bf16.mxu0 %v6885_v29 }
 0x11f   : > { %v1461_v18 = vmax.f32 %v1053_v14, 0.0 }
 0x120   : > { %v7088_v19 = vpack.c.bf16 %v1463_v16, %v1462_v15 }
 0x121   : > { %v7090_v20 = vpack.c.bf16 %v1461_v18, %v1460_v17  ;;  %v5685_v21 = vpop.f32.mrb[16].mxu0  ;;  %6054 = vmatpush3.bf16.msra.mxu0 %v6885_v29 }
 0x122   : > { %v1074_v22 = vadd.f32 %v5685_v21, %v7025_v11  ;;  %v1065_v23 = vpop.f32.mrb[17].mxu0  ;;  %6055 = vmatprep.subr.bf16.mxu0 %v6904_v35 }
 0x123   : > { %v1066_v24 = vadd.f32 %v7025_v11, %v1065_v23  ;;  %v5686_v25 = vpop.f32.mrb[18].mxu0  ;;  %5791 = vmatprep.mubr.msk.bf16.mxu0 %vm1653_vm2, %v7090_v20 }
 0x124   : > { %v1077_v26 = vadd.f32 %v5686_v25, %v7025_v11  ;;  %v1068_v27 = vpop.f32.mrb[19].mxu0  ;;  %5792 = vmatmul.mubr.msk.bf16.gmra.mrb[116].mxu0 %vm1653_vm2, %v7088_v19  ;;  %v1466_v31 = vmax.f32 %v1074_v22, 0.0 }
 0x125   : > { %v1069_v30 = vadd.f32 %v7025_v11, %v1068_v27  ;;  %6056 = vmatpush3.bf16.msra.mxu0 %v6904_v35  ;;  %v1464_v34 = vmax.f32 %v1066_v24, 0.0  ;;  %v7154_v27 = vld [vmem:[%s8028_s3 + $0x10] sm:$0xff]  }
 0x126   : > { %v1467_v33 = vmax.f32 %v1077_v26, 0.0  ;;  %6549 = vmatprep.subr.msk.bf16.mxu0 %vm963_vm1, %v6913_v37 }
 0x127   : > { %v1465_v36 = vmax.f32 %v1069_v30, 0.0 }
 0x128   : > { %v1569_v39 = vpack.c.bf16 %v1467_v33, %v1466_v31 }
 0x129   : > { %v1568_v43 = vpack.c.bf16 %v1465_v36, %v1464_v34  ;;  %v5689_v45 = vpop.f32.mrb[20].mxu0  ;;  %6058 = vmatpush3.bf16.msra.mxu0 %v6920_v38 }
 0x12a   : > { %v1090_v50 = vadd.f32 %v5689_v45, %v7025_v11  ;;  %v1081_v51 = vpop.f32.mrb[21].mxu0  ;;  %6067 = vmatprep.subr.bf16.mxu0 %v7108_v41 }
 0x12b   : > { %v1082_v52 = vadd.f32 %v7025_v11, %v1081_v51  ;;  %v5690_v53 = vpop.f32.mrb[22].mxu0  ;;  %5819 = vmatprep.mubr.msk.bf16.mxu1 %vm1653_vm2, %v1568_v43 }
 0x12c   : > { %v1093_v54 = vadd.f32 %v5690_v53, %v7025_v11  ;;  %v1084_v55 = vpop.f32.mrb[23].mxu0  ;;  %5820 = vmatmul.mubr.msk.bf16.vlgmr.msra.gmra.mrb[0].mxu1 %vm1653_vm2, %v1569_v39  ;;  %v1470_v58 = vmax.f32 %v1090_v50, 0.0 }
 0x12d   : > { %v1085_v56 = vadd.f32 %v7025_v11, %v1084_v55  ;;  %5828 = vmatpush3.bf16.msra.mxu1 %v6880_v28  ;;  %v1468_v60 = vmax.f32 %v1082_v52, 0.0 }
 0x12e   : > { %v1471_v59 = vmax.f32 %v1093_v54, 0.0  ;;  %5829 = vmatprep.subr.bf16.mxu1 %v6885_v29 }
 0x12f   : > { %v1469_v61 = vmax.f32 %v1085_v56, 0.0 }
 0x130   : > { %v1571_v62 = vpack.c.bf16 %v1471_v59, %v1470_v58 }
 0x131   : > { %v1570_v63 = vpack.c.bf16 %v1469_v61, %v1468_v60  ;;  %5830 = vmatpush3.bf16.msra.mxu1 %v6885_v29  ;;  %v5693_v0 = vpop.f32.mrb[24].mxu0 }
 0x132   : > { %5831 = vmatprep.subr.bf16.mxu1 %v6904_v35  ;;  %v1106_v2 = vadd.f32 %v5693_v0, %v7025_v11  ;;  %v1097_v3 = vpop.f32.mrb[25].mxu0 }
 0x133   : > { %5823 = vmatprep.mubr.msk.bf16.mxu1 %vm1653_vm2, %v1570_v63  ;;  %v1098_v28 = vadd.f32 %v7025_v11, %v1097_v3  ;;  %v5694_v6 = vpop.f32.mrb[26].mxu0 }
 0x134   : > { %5824 = vmatmul.mubr.msk.bf16.gmra.mrb[4].mxu1 %vm1653_vm2, %v1571_v62  ;;  %v1474_v7 = vmax.f32 %v1106_v2, 0.0  ;;  %v1109_v8 = vadd.f32 %v5694_v6, %v7025_v11  ;;  %v1100_v9 = vpop.f32.mrb[27].mxu0 }
 0x135   : > { %5832 = vmatpush3.bf16.msra.mxu1 %v6904_v35  ;;  %5835 = vmatprep.mubr.msk.bf16.mxu1 %vm1653_vm2, %v1568_v43  ;;  %v1472_v29 = vmax.f32 %v1098_v28, 0.0  ;;  %v1101_v10 = vadd.f32 %v7025_v11, %v1100_v9  ;;  %v7141_v35 = vld [vmem:[%s8028_s3 + $0x8] sm:$0xff]  }
 0x136   : > { %6535 = vmatprep.subr.msk.bf16.mxu1 %vm963_vm1, %v6913_v37  ;;  %v1475_v12 = vmax.f32 %v1109_v8, 0.0 }
 0x137   : > { %v1473_v13 = vmax.f32 %v1101_v10, 0.0 }
 0x138   : > { %v7132_v14 = vpack.c.bf16 %v1475_v12, %v1474_v7 }
 0x139   : > { %5834 = vmatpush3.bf16.msra.mxu1 %v6920_v38  ;;  %v7135_v15 = vpack.c.bf16 %v1473_v13, %v1472_v29  ;;  %v5697_v16 = vpop.f32.mrb[28].mxu0 }
 0x13a   : > { %5843 = vmatprep.subr.bf16.mxu1 %v7108_v41  ;;  %v1122_v17 = vadd.f32 %v5697_v16, %v7025_v11  ;;  %v1113_v18 = vpop.f32.mrb[29].mxu0 }
 0x13b   : > { %v1114_v37 = vadd.f32 %v7025_v11, %v1113_v18  ;;  %v5698_v21 = vpop.f32.mrb[30].mxu0 }
 0x13c   : > { %5836 = vmatmul.mubr.msk.bf16.vlgmr.msra.gmra.mrb[8].mxu1 %vm1653_vm2, %v1569_v39  ;;  %v1478_v22 = vmax.f32 %v1122_v17, 0.0  ;;  %v1125_v23 = vadd.f32 %v5698_v21, %v7025_v11  ;;  %v1116_v24 = vpop.f32.mrb[31].mxu0  ;;  %v7165_v39 = vld [vmem:[%s8028_s3 + $0x18] ss:$0 sps:$4 sm:$0xff]  }
 0x13d   : > { %5844 = vmatpush3.bf16.msra.mxu1 %v7108_v41  ;;  %5839 = vmatprep.mubr.msk.bf16.mxu1 %vm1653_vm2, %v1570_v63  ;;  %v1476_v25 = vmax.f32 %v1114_v37, 0.0  ;;  %v1117_v26 = vadd.f32 %v7025_v11, %v1116_v24  ;;  %v7179_v58 = vsel %vm963_vm1, %v7165_v39, 0 }
 0x13e   : > { %5845 = vmatprep.subr.bf16.mxu1 %v7141_v35  ;;  %v1479_v30 = vmax.f32 %v1125_v23, 0.0 }
 0x13f   : > { %v1477_v31 = vmax.f32 %v1117_v26, 0.0 }
 0x140   : > { %v7156_v33 = vpack.c.bf16 %v1479_v30, %v1478_v22 }
 0x141   : > { %5846 = vmatpush3.bf16.msra.mxu1 %v7141_v35  ;;  %v7159_v34 = vpack.c.bf16 %v1477_v31, %v1476_v25  ;;  %v5701_v36 = vpop.f32.mrb[32].mxu0 }
 0x142   : > { %5847 = vmatprep.subr.bf16.mxu1 %v7154_v27  ;;  %v1138_v43 = vadd.f32 %v5701_v36, %v7025_v11  ;;  %v1129_v45 = vpop.f32.mrb[33].mxu0 }
 0x143   : > { %v1130_v50 = vadd.f32 %v7025_v11, %v1129_v45  ;;  %v5702_v51 = vpop.f32.mrb[34].mxu0 }
 0x144   : > { %5840 = vmatmul.mubr.msk.bf16.gmra.mrb[12].mxu1 %vm1653_vm2, %v1571_v62  ;;  %v1482_v52 = vmax.f32 %v1138_v43, 0.0  ;;  %v1141_v53 = vadd.f32 %v5702_v51, %v7025_v11  ;;  %v1132_v54 = vpop.f32.mrb[35].mxu0 }
 0x145   : > { %5848 = vmatpush3.bf16.msra.mxu1 %v7154_v27  ;;  %5851 = vmatprep.mubr.msk.bf16.mxu1 %vm1653_vm2, %v7074_v5  ;;  %v1480_v55 = vmax.f32 %v1130_v50, 0.0  ;;  %v1133_v56 = vadd.f32 %v7025_v11, %v1132_v54 }
 0x146   : > { %6536 = vmatprep.subr.msk.bf16.mxu1 %vm963_vm1, %v7165_v39  ;;  %v1483_v59 = vmax.f32 %v1141_v53, 0.0 }
 0x147   : > { %v1481_v60 = vmax.f32 %v1133_v56, 0.0 }
 0x148   : > { %v7181_v61 = vpack.c.bf16 %v1483_v59, %v1482_v52 }
 0x149   : > { %5850 = vmatpush3.bf16.msra.mxu1 %v7179_v58  ;;  %v7184_v62 = vpack.c.bf16 %v1481_v60, %v1480_v55  ;;  %v5705_v63 = vpop.f32.mrb[36].mxu0 }
 0x14a   : > { %5859 = vmatprep.subr.bf16.mxu1 %v6927_v40  ;;  %v1154_v5 = vadd.f32 %v5705_v63, %v7025_v11  ;;  %v1145_v0 = vpop.f32.mrb[37].mxu0 }
 0x14b   : > { %v1146_v2 = vadd.f32 %v7025_v11, %v1145_v0  ;;  %v5706_v3 = vpop.f32.mrb[38].mxu0 }
 0x14c   : > { %5852 = vmatmul.mubr.msk.bf16.vlgmr.msra.gmra.mrb[8].mxu1 %vm1653_vm2, %v7072_v4  ;;  %v1486_v28 = vmax.f32 %v1154_v5, 0.0  ;;  %v1157_v6 = vadd.f32 %v5706_v3, %v7025_v11  ;;  %v1148_v7 = vpop.f32.mrb[39].mxu0 }
 0x14d   : > { %5860 = vmatpush3.bf16.msra.mxu1 %v6927_v40  ;;  %5855 = vmatprep.mubr.msk.bf16.mxu1 %vm1653_vm2, %v7090_v20  ;;  %v1484_v8 = vmax.f32 %v1146_v2, 0.0  ;;  %v1149_v9 = vadd.f32 %v7025_v11, %v1148_v7 }
 0x14e   : > { %5861 = vmatprep.subr.bf16.mxu1 %v6936_v42  ;;  %v1487_v29 = vmax.f32 %v1157_v6, 0.0 }
 0x14f   : > { %v1485_v10 = vmax.f32 %v1149_v9, 0.0 }
 0x150   : > { %v7197_v12 = vpack.c.bf16 %v1487_v29, %v1486_v28 }
 0x151   : > { %5862 = vmatpush3.bf16.msra.mxu1 %v6936_v42  ;;  %v7200_v4 = vpack.c.bf16 %v1485_v10, %v1484_v8  ;;  %v5709_v13 = vpop.f32.mrb[40].mxu0 }
 0x152   : > { %5863 = vmatprep.subr.bf16.mxu1 %v6945_v44  ;;  %v1170_v16 = vadd.f32 %v5709_v13, %v7025_v11  ;;  %v1161_v17 = vpop.f32.mrb[41].mxu0 }
 0x153   : > { %v1162_v20 = vadd.f32 %v7025_v11, %v1161_v17  ;;  %v5710_v18 = vpop.f32.mrb[42].mxu0 }
 0x154   : > { %5856 = vmatmul.mubr.msk.bf16.gmra.mrb[12].mxu1 %vm1653_vm2, %v7088_v19  ;;  %v1490_v37 = vmax.f32 %v1170_v16, 0.0  ;;  %v1173_v21 = vadd.f32 %v5710_v18, %v7025_v11  ;;  %v1164_v22 = vpop.f32.mrb[43].mxu0 }
 0x155   : > { %5864 = vmatpush3.bf16.msra.mxu1 %v6945_v44  ;;  %5867 = vmatprep.mubr.msk.bf16.mxu1 %vm1653_vm2, %v7135_v15  ;;  %v1488_v23 = vmax.f32 %v1162_v20, 0.0  ;;  %v1165_v24 = vadd.f32 %v7025_v11, %v1164_v22 }
 0x156   : > { %6537 = vmatprep.subr.msk.bf16.mxu1 %vm963_vm1, %v6954_v46  ;;  %v1491_v25 = vmax.f32 %v1173_v21, 0.0 }
 0x157   : > { %v1489_v26 = vmax.f32 %v1165_v24, 0.0 }
 0x158   : > { %v7214_v30 = vpack.c.bf16 %v1491_v25, %v1490_v37 }
 0x159   : > { %5866 = vmatpush3.bf16.msra.mxu1 %v6961_v47  ;;  %v7217_v19 = vpack.c.bf16 %v1489_v26, %v1488_v23  ;;  %v5713_v31 = vpop.f32.mrb[44].mxu0 }
 0x15a   : > { %5875 = vmatprep.subr.bf16.mxu1 %v6968_v49  ;;  %v1186_v36 = vadd.f32 %v5713_v31, %v7025_v11  ;;  %v1177_v43 = vpop.f32.mrb[45].mxu0 }
 0x15b   : > { %v1178_v45 = vadd.f32 %v7025_v11, %v1177_v43  ;;  %v5714_v50 = vpop.f32.mrb[46].mxu0 }
 0x15c   : > { %5868 = vmatmul.mubr.msk.bf16.vlgmr.msra.gmra.mrb[8].mxu1 %vm1653_vm2, %v7132_v14  ;;  %v1494_v51 = vmax.f32 %v1186_v36, 0.0  ;;  %v1189_v52 = vadd.f32 %v5714_v50, %v7025_v11  ;;  %v1180_v53 = vpop.f32.mrb[47].mxu0 }
 0x15d   : > { %5876 = vmatpush3.bf16.msra.mxu1 %v6968_v49  ;;  %5871 = vmatprep.mubr.msk.bf16.mxu1 %vm1653_vm2, %v7159_v34  ;;  %v1492_v54 = vmax.f32 %v1178_v45, 0.0  ;;  %v1181_v55 = vadd.f32 %v7025_v11, %v1180_v53 }
 0x15e   : > { %5877 = vmatprep.subr.bf16.mxu1 %v7038_v32  ;;  %v1495_v56 = vmax.f32 %v1189_v52, 0.0 }
 0x15f   : > { %v1493_v59 = vmax.f32 %v1181_v55, 0.0 }
 0x160   : > { %v7230_v60 = vpack.c.bf16 %v1495_v56, %v1494_v51 }
 0x161   : > { %5878 = vmatpush3.bf16.msra.mxu1 %v7038_v32  ;;  %v7233_v63 = vpack.c.bf16 %v1493_v59, %v1492_v54  ;;  %v5717_v5 = vpop.f32.mrb[48].mxu0 }
 0x162   : > { %5879 = vmatprep.subr.bf16.mxu1 %v7050_v48  ;;  %v1202_v0 = vadd.f32 %v5717_v5, %v7025_v11  ;;  %v1193_v2 = vpop.f32.mrb[49].mxu0 }
 0x163   : > { %v1194_v3 = vadd.f32 %v7025_v11, %v1193_v2  ;;  %v5718_v28 = vpop.f32.mrb[50].mxu0 }
 0x164   : > { %5872 = vmatmul.mubr.msk.bf16.gmra.mrb[12].mxu1 %vm1653_vm2, %v7156_v33  ;;  %v1498_v6 = vmax.f32 %v1202_v0, 0.0  ;;  %v1205_v7 = vadd.f32 %v5718_v28, %v7025_v11  ;;  %v1196_v8 = vpop.f32.mrb[51].mxu0 }
 0x165   : > { %5880 = vmatpush3.bf16.msra.mxu1 %v7050_v48  ;;  %5883 = vmatprep.mubr.msk.bf16.mxu1 %vm1653_vm2, %v7184_v62  ;;  %v1496_v9 = vmax.f32 %v1194_v3, 0.0  ;;  %v1197_v29 = vadd.f32 %v7025_v11, %v1196_v8 }
 0x166   : > { %6538 = vmatprep.subr.msk.bf16.mxu1 %vm963_vm1, %v7058_v57  ;;  %v1499_v10 = vmax.f32 %v1205_v7, 0.0 }
 0x167   : > { %v1497_v13 = vmax.f32 %v1197_v29, 0.0 }
 0x168   : > { %v7247_v16 = vpack.c.bf16 %v1499_v10, %v1498_v6 }
 0x169   : > { %5882 = vmatpush3.bf16.msra.mxu1 %v7070_v1  ;;  %v7250_v17 = vpack.c.bf16 %v1497_v13, %v1496_v9  ;;  %v5721_v20 = vpop.f32.mrb[52].mxu0 }
 0x16a   : > { %v1218_v18 = vadd.f32 %v5721_v20, %v7025_v11  ;;  %v1209_v37 = vpop.f32.mrb[53].mxu0 }
 0x16b   : > { %v1210_v21 = vadd.f32 %v7025_v11, %v1209_v37  ;;  %v5722_v22 = vpop.f32.mrb[54].mxu0 }
 0x16c   : > { %5884 = vmatmul.mubr.msk.bf16.vlgmr.msra.gmra.mrb[8].mxu1 %vm1653_vm2, %v7181_v61  ;;  %v1502_v23 = vmax.f32 %v1218_v18, 0.0  ;;  %v1221_v24 = vadd.f32 %v5722_v22, %v7025_v11  ;;  %v1212_v25 = vpop.f32.mrb[55].mxu0 }
 0x16d   : > { %5887 = vmatprep.mubr.msk.bf16.mxu1 %vm1653_vm2, %v7200_v4  ;;  %v1500_v26 = vmax.f32 %v1210_v21, 0.0  ;;  %v1213_v31 = vadd.f32 %v7025_v11, %v1212_v25 }
 0x16e   : > { %v1503_v36 = vmax.f32 %v1221_v24, 0.0 }
 0x16f   : > { %v1501_v43 = vmax.f32 %v1213_v31, 0.0 }
 0x170   : > { %v7260_v45 = vpack.c.bf16 %v1503_v36, %v1502_v23 }
 0x171   : > { %v7262_v50 = vpack.c.bf16 %v1501_v43, %v1500_v26  ;;  %v5725_v51 = vpop.f32.mrb[56].mxu0 }
 0x172   : > { %v1234_v52 = vadd.f32 %v5725_v51, %v7025_v11  ;;  %v1225_v53 = vpop.f32.mrb[57].mxu0 }
 0x173   : > { %v1226_v54 = vadd.f32 %v7025_v11, %v1225_v53  ;;  %v5726_v55 = vpop.f32.mrb[58].mxu0 }
 0x174   : > { %5888 = vmatmul.mubr.msk.bf16.gmra.mrb[12].mxu1 %vm1653_vm2, %v7197_v12  ;;  %v1506_v56 = vmax.f32 %v1234_v52, 0.0  ;;  %v1237_v59 = vadd.f32 %v5726_v55, %v7025_v11  ;;  %v1228_v5 = vpop.f32.mrb[59].mxu0 }
 0x175   : > { %v1504_v0 = vmax.f32 %v1226_v54, 0.0  ;;  %v1229_v2 = vadd.f32 %v7025_v11, %v1228_v5 }
 0x176   : > { %v1507_v3 = vmax.f32 %v1237_v59, 0.0 }
 0x177   : > { %v1505_v28 = vmax.f32 %v1229_v2, 0.0 }
 0x178   : > { %v7270_v6 = vpack.c.bf16 %v1507_v3, %v1506_v56 }
 0x179   : > { %v7272_v7 = vpack.c.bf16 %v1505_v28, %v1504_v0  ;;  %v5729_v8 = vpop.f32.mrb[60].mxu0 }
 0x17a   : > { %v1250_v9 = vadd.f32 %v5729_v8, %v7025_v11  ;;  %v1241_v29 = vpop.f32.mrb[61].mxu0 }
 0x17b   : > { %v1242_v10 = vadd.f32 %v7025_v11, %v1241_v29  ;;  %v5730_v13 = vpop.f32.mrb[62].mxu0 }
 0x17c   : > { %v1510_v20 = vmax.f32 %v1250_v9, 0.0  ;;  %v1253_v18 = vadd.f32 %v5730_v13, %v7025_v11  ;;  %v1244_v37 = vpop.f32.mrb[63].mxu0 }
 0x17d   : > { %v1508_v21 = vmax.f32 %v1242_v10, 0.0  ;;  %v1245_v22 = vadd.f32 %v7025_v11, %v1244_v37 }
 0x17e   : > { %v1511_v23 = vmax.f32 %v1253_v18, 0.0 }
 0x17f   : > { %v1509_v24 = vmax.f32 %v1245_v22, 0.0 }
 0x180   : > { %v7278_v25 = vpack.c.bf16 %v1511_v23, %v1510_v20 }
 0x181   : > { %v7280_v26 = vpack.c.bf16 %v1509_v24, %v1508_v21  ;;  %v5733_v31 = vpop.f32.mrb[64].mxu0 }
 0x182   : > { %v1266_v36 = vadd.f32 %v5733_v31, %v7025_v11  ;;  %v1257_v43 = vpop.f32.mrb[65].mxu0 }
 0x183   : > { %v1258_v51 = vadd.f32 %v7025_v11, %v1257_v43  ;;  %v5734_v52 = vpop.f32.mrb[66].mxu0  ;;  %v6654_v43 = vld [vmem:[%s8030_s5 + $0x1c] sm:$0xff]  }
 0x184   : > { %v1514_v53 = vmax.f32 %v1266_v36, 0.0  ;;  %v1269_v54 = vadd.f32 %v5734_v52, %v7025_v11  ;;  %v1260_v55 = vpop.f32.mrb[67].mxu0  ;;  %5891 = vmatprep.subr.bf16.mxu1 %v6654_v43 }
 0x185   : > { %v1512_v56 = vmax.f32 %v1258_v51, 0.0  ;;  %v1261_v59 = vadd.f32 %v7025_v11, %v1260_v55  ;;  %v6655_v51 = vld [vmem:[%s8030_s5 + $0x24] sm:$0xff]   ;;  %5892 = vmatpush3.bf16.msra.mxu1 %v6654_v43 }
 0x186   : > { %v1515_v5 = vmax.f32 %v1269_v54, 0.0  ;;  %5893 = vmatprep.subr.bf16.mxu1 %v6655_v51 }
 0x187   : > { %v1513_v0 = vmax.f32 %v1261_v59, 0.0 }
 0x188   : > { %v7286_v2 = vpack.c.bf16 %v1515_v5, %v1514_v53 }
 0x189   : > { %v7288_v3 = vpack.c.bf16 %v1513_v0, %v1512_v56  ;;  %v5737_v28 = vpop.f32.mrb[68].mxu0  ;;  %5894 = vmatpush3.bf16.msra.mxu1 %v6655_v51 }
 0x18a   : > { %v1282_v8 = vadd.f32 %v5737_v28, %v7025_v11  ;;  %v1273_v9 = vpop.f32.mrb[69].mxu0 }
 0x18b   : > { %v1274_v29 = vadd.f32 %v7025_v11, %v1273_v9  ;;  %v5738_v10 = vpop.f32.mrb[70].mxu0  ;;  %6059 = vmatprep.mubr.msk.bf16.mxu0 %vm1653_vm2, %v7288_v3 }
 0x18c   : > { %v1518_v13 = vmax.f32 %v1282_v8, 0.0  ;;  %v1285_v20 = vadd.f32 %v5738_v10, %v7025_v11  ;;  %v1276_v18 = vpop.f32.mrb[71].mxu0  ;;  %6060 = vmatmul.mubr.msk.bf16.vlgmr.msra.gmra.mrb[120].mxu0 %vm1653_vm2, %v7286_v2 }
 0x18d   : > { %v1516_v37 = vmax.f32 %v1274_v29, 0.0  ;;  %v1277_v21 = vadd.f32 %v7025_v11, %v1276_v18  ;;  %6068 = vmatpush3.bf16.msra.mxu0 %v7108_v41 }
 0x18e   : > { %v1519_v22 = vmax.f32 %v1285_v20, 0.0  ;;  %6069 = vmatprep.subr.bf16.mxu0 %v7141_v35 }
 0x18f   : > { %v1517_v23 = vmax.f32 %v1277_v21, 0.0 }
 0x190   : > { %v7300_v24 = vpack.c.bf16 %v1519_v22, %v1518_v13 }
 0x191   : > { %v7302_v31 = vpack.c.bf16 %v1517_v23, %v1516_v37  ;;  %v5741_v36 = vpop.f32.mrb[72].mxu0  ;;  %6070 = vmatpush3.bf16.msra.mxu0 %v7141_v35 }
 0x192   : > { %v1298_v52 = vadd.f32 %v5741_v36, %v7025_v11  ;;  %v1289_v53 = vpop.f32.mrb[73].mxu0  ;;  %6071 = vmatprep.subr.bf16.mxu0 %v7154_v27 }
 0x193   : > { %v1290_v54 = vadd.f32 %v7025_v11, %v1289_v53  ;;  %v5742_v55 = vpop.f32.mrb[74].mxu0  ;;  %6063 = vmatprep.mubr.msk.bf16.mxu0 %vm1653_vm2, %v7302_v31 }
 0x194   : > { %v1522_v56 = vmax.f32 %v1298_v52, 0.0  ;;  %v1301_v59 = vadd.f32 %v5742_v55, %v7025_v11  ;;  %v1292_v5 = vpop.f32.mrb[75].mxu0  ;;  %6064 = vmatmul.mubr.msk.bf16.gmra.mrb[124].mxu0 %vm1653_vm2, %v7300_v24 }
 0x195   : > { %v1520_v0 = vmax.f32 %v1290_v54, 0.0  ;;  %v1293_v28 = vadd.f32 %v7025_v11, %v1292_v5  ;;  %6072 = vmatpush3.bf16.msra.mxu0 %v7154_v27  ;;  %6075 = vmatprep.mubr.msk.bf16.mxu0 %vm1653_vm2, %v7272_v7 }
 0x196   : > { %v1523_v8 = vmax.f32 %v1301_v59, 0.0  ;;  %6550 = vmatprep.subr.msk.bf16.mxu0 %vm963_vm1, %v7165_v39 }
 0x197   : > { %v1521_v9 = vmax.f32 %v1293_v28, 0.0 }
 0x198   : > { %v7325_v29 = vpack.c.bf16 %v1523_v8, %v1522_v56 }
 0x199   : > { %v7327_v10 = vpack.c.bf16 %v1521_v9, %v1520_v0  ;;  %v5745_v13 = vpop.f32.mrb[76].mxu0  ;;  %6074 = vmatpush3.bf16.msra.mxu0 %v7179_v58 }
 0x19a   : > { %8051 = vst [vmem:[#allocation2_spill] sm:$0xff] %v7325_v29  ;;  %v1314_v20 = vadd.f32 %v5745_v13, %v7025_v11  ;;  %v1305_v18 = vpop.f32.mrb[77].mxu0  ;;  %6083 = vmatprep.subr.bf16.mxu0 %v6927_v40 }
 0x19b   : > { %8052 = vst [vmem:[#allocation3_spill] sm:$0xff] %v7327_v10  ;;  %v1306_v37 = vadd.f32 %v7025_v11, %v1305_v18  ;;  %v5746_v21 = vpop.f32.mrb[78].mxu0 }
 0x19c   : > { %v1526_v22 = vmax.f32 %v1314_v20, 0.0  ;;  %v1317_v23 = vadd.f32 %v5746_v21, %v7025_v11  ;;  %v1308_v36 = vpop.f32.mrb[79].mxu0  ;;  %6076 = vmatmul.mubr.msk.bf16.vlgmr.msra.gmra.mrb[120].mxu0 %vm1653_vm2, %v7270_v6 }
 0x19d   : > { %v1524_v43 = vmax.f32 %v1306_v37, 0.0  ;;  %v1309_v51 = vadd.f32 %v7025_v11, %v1308_v36  ;;  %6084 = vmatpush3.bf16.msra.mxu0 %v6927_v40  ;;  %6079 = vmatprep.mubr.msk.bf16.mxu0 %vm1653_vm2, %v7280_v26 }
 0x19e   : > { %v1527_v52 = vmax.f32 %v1317_v23, 0.0  ;;  %6085 = vmatprep.subr.bf16.mxu0 %v6936_v42 }
 0x19f   : > { %v1525_v53 = vmax.f32 %v1309_v51, 0.0 }
 0x1a0   : > { %v7341_v54 = vpack.c.bf16 %v1527_v52, %v1526_v22 }
 0x1a1   : > { %v7343_v55 = vpack.c.bf16 %v1525_v53, %v1524_v43  ;;  %v5749_v56 = vpop.f32.mrb[80].mxu0  ;;  %6086 = vmatpush3.bf16.msra.mxu0 %v6936_v42 }
 0x1a2   : > { %8053 = vst [vmem:[#allocation4_spill] sm:$0xff] %v7341_v54  ;;  %v1330_v59 = vadd.f32 %v5749_v56, %v7025_v11  ;;  %v1321_v5 = vpop.f32.mrb[81].mxu0  ;;  %6087 = vmatprep.subr.bf16.mxu0 %v6945_v44 }
 0x1a3   : > { %8054 = vst [vmem:[#allocation5_spill] sm:$0xff] %v7343_v55  ;;  %v1322_v40 = vadd.f32 %v7025_v11, %v1321_v5  ;;  %v5750_v0 = vpop.f32.mrb[82].mxu0 }
 0x1a4   : > { %v1530_v28 = vmax.f32 %v1330_v59, 0.0  ;;  %v1333_v8 = vadd.f32 %v5750_v0, %v7025_v11  ;;  %v1324_v9 = vpop.f32.mrb[83].mxu0  ;;  %6080 = vmatmul.mubr.msk.bf16.gmra.mrb[124].mxu0 %vm1653_vm2, %v7278_v25 }
 0x1a5   : > { %v1528_v13 = vmax.f32 %v1322_v40, 0.0  ;;  %v1325_v20 = vadd.f32 %v7025_v11, %v1324_v9  ;;  %6088 = vmatpush3.bf16.msra.mxu0 %v6945_v44  ;;  %6091 = vmatprep.mubr.msk.bf16.mxu0 %vm1653_vm2, %v7327_v10 }
 0x1a6   : > { %v1531_v42 = vmax.f32 %v1333_v8, 0.0  ;;  %6551 = vmatprep.subr.msk.bf16.mxu0 %vm963_vm1, %v6954_v46 }
 0x1a7   : > { %v1529_v18 = vmax.f32 %v1325_v20, 0.0 }
 0x1a8   : > { %v7358_v37 = vpack.c.bf16 %v1531_v42, %v1530_v28 }
 0x1a9   : > { %v7360_v21 = vpack.c.bf16 %v1529_v18, %v1528_v13  ;;  %v5753_v22 = vpop.f32.mrb[84].mxu0  ;;  %6090 = vmatpush3.bf16.msra.mxu0 %v6961_v47 }
 0x1aa   : > { %8055 = vst [vmem:[#allocation6_spill] sm:$0xff] %v7358_v37  ;;  %v1346_v23 = vadd.f32 %v5753_v22, %v7025_v11  ;;  %v1337_v36 = vpop.f32.mrb[85].mxu0  ;;  %6099 = vmatprep.subr.bf16.mxu0 %v6968_v49 }
 0x1ab   : > { %8056 = vst [vmem:[#allocation7_spill] sm:$0xff] %v7360_v21  ;;  %v1338_v44 = vadd.f32 %v7025_v11, %v1337_v36  ;;  %v5754_v43 = vpop.f32.mrb[86].mxu0 }
 0x1ac   : > { %v1534_v51 = vmax.f32 %v1346_v23, 0.0  ;;  %v1349_v52 = vadd.f32 %v5754_v43, %v7025_v11  ;;  %v1340_v46 = vpop.f32.mrb[87].mxu0  ;;  %6092 = vmatmul.mubr.msk.bf16.vlgmr.msra.gmra.mrb[120].mxu0 %vm1653_vm2, %v7325_v29 }
 0x1ad   : > { %v1532_v53 = vmax.f32 %v1338_v44, 0.0  ;;  %v1341_v56 = vadd.f32 %v7025_v11, %v1340_v46  ;;  %6100 = vmatpush3.bf16.msra.mxu0 %v6968_v49  ;;  %6095 = vmatprep.mubr.msk.bf16.mxu0 %vm1653_vm2, %v7343_v55 }
 0x1ae   : > { %v1535_v59 = vmax.f32 %v1349_v52, 0.0  ;;  %6101 = vmatprep.subr.bf16.mxu0 %v7038_v32 }
 0x1af   : > { %v1533_v5 = vmax.f32 %v1341_v56, 0.0 }
 0x1b0   : > { %v7374_v40 = vpack.c.bf16 %v1535_v59, %v1534_v51 }
 0x1b1   : > { %v7376_v0 = vpack.c.bf16 %v1533_v5, %v1532_v53  ;;  %v5757_v28 = vpop.f32.mrb[88].mxu0  ;;  %6102 = vmatpush3.bf16.msra.mxu0 %v7038_v32 }
 0x1b2   : > { %8057 = vst [vmem:[#allocation8_spill] sm:$0xff] %v7374_v40  ;;  %v1362_v8 = vadd.f32 %v5757_v28, %v7025_v11  ;;  %v1353_v9 = vpop.f32.mrb[89].mxu0  ;;  %6103 = vmatprep.subr.bf16.mxu0 %v7050_v48 }
 0x1b3   : > { %8058 = vst [vmem:[#allocation9_spill] sm:$0xff] %v7376_v0  ;;  %v1354_v49 = vadd.f32 %v7025_v11, %v1353_v9  ;;  %v5758_v13 = vpop.f32.mrb[90].mxu0 }
 0x1b4   : > { %v1538_v20 = vmax.f32 %v1362_v8, 0.0  ;;  %v1365_v42 = vadd.f32 %v5758_v13, %v7025_v11  ;;  %v1356_v18 = vpop.f32.mrb[91].mxu0  ;;  %6096 = vmatmul.mubr.msk.bf16.gmra.mrb[124].mxu0 %vm1653_vm2, %v7341_v54 }
 0x1b5   : > { %v1536_v22 = vmax.f32 %v1354_v49, 0.0  ;;  %v1357_v23 = vadd.f32 %v7025_v11, %v1356_v18  ;;  %6104 = vmatpush3.bf16.msra.mxu0 %v7050_v48  ;;  %6107 = vmatprep.mubr.msk.bf16.mxu0 %vm1653_vm2, %v7360_v21  ;;  %v7400_v48 = vld [vmem:[%s8028_s3 + $0x1c] sm:$0xff]   ;;  %v7414_v49 = vld [vmem:[%s8028_s3 + $0x24] sm:$0xff]  }
 0x1b6   : > { %v1539_v32 = vmax.f32 %v1365_v42, 0.0  ;;  %6552 = vmatprep.subr.msk.bf16.mxu0 %vm963_vm1, %v7058_v57  ;;  %v6656_v42 = vld [vmem:[%s8030_s5 + $0x2c] sm:$0xff]  }
 0x1b7   : > { %v1537_v36 = vmax.f32 %v1357_v23, 0.0  ;;  %5895 = vmatprep.subr.bf16.mxu1 %v6656_v42 }
 0x1b8   : > { %v7391_v44 = vpack.c.bf16 %v1539_v32, %v1538_v20  ;;  %5896 = vmatpush3.bf16.msra.mxu1 %v6656_v42 }
 0x1b9   : > { %v7393_v43 = vpack.c.bf16 %v1537_v36, %v1536_v22  ;;  %v5761_v51 = vpop.f32.mrb[92].mxu0  ;;  %6106 = vmatpush3.bf16.msra.mxu0 %v7070_v1  ;;  %v7429_v36 = vld [vmem:[%s8028_s3 + $0x2c] sm:$0xff]  }
 0x1ba   : > { %8059 = vst [vmem:[#allocation10_spill] sm:$0xff] %v7391_v44  ;;  %v1378_v52 = vadd.f32 %v5761_v51, %v7025_v11  ;;  %v1369_v46 = vpop.f32.mrb[93].mxu0  ;;  %6195 = vmatprep.subr.bf16.mxu0 %v7400_v48 }
 0x1bb   : > { %8060 = vst [vmem:[#allocation11_spill] sm:$0xff] %v7393_v43  ;;  %v1370_v57 = vadd.f32 %v7025_v11, %v1369_v46  ;;  %v5762_v53 = vpop.f32.mrb[94].mxu0 }
 0x1bc   : > { %v1542_v56 = vmax.f32 %v1378_v52, 0.0  ;;  %v1381_v59 = vadd.f32 %v5762_v53, %v7025_v11  ;;  %v1372_v5 = vpop.f32.mrb[95].mxu0  ;;  %6108 = vmatmul.mubr.msk.bf16.vlgmr.msra.gmra.mrb[120].mxu0 %vm1653_vm2, %v7358_v37 }
 0x1bd   : > { %v1540_v28 = vmax.f32 %v1370_v57, 0.0  ;;  %v1373_v8 = vadd.f32 %v7025_v11, %v1372_v5  ;;  %6111 = vmatprep.mubr.msk.bf16.mxu0 %vm1653_vm2, %v7376_v0  ;;  %6196 = vmatpush3.bf16.msra.mxu0 %v7400_v48 }
 0x1be   : > { %v1543_v9 = vmax.f32 %v1381_v59, 0.0  ;;  %6197 = vmatprep.subr.bf16.mxu0 %v7414_v49 }
 0x1bf   : > { %v1541_v13 = vmax.f32 %v1373_v8, 0.0 }
 0x1c0   : > { %v7417_v20 = vpack.c.bf16 %v1543_v9, %v1542_v56  ;;  %v6657_v56 = vld [vmem:[%s8030_s5 + $0x34] ss:$0 sps:$4 sm:$0xff]  }
 0x1c1   : > { %v7422_v18 = vpack.c.bf16 %v1541_v13, %v1540_v28  ;;  %v5765_v22 = vpop.f32.mrb[96].mxu0  ;;  %6198 = vmatpush3.bf16.msra.mxu0 %v7414_v49  ;;  %6539 = vmatprep.subr.msk.bf16.mxu1 %vm963_vm1, %v6657_v56  ;;  %v2379_v8 = vsel %vm963_vm1, %v6657_v56, 0  ;;  %v7446_v9 = vld [vmem:[%s8028_s3 + $0x34] ss:$0 sps:$4 sm:$0xff]  }
 0x1c2   : > { %8061 = vst [vmem:[#allocation12_spill] sm:$0xff] %v7417_v20  ;;  %v1394_v23 = vadd.f32 %v5765_v22, %v7025_v11  ;;  %v1385_v32 = vpop.f32.mrb[97].mxu0  ;;  %6199 = vmatprep.subr.bf16.mxu0 %v7429_v36  ;;  %5898 = vmatpush3.bf16.msra.mxu1 %v2379_v8 }
 0x1c3   : > { %8062 = vst [vmem:[#allocation13_spill] sm:$0xff] %v7422_v18  ;;  %v1386_v51 = vadd.f32 %v7025_v11, %v1385_v32  ;;  %v5766_v52 = vpop.f32.mrb[98].mxu0  ;;  %5907 = vmatprep.subr.bf16.mxu1 %v7400_v48 }
 0x1c4   : > { %v1546_v46 = vmax.f32 %v1394_v23, 0.0  ;;  %v1397_v57 = vadd.f32 %v5766_v52, %v7025_v11  ;;  %v1388_v53 = vpop.f32.mrb[99].mxu0  ;;  %6112 = vmatmul.mubr.msk.bf16.gmra.mrb[124].mxu0 %vm1653_vm2, %v7374_v40 }
 0x1c5   : > { %v1544_v59 = vmax.f32 %v1386_v51, 0.0  ;;  %v1389_v5 = vadd.f32 %v7025_v11, %v1388_v53  ;;  %6200 = vmatpush3.bf16.msra.mxu0 %v7429_v36 }
 0x1c6   : > { %v1547_v28 = vmax.f32 %v1397_v57, 0.0  ;;  %6558 = vmatprep.subr.msk.bf16.mxu0 %vm963_vm1, %v7446_v9 }
 0x1c7   : > { %v1545_v13 = vmax.f32 %v1389_v5, 0.0  ;;  %v6726_v5 = vld [vmem:[%s8027_s2] ss:$0 sm:$0xff] }
 0x1c8   : > { %v7450_v42 = vpack.c.bf16 %v1547_v28, %v1546_v46 }
 0x1c9   : > { %v7453_v22 = vpack.c.bf16 %v1545_v13, %v1544_v59  ;;  %v5769_v23 = vpop.f32.mrb[100].mxu0  ;;  %6202 = vmatpush3.bf16.msra.mxu0 %v6920_v38 }
 0x1ca   : > { %8063 = vst [vmem:[#allocation14_spill] sm:$0xff] %v7450_v42  ;;  %v1410_v32 = vadd.f32 %v5769_v23, %v7025_v11  ;;  %v1401_v51 = vpop.f32.mrb[101].mxu0  ;;  %6211 = vmatprep.subr.bf16.mxu0 %v7108_v41 }
 0x1cb   : > { %8064 = vst [vmem:[#allocation15_spill] sm:$0xff] %v7453_v22  ;;  %v1402_v52 = vadd.f32 %v7025_v11, %v1401_v51  ;;  %v5770_v57 = vpop.f32.mrb[102].mxu0  ;;  %6203 = vmatprep.mubr.msk.bf16.mxu0 %vm1653_vm2, %v7453_v22 }
 0x1cc   : > { %v1550_v46 = vmax.f32 %v1410_v32, 0.0  ;;  %v1413_v53 = vadd.f32 %v5770_v57, %v7025_v11  ;;  %v1404_v56 = vpop.f32.mrb[103].mxu0  ;;  %6204 = vmatmul.mubr.msk.bf16.vlgmr.msra.gmra.mrb[128].mxu0 %vm1653_vm2, %v7450_v42 }
 0x1cd   : > { %v1548_v59 = vmax.f32 %v1402_v52, 0.0  ;;  %v1405_v28 = vadd.f32 %v6726_v5, %v1404_v56  ;;  %6212 = vmatpush3.bf16.msra.mxu0 %v7108_v41 }
 0x1ce   : > { %v1551_v8 = vmax.f32 %v1413_v53, 0.0  ;;  %6213 = vmatprep.subr.bf16.mxu0 %v7141_v35 }
 0x1cf   : > { %v1549_v13 = vmax.f32 %v1405_v28, 0.0 }
 0x1d0   : > { %v7469_v23 = vpack.c.bf16 %v1551_v8, %v1550_v46 }
 0x1d1   : > { %v7471_v32 = vpack.c.bf16 %v1549_v13, %v1548_v59  ;;  %v5773_v11 = vpop.f32.mrb[104].mxu0  ;;  %6214 = vmatpush3.bf16.msra.mxu0 %v7141_v35 }
 0x1d2   : > { %8065 = vst [vmem:[#allocation16_spill] sm:$0xff] %v7469_v23  ;;  %v1426_v51 = vadd.f32 %v6726_v5, %v5773_v11  ;;  %v1417_v52 = vpop.f32.mrb[105].mxu0  ;;  %6215 = vmatprep.subr.bf16.mxu0 %v7154_v27 }
 0x1d3   : > { %8066 = vst [vmem:[#allocation17_spill] sm:$0xff] %v7471_v32  ;;  %v1418_v57 = vadd.f32 %v6726_v5, %v1417_v52  ;;  %v5774_v42 = vpop.f32.mrb[106].mxu0  ;;  %6207 = vmatprep.mubr.msk.bf16.mxu0 %vm1653_vm2, %v7471_v32  ;;  %v7488_v52 = vld [vmem:[%s8028_s3 + $0x38] sm:$0xff]  }
 0x1d4   : > { %v1554_v41 = vmax.f32 %v1426_v51, 0.0  ;;  %v1429_v53 = vadd.f32 %v6726_v5, %v5774_v42  ;;  %v1420_v56 = vpop.f32.mrb[107].mxu0  ;;  %6208 = vmatmul.mubr.msk.bf16.gmra.mrb[132].mxu0 %vm1653_vm2, %v7469_v23 }
 0x1d5   : > { %v1552_v46 = vmax.f32 %v1418_v57, 0.0  ;;  %v1421_v59 = vadd.f32 %v6726_v5, %v1420_v56  ;;  %6216 = vmatpush3.bf16.msra.mxu0 %v7154_v27  ;;  %6219 = vmatprep.mubr.msk.bf16.mxu0 %vm1653_vm2, %v7393_v43 }
 0x1d6   : > { %v1555_v35 = vmax.f32 %v1429_v53, 0.0  ;;  %6559 = vmatprep.subr.msk.bf16.mxu0 %vm963_vm1, %v7165_v39 }
 0x1d7   : > { %v1553_v28 = vmax.f32 %v1421_v59, 0.0 }
 0x1d8   : > { %v1613_v8 = vpack.c.bf16 %v1555_v35, %v1554_v41  ;;  %v7499_v35 = vld [vmem:[%s8028_s3 + $0x40] sm:$0xff]  }
 0x1d9   : > { %v1612_v13 = vpack.c.bf16 %v1553_v28, %v1552_v46  ;;  %v5777_v11 = vpop.f32.mrb[108].mxu0  ;;  %6218 = vmatpush3.bf16.msra.mxu0 %v7179_v58 }
 0x1da   : > { %v1442_v42 = vadd.f32 %v6726_v5, %v5777_v11  ;;  %v1433_v51 = vpop.f32.mrb[109].mxu0  ;;  %6227 = vmatprep.subr.bf16.mxu0 %v7488_v52 }
 0x1db   : > { %v1434_v57 = vadd.f32 %v6726_v5, %v1433_v51  ;;  %v5778_v53 = vpop.f32.mrb[110].mxu0 }
 0x1dc   : > { %v1558_v56 = vmax.f32 %v1442_v42, 0.0  ;;  %v1445_v23 = vadd.f32 %v6726_v5, %v5778_v53  ;;  %v1436_v32 = vpop.f32.mrb[111].mxu0  ;;  %6220 = vmatmul.mubr.msk.bf16.vlgmr.msra.gmra.mrb[128].mxu0 %vm1653_vm2, %v7391_v44 }
 0x1dd   : > { %v1556_v41 = vmax.f32 %v1434_v57, 0.0  ;;  %v1437_v46 = vadd.f32 %v6726_v5, %v1436_v32  ;;  %6228 = vmatpush3.bf16.msra.mxu0 %v7488_v52  ;;  %6223 = vmatprep.mubr.msk.bf16.mxu0 %vm1653_vm2, %v7422_v18  ;;  %v7506_v5 = vld [vmem:[%s8028_s3 + $0x48] sm:$0xff]  }
 0x1de   : > { %v1559_v59 = vmax.f32 %v1445_v23, 0.0  ;;  %6229 = vmatprep.subr.bf16.mxu0 %v7499_v35  ;;  %v7516_v23 = vld [vmem:[%s8028_s3 + $0x50] ss:$0 sps:$4 sm:$0xff]  }
 0x1df   : > { %v1557_v28 = vmax.f32 %v1437_v46, 0.0 }
 0x1e0   : > { %v1615_v11 = vpack.c.bf16 %v1559_v59, %v1558_v56 }
 0x1e1   : > { %v1614_v42 = vpack.c.bf16 %v1557_v28, %v1556_v41  ;;  %6230 = vmatpush3.bf16.msra.mxu0 %v7499_v35  ;;  %v7527_v28 = vld [vmem:[%s8029_s4] ss:$0 sm:$0xff] }
 0x1e2   : > { %6231 = vmatprep.subr.bf16.mxu0 %v7506_v5 }
 0x1e4   : > { %6224 = vmatmul.mubr.msk.bf16.gmra.mrb[132].mxu0 %vm1653_vm2, %v7417_v20 }
 0x1e5   : > { %6232 = vmatpush3.bf16.msra.mxu0 %v7506_v5  ;;  %6235 = vmatprep.mubr.msk.bf16.mxu0 %vm1653_vm2, %v1612_v13 }
 0x1e6   : > { %6560 = vmatprep.subr.msk.bf16.mxu0 %vm963_vm1, %v7516_v23 }
 0x1e9   : > { %6234 = vmatpush3.bf16.msra.mxu0 %v6961_v47 }
 0x1ec   : > { %6236 = vmatmul.mubr.msk.bf16.vlgmr.msra.gmra.mrb[128].mxu0 %vm1653_vm2, %v1613_v8 }
 0x1ed   : > { %6239 = vmatprep.mubr.msk.bf16.mxu0 %vm1653_vm2, %v1614_v42 }
 0x1ef   : > { %v5789_v32 = vpop.f32.mrb[112].mxu0 }
 0x1f0   : > { %v1703_v51 = vpop.f32.mrb[113].mxu0 }
 0x1f1   : > { %v5790_v57 = vpop.f32.mrb[114].mxu0 }
 0x1f2   : > { %v1706_v53 = vpop.f32.mrb[115].mxu0 }
 0x1f4   : > { %6240 = vmatmul.mubr.msk.bf16.gmra.mrb[132].mxu0 %vm1653_vm2, %v1615_v11 }
 0x1f7   : > { %v5793_v13 = vpop.f32.mrb[116].mxu0 }
 0x1f8   : > { %v1719_v56 = vpop.f32.mrb[117].mxu0 }
 0x1f9   : > { %v5794_v41 = vpop.f32.mrb[118].mxu0 }
 0x1fa   : > { %v1722_v46 = vpop.f32.mrb[119].mxu0 }
 0x1ff   : > { %v5821_v59 = vpop.f32.mrb[0].mxu1 }
 0x200   : > { %v6331_v22 = vadd.f32 %v5821_v59, %v5789_v32  ;;  %v1913_v8 = vpop.f32.mrb[1].mxu1 }
 0x201   : > { %v6332_v20 = vadd.f32 %v1913_v8, %v1703_v51  ;;  %v5822_v42 = vpop.f32.mrb[2].mxu1 }
 0x202   : > { %v1961_v18 = vadd.f32 %v6331_v22, %v7527_v28  ;;  %v6333_v44 = vadd.f32 %v5822_v42, %v5790_v57  ;;  %v1916_v43 = vpop.f32.mrb[3].mxu1 }
 0x203   : > { %v1959_v11 = vadd.f32 %v6332_v20, %v7527_v28  ;;  %v6334_v54 = vadd.f32 %v1916_v43, %v1706_v53 }
 0x204   : > { %v1962_v55 = vadd.f32 %v6333_v44, %v7527_v28  ;;  %v1969_v10 = vmax.f32 %v1961_v18, 0.0 }
 0x205   : > { %v1960_v29 = vadd.f32 %v6334_v54, %v7527_v28  ;;  %v1967_v0 = vmax.f32 %v1959_v11, 0.0 }
 0x206   : > { %v1970_v40 = vmax.f32 %v1962_v55, 0.0 }
 0x207   : > { %v1968_v37 = vmax.f32 %v1960_v29, 0.0  ;;  %v5825_v21 = vpop.f32.mrb[4].mxu1 }
 0x208   : > { %v7533_v32 = vpack.c.bf16 %v1970_v40, %v1969_v10  ;;  %v6335_v51 = vadd.f32 %v5825_v21, %v5793_v13  ;;  %v1929_v59 = vpop.f32.mrb[5].mxu1 }
 0x209   : > { %v7535_v8 = vpack.c.bf16 %v1968_v37, %v1967_v0  ;;  %v6336_v22 = vadd.f32 %v1929_v59, %v1719_v56  ;;  %v5826_v57 = vpop.f32.mrb[6].mxu1 }
 0x20a   : > { %v1965_v20 = vadd.f32 %v6335_v51, %v7527_v28  ;;  %v6337_v43 = vadd.f32 %v5826_v57, %v5794_v41  ;;  %v1932_v53 = vpop.f32.mrb[7].mxu1 }
 0x20b   : > { %v1963_v44 = vadd.f32 %v6336_v22, %v7527_v28  ;;  %v6338_v54 = vadd.f32 %v1932_v53, %v1722_v46 }
 0x20c   : > { %v1966_v55 = vadd.f32 %v6337_v43, %v7527_v28  ;;  %v1973_v18 = vmax.f32 %v1965_v20, 0.0 }
 0x20d   : > { %v1964_v29 = vadd.f32 %v6338_v54, %v7527_v28  ;;  %v1971_v40 = vmax.f32 %v1963_v44, 0.0 }
 0x20e   : > { %v1974_v10 = vmax.f32 %v1966_v55, 0.0 }
 0x20f   : > { %v1972_v21 = vmax.f32 %v1964_v29, 0.0 }
 0x210   : > { %v7541_v13 = vpack.c.bf16 %v1974_v10, %v1973_v18 }
 0x211   : > { %v7543_v37 = vpack.c.bf16 %v1972_v21, %v1971_v40 }
 0x23f   : > { %v5885_v0 = vpop.f32.mrb[8].mxu1 }
 0x240   : > { %v2319_v56 = vadd.f32 %v5885_v0, %v7527_v28  ;;  %v2278_v41 = vpop.f32.mrb[9].mxu1 }
 0x241   : > { %v2317_v42 = vadd.f32 %v7527_v28, %v2278_v41  ;;  %v5886_v11 = vpop.f32.mrb[10].mxu1 }
 0x242   : > { %v2320_v46 = vadd.f32 %v5886_v11, %v7527_v28  ;;  %v2281_v51 = vpop.f32.mrb[11].mxu1  ;;  %v2327_v22 = vmax.f32 %v2319_v56, 0.0 }
 0x243   : > { %v2318_v59 = vadd.f32 %v7527_v28, %v2281_v51  ;;  %v2325_v20 = vmax.f32 %v2317_v42, 0.0 }
 0x244   : > { %v2328_v57 = vmax.f32 %v2320_v46, 0.0 }
 0x245   : > { %v2326_v43 = vmax.f32 %v2318_v59, 0.0  ;;  %v7570_v59 = vld [vmem:[%s8028_s3] sm:$0xff]  }
 0x246   : > { %v2334_v53 = vpack.c.bf16 %v2328_v57, %v2327_v22 }
 0x247   : > { %v2333_v44 = vpack.c.bf16 %v2326_v43, %v2325_v20  ;;  %v5889_v54 = vpop.f32.mrb[12].mxu1 }
 0x248   : > { %v2323_v55 = vadd.f32 %v5889_v54, %v7527_v28  ;;  %v2294_v29 = vpop.f32.mrb[13].mxu1 }
 0x249   : > { %v2321_v18 = vadd.f32 %v7527_v28, %v2294_v29  ;;  %v5890_v10 = vpop.f32.mrb[14].mxu1  ;;  %5899 = vmatprep.mubr.msk.bf16.mxu1 %vm1653_vm2, %v2333_v44 }
 0x24a   : > { %v2324_v40 = vadd.f32 %v5890_v10, %v7527_v28  ;;  %v2297_v21 = vpop.f32.mrb[15].mxu1  ;;  %5900 = vmatmul.mubr.msk.bf16.vlgmr.msra.gmra.mrb[16].mxu1 %vm1653_vm2, %v2334_v53  ;;  %v2331_v56 = vmax.f32 %v2323_v55, 0.0 }
 0x24b   : > { %v2322_v0 = vadd.f32 %v7527_v28, %v2297_v21  ;;  %5908 = vmatpush3.bf16.msra.mxu1 %v7400_v48  ;;  %v2329_v42 = vmax.f32 %v2321_v18, 0.0  ;;  %v6661_v21 = vld [vmem:[%s8030_s5 + $0x6c] ss:$0 sps:$4 sm:$0xff]  }
 0x24c   : > { %v2332_v41 = vmax.f32 %v2324_v40, 0.0  ;;  %5909 = vmatprep.subr.bf16.mxu1 %v7414_v49  ;;  %v6660_v40 = vld [vmem:[%s8030_s5 + $0x64] sm:$0xff]  }
 0x24d   : > { %v2330_v11 = vmax.f32 %v2322_v0, 0.0  ;;  %v3136_v0 = vsel %vm963_vm1, %v6661_v21, 0 }
 0x24e   : > { %v2336_v46 = vpack.c.bf16 %v2332_v41, %v2331_v56 }
 0x24f   : > { %v2335_v51 = vpack.c.bf16 %v2330_v11, %v2329_v42  ;;  %5910 = vmatpush3.bf16.msra.mxu1 %v7414_v49 }
 0x250   : > { %5911 = vmatprep.subr.bf16.mxu1 %v7429_v36 }
 0x251   : > { %5903 = vmatprep.mubr.msk.bf16.mxu1 %vm1653_vm2, %v2335_v51 }
 0x252   : > { %5904 = vmatmul.mubr.msk.bf16.gmra.mrb[20].mxu1 %vm1653_vm2, %v2336_v46 }
 0x253   : > { %5912 = vmatpush3.bf16.msra.mxu1 %v7429_v36  ;;  %5915 = vmatprep.mubr.msk.bf16.mxu1 %vm1653_vm2, %v7184_v62  ;;  %v7581_v62 = vld [vmem:[%s8028_s3 + $0x8] sm:$0xff]  }
 0x254   : > { %6540 = vmatprep.subr.msk.bf16.mxu1 %vm963_vm1, %v7446_v9 }
 0x257   : > { %5914 = vmatpush3.bf16.msra.mxu1 %v6920_v38 }
 0x258   : > { %5923 = vmatprep.subr.bf16.mxu1 %v7570_v59 }
 0x25a   : > { %5916 = vmatmul.mubr.msk.bf16.vlgmr.msra.gmra.mrb[24].mxu1 %vm1653_vm2, %v7181_v61 }
 0x25b   : > { %5924 = vmatpush3.bf16.msra.mxu1 %v7570_v59  ;;  %5919 = vmatprep.mubr.msk.bf16.mxu1 %vm1653_vm2, %v7200_v4  ;;  %v6659_v4 = vld [vmem:[%s8030_s5 + $0x5c] sm:$0xff]  }
 0x25c   : > { %5925 = vmatprep.subr.bf16.mxu1 %v7581_v62 }
 0x25f   : > { %5926 = vmatpush3.bf16.msra.mxu1 %v7581_v62 }
 0x260   : > { %5927 = vmatprep.subr.bf16.mxu1 %v7154_v27 }
 0x262   : > { %5920 = vmatmul.mubr.msk.bf16.gmra.mrb[28].mxu1 %vm1653_vm2, %v7197_v12  ;;  %v6658_v12 = vld [vmem:[%s8030_s5 + $0x54] sm:$0xff]  }
 0x263   : > { %5928 = vmatpush3.bf16.msra.mxu1 %v7154_v27  ;;  %5931 = vmatprep.mubr.msk.bf16.mxu1 %vm1653_vm2, %v7135_v15  ;;  %v7625_v15 = vld [vmem:[%s8028_s3 + $0x5c] sm:$0xff]   ;;  %v7632_v27 = vld [vmem:[%s8028_s3 + $0x64] sm:$0xff]  }
 0x264   : > { %6541 = vmatprep.subr.msk.bf16.mxu1 %vm963_vm1, %v7165_v39  ;;  %v7687_v39 = vld [vmem:[%s8028_s3 + $0x18] ss:$0 sps:$4 sm:$0xff]  }
 0x267   : > { %5930 = vmatpush3.bf16.msra.mxu1 %v7179_v58 }
 0x268   : > { %5939 = vmatprep.subr.bf16.mxu1 %v7488_v52 }
 0x26a   : > { %5932 = vmatmul.mubr.msk.bf16.vlgmr.msra.gmra.mrb[24].mxu1 %vm1653_vm2, %v7132_v14  ;;  %v7614_v14 = vld [vmem:[%s8028_s3 + $0x54] sm:$0xff]  }
 0x26b   : > { %5940 = vmatpush3.bf16.msra.mxu1 %v7488_v52  ;;  %5935 = vmatprep.mubr.msk.bf16.mxu1 %vm1653_vm2, %v7159_v34  ;;  %v7676_v34 = vld [vmem:[%s8028_s3 + $0x10] sm:$0xff]  }
 0x26c   : > { %5941 = vmatprep.subr.bf16.mxu1 %v7499_v35 }
 0x26f   : > { %5942 = vmatpush3.bf16.msra.mxu1 %v7499_v35 }
 0x270   : > { %5943 = vmatprep.subr.bf16.mxu1 %v7506_v5 }
 0x272   : > { %5936 = vmatmul.mubr.msk.bf16.gmra.mrb[28].mxu1 %vm1653_vm2, %v7156_v33  ;;  %v7643_v33 = vld [vmem:[%s8028_s3 + $0x6c] ss:$0 sps:$4 sm:$0xff]  }
 0x273   : > { %5944 = vmatpush3.bf16.msra.mxu1 %v7506_v5  ;;  %5947 = vmatprep.mubr.msk.bf16.mxu1 %vm1653_vm2, %v7217_v19 }
 0x274   : > { %6542 = vmatprep.subr.msk.bf16.mxu1 %vm963_vm1, %v7516_v23 }
 0x277   : > { %5946 = vmatpush3.bf16.msra.mxu1 %v6961_v47 }
 0x278   : > { %5955 = vmatprep.subr.bf16.mxu1 %v7614_v14 }
 0x27a   : > { %5948 = vmatmul.mubr.msk.bf16.vlgmr.msra.gmra.mrb[24].mxu1 %vm1653_vm2, %v7214_v30 }
 0x27b   : > { %5956 = vmatpush3.bf16.msra.mxu1 %v7614_v14  ;;  %5951 = vmatprep.mubr.msk.bf16.mxu1 %vm1653_vm2, %v7233_v63 }
 0x27c   : > { %5957 = vmatprep.subr.bf16.mxu1 %v7625_v15 }
 0x27f   : > { %5958 = vmatpush3.bf16.msra.mxu1 %v7625_v15 }
 0x280   : > { %5959 = vmatprep.subr.bf16.mxu1 %v7632_v27 }
 0x282   : > { %5952 = vmatmul.mubr.msk.bf16.gmra.mrb[28].mxu1 %vm1653_vm2, %v7230_v60 }
 0x283   : > { %5960 = vmatpush3.bf16.msra.mxu1 %v7632_v27  ;;  %5963 = vmatprep.mubr.msk.bf16.mxu1 %vm1653_vm2, %v7250_v17 }
 0x284   : > { %6543 = vmatprep.subr.msk.bf16.mxu1 %vm963_vm1, %v7643_v33 }
 0x287   : > { %5962 = vmatpush3.bf16.msra.mxu1 %v7070_v1 }
 0x288   : > { %5971 = vmatprep.subr.bf16.mxu1 %v7400_v48 }
 0x28a   : > { %5964 = vmatmul.mubr.msk.bf16.vlgmr.msra.gmra.mrb[24].mxu1 %vm1653_vm2, %v7247_v16 }
 0x28b   : > { %5972 = vmatpush3.bf16.msra.mxu1 %v7400_v48  ;;  %5967 = vmatprep.mubr.msk.bf16.mxu1 %vm1653_vm2, %v7262_v50 }
 0x28c   : > { %5973 = vmatprep.subr.bf16.mxu1 %v7414_v49 }
 0x28f   : > { %5974 = vmatpush3.bf16.msra.mxu1 %v7414_v49  ;;  %v6109_v61 = vpop.f32.mrb[120].mxu0 }
 0x290   : > { %5975 = vmatprep.subr.bf16.mxu1 %v7429_v36 }
 0x292   : > { %5968 = vmatmul.mubr.msk.bf16.gmra.mrb[28].mxu1 %vm1653_vm2, %v7260_v45 }
 0x293   : > { %5976 = vmatpush3.bf16.msra.mxu1 %v7429_v36  ;;  %5979 = vmatprep.mubr.msk.bf16.mxu1 %vm1653_vm2, %v7250_v17 }
 0x294   : > { %6544 = vmatprep.subr.msk.bf16.mxu1 %vm963_vm1, %v7446_v9 }
 0x297   : > { %5978 = vmatpush3.bf16.msra.mxu1 %v6920_v38 }
 0x298   : > { %5987 = vmatprep.subr.bf16.mxu1 %v7570_v59 }
 0x29a   : > { %5980 = vmatmul.mubr.msk.bf16.vlgmr.msra.gmra.mrb[32].mxu1 %vm1653_vm2, %v7247_v16 }
 0x29b   : > { %5988 = vmatpush3.bf16.msra.mxu1 %v7570_v59  ;;  %5983 = vmatprep.mubr.msk.bf16.mxu1 %vm1653_vm2, %v7262_v50 }
 0x29c   : > { %5989 = vmatprep.subr.bf16.mxu1 %v7581_v62 }
 0x29f   : > { %5990 = vmatpush3.bf16.msra.mxu1 %v7581_v62 }
 0x2a0   : > { %5991 = vmatprep.subr.bf16.mxu1 %v7676_v34 }
 0x2a2   : > { %5984 = vmatmul.mubr.msk.bf16.gmra.mrb[36].mxu1 %vm1653_vm2, %v7260_v45 }
 0x2a3   : > { %5992 = vmatpush3.bf16.msra.mxu1 %v7676_v34  ;;  %5995 = vmatprep.mubr.msk.bf16.mxu1 %vm1653_vm2, %v7217_v19  ;;  %v3464_v19 = vpop.f32.mrb[121].mxu0 }
 0x2a4   : > { %6545 = vmatprep.subr.msk.bf16.mxu1 %vm963_vm1, %v7687_v39 }
 0x2a7   : > { %5994 = vmatpush3.bf16.msra.mxu1 %v7179_v58 }
 0x2a8   : > { %6003 = vmatprep.subr.bf16.mxu1 %v7488_v52 }
 0x2aa   : > { %5996 = vmatmul.mubr.msk.bf16.vlgmr.msra.gmra.mrb[32].mxu1 %vm1653_vm2, %v7214_v30  ;;  %v3505_v30 = vadd.f32 %v6109_v61, %v7527_v28 }
 0x2ab   : > { %6004 = vmatpush3.bf16.msra.mxu1 %v7488_v52  ;;  %5999 = vmatprep.mubr.msk.bf16.mxu1 %vm1653_vm2, %v7233_v63  ;;  %v6110_v63 = vpop.f32.mrb[122].mxu0 }
 0x2ac   : > { %6005 = vmatprep.subr.bf16.mxu1 %v7499_v35  ;;  %v3513_v16 = vmax.f32 %v3505_v30, 0.0  ;;  %v3506_v17 = vadd.f32 %v6110_v63, %v7527_v28  ;;  %v3467_v45 = vpop.f32.mrb[123].mxu0 }
 0x2af   : > { %6006 = vmatpush3.bf16.msra.mxu1 %v7499_v35 }
 0x2b0   : > { %6007 = vmatprep.subr.bf16.mxu1 %v7506_v5 }
 0x2b2   : > { %6000 = vmatmul.mubr.msk.bf16.gmra.mrb[36].mxu1 %vm1653_vm2, %v7230_v60  ;;  %v3503_v60 = vadd.f32 %v7527_v28, %v3464_v19 }
 0x2b3   : > { %6008 = vmatpush3.bf16.msra.mxu1 %v7506_v5  ;;  %6011 = vmatprep.mubr.msk.bf16.mxu1 %vm1653_vm2, %v7272_v7  ;;  %v6113_v7 = vpop.f32.mrb[124].mxu0 }
 0x2b4   : > { %6546 = vmatprep.subr.msk.bf16.mxu1 %vm963_vm1, %v7516_v23  ;;  %v3511_v50 = vmax.f32 %v3503_v60, 0.0 }
 0x2b7   : > { %6010 = vmatpush3.bf16.msra.mxu1 %v6961_v47 }
 0x2b8   : > { %6019 = vmatprep.subr.bf16.mxu1 %v7614_v14 }
 0x2ba   : > { %6012 = vmatmul.mubr.msk.bf16.vlgmr.msra.gmra.mrb[32].mxu1 %vm1653_vm2, %v7270_v6  ;;  %v3504_v6 = vadd.f32 %v7527_v28, %v3467_v45 }
 0x2bb   : > { %6020 = vmatpush3.bf16.msra.mxu1 %v7614_v14  ;;  %6015 = vmatprep.mubr.msk.bf16.mxu1 %vm1653_vm2, %v7280_v26  ;;  %v3509_v26 = vadd.f32 %v6113_v7, %v7527_v28 }
 0x2bc   : > { %6021 = vmatprep.subr.bf16.mxu1 %v7625_v15 }
 0x2bd   : > { %v3517_v57 = vmax.f32 %v3509_v26, 0.0 }
 0x2bf   : > { %6022 = vmatpush3.bf16.msra.mxu1 %v7625_v15 }
 0x2c0   : > { %6023 = vmatprep.subr.bf16.mxu1 %v7632_v27 }
 0x2c2   : > { %6016 = vmatmul.mubr.msk.bf16.gmra.mrb[36].mxu1 %vm1653_vm2, %v7278_v25  ;;  %v3514_v25 = vmax.f32 %v3506_v17, 0.0 }
 0x2c3   : > { %6024 = vmatpush3.bf16.msra.mxu1 %v7632_v27  ;;  %6027 = vmatprep.mubr.msk.bf16.mxu1 %vm1653_vm2, %v7288_v3  ;;  %v3512_v3 = vmax.f32 %v3504_v6, 0.0 }
 0x2c4   : > { %6547 = vmatprep.subr.msk.bf16.mxu1 %vm963_vm1, %v7643_v33  ;;  %v7744_v22 = vpack.c.bf16 %v3514_v25, %v3513_v16 }
 0x2c5   : > { %v7747_v53 = vpack.c.bf16 %v3512_v3, %v3511_v50 }
 0x2c7   : > { %6026 = vmatpush3.bf16.msra.mxu1 %v7070_v1 }
 0x2c8   : > { %6035 = vmatprep.subr.bf16.mxu1 %v6658_v12 }
 0x2ca   : > { %6028 = vmatmul.mubr.msk.bf16.vlgmr.msra.gmra.mrb[32].mxu1 %vm1653_vm2, %v7286_v2  ;;  %v3480_v2 = vpop.f32.mrb[125].mxu0 }
 0x2cb   : > { %6031 = vmatprep.mubr.msk.bf16.mxu1 %vm1653_vm2, %v7302_v31  ;;  %6036 = vmatpush3.bf16.msra.mxu1 %v6658_v12  ;;  %v6114_v31 = vpop.f32.mrb[126].mxu0 }
 0x2cc   : > { %6037 = vmatprep.subr.bf16.mxu1 %v6659_v4  ;;  %v3510_v20 = vadd.f32 %v6114_v31, %v7527_v28  ;;  %v3483_v43 = vpop.f32.mrb[127].mxu0 }
 0x2cd   : > { %v3508_v54 = vadd.f32 %v7527_v28, %v3483_v43 }
 0x2ce   : > { %v3518_v55 = vmax.f32 %v3510_v20, 0.0 }
 0x2cf   : > { %6038 = vmatpush3.bf16.msra.mxu1 %v6659_v4  ;;  %v3516_v29 = vmax.f32 %v3508_v54, 0.0 }
 0x2d0   : > { %v7750_v18 = vpack.c.bf16 %v3518_v55, %v3517_v57  ;;  %6039 = vmatprep.subr.bf16.mxu1 %v6660_v40 }
 0x2d2   : > { %6032 = vmatmul.mubr.msk.bf16.gmra.mrb[36].mxu1 %vm1653_vm2, %v7300_v24  ;;  %v3507_v24 = vadd.f32 %v7527_v28, %v3480_v2 }
 0x2d3   : > { %6040 = vmatpush3.bf16.msra.mxu1 %v6660_v40 }
 0x2d4   : > { %v3515_v44 = vmax.f32 %v3507_v24, 0.0  ;;  %6548 = vmatprep.subr.msk.bf16.mxu1 %vm963_vm1, %v6661_v21 }
 0x2d6   : > { %v7752_v10 = vpack.c.bf16 %v3516_v29, %v3515_v44  ;;  %v6237_v44 = vpop.f32.mrb[128].mxu0 }
 0x2d7   : > { %6042 = vmatpush3.bf16.msra.mxu1 %v3136_v0  ;;  %v4177_v54 = vadd.f32 %v6237_v44, %v7527_v28  ;;  %v4136_v55 = vpop.f32.mrb[129].mxu0 }
 0x2d8   : > { %6115 = vmatprep.subr.bf16.mxu1 %v7400_v48  ;;  %v4175_v29 = vadd.f32 %v7527_v28, %v4136_v55  ;;  %v6238_v40 = vpop.f32.mrb[130].mxu0 }
 0x2d9   : > { %v4185_v21 = vmax.f32 %v4177_v54, 0.0  ;;  %v4178_v0 = vadd.f32 %v6238_v40, %v7527_v28 }
 0x35d   : > { %v5965_v56 = vpop.f32.mrb[24].mxu1 }
 0x35e   : > { %v2748_v41 = vadd.f32 %v5965_v56, %v7527_v28  ;;  %v2707_v42 = vpop.f32.mrb[25].mxu1  ;;  %v4139_v56 = vpop.f32.mrb[131].mxu0 }
 0x35f   : > { %v2746_v11 = vadd.f32 %v7527_v28, %v2707_v42  ;;  %v5966_v46 = vpop.f32.mrb[26].mxu1  ;;  %v4176_v42 = vadd.f32 %v7527_v28, %v4139_v56 }
 0x360   : > { %v2749_v51 = vadd.f32 %v5966_v46, %v7527_v28  ;;  %v2710_v61 = vpop.f32.mrb[27].mxu1  ;;  %v2756_v4 = vmax.f32 %v2748_v41, 0.0  ;;  %v4183_v41 = vmax.f32 %v4175_v29, 0.0  ;;  %v4186_v46 = vmax.f32 %v4178_v0, 0.0 }
 0x361   : > { %v2747_v12 = vadd.f32 %v7527_v28, %v2710_v61  ;;  %v2754_v19 = vmax.f32 %v2746_v11, 0.0  ;;  %v6241_v11 = vpop.f32.mrb[132].mxu0 }
 0x362   : > { %v2757_v30 = vmax.f32 %v2749_v51, 0.0  ;;  %v4181_v51 = vadd.f32 %v6241_v11, %v7527_v28  ;;  %v4152_v61 = vpop.f32.mrb[133].mxu0 }
 0x363   : > { %v2755_v60 = vmax.f32 %v2747_v12, 0.0  ;;  %v4184_v12 = vmax.f32 %v4176_v42, 0.0 }
 0x364   : > { %v7767_v63 = vpack.c.bf16 %v2757_v30, %v2756_v4  ;;  %v4179_v4 = vadd.f32 %v7527_v28, %v4152_v61  ;;  %v6242_v30 = vpop.f32.mrb[134].mxu0 }
 0x365   : > { %v7769_v16 = vpack.c.bf16 %v2755_v60, %v2754_v19  ;;  %v5969_v17 = vpop.f32.mrb[28].mxu1  ;;  %v7785_v19 = vpack.c.bf16 %v4186_v46, %v4185_v21  ;;  %v4189_v60 = vmax.f32 %v4181_v51, 0.0 }
 0x366   : > { %v2752_v45 = vadd.f32 %v5969_v17, %v7527_v28  ;;  %v2723_v50 = vpop.f32.mrb[29].mxu1  ;;  %v4182_v17 = vadd.f32 %v6242_v30, %v7527_v28 }
 0x367   : > { %v2750_v6 = vadd.f32 %v7527_v28, %v2723_v50  ;;  %v5970_v7 = vpop.f32.mrb[30].mxu1  ;;  %v7788_v50 = vpack.c.bf16 %v4184_v12, %v4183_v41 }
 0x368   : > { %v2753_v25 = vadd.f32 %v5970_v7, %v7527_v28  ;;  %v2726_v26 = vpop.f32.mrb[31].mxu1  ;;  %v2760_v3 = vmax.f32 %v2752_v45, 0.0  ;;  %v4155_v45 = vpop.f32.mrb[135].mxu0 }
 0x369   : > { %v2751_v2 = vadd.f32 %v7527_v28, %v2726_v26  ;;  %v2758_v31 = vmax.f32 %v2750_v6, 0.0  ;;  %v4187_v6 = vmax.f32 %v4179_v4, 0.0  ;;  %v4180_v7 = vadd.f32 %v7527_v28, %v4155_v45 }
 0x36a   : > { %v2761_v24 = vmax.f32 %v2753_v25, 0.0  ;;  %v4190_v25 = vmax.f32 %v4182_v17, 0.0 }
 0x36b   : > { %v2759_v57 = vmax.f32 %v2751_v2, 0.0  ;;  %v4188_v26 = vmax.f32 %v4180_v7, 0.0 }
 0x36c   : > { %v7775_v20 = vpack.c.bf16 %v2761_v24, %v2760_v3  ;;  %v7791_v2 = vpack.c.bf16 %v4190_v25, %v4189_v60 }
 0x36d   : > { %v7777_v43 = vpack.c.bf16 %v2759_v57, %v2758_v31  ;;  %v7793_v3 = vpack.c.bf16 %v4188_v26, %v4187_v6 }
 0x39d   : > { %v6029_v24 = vpop.f32.mrb[32].mxu1 }
 0x39e   : > { %v3076_v31 = vadd.f32 %v6029_v24, %v7527_v28  ;;  %v3035_v57 = vpop.f32.mrb[33].mxu1 }
 0x39f   : > { %v3074_v44 = vadd.f32 %v7527_v28, %v3035_v57  ;;  %v6030_v54 = vpop.f32.mrb[34].mxu1  ;;  %v6666_v57 = vld [vmem:[%s8030_s5 + $0xa8] sm:$0xff]  }
 0x3a0   : > { %v3077_v55 = vadd.f32 %v6030_v54, %v7527_v28  ;;  %v3038_v29 = vpop.f32.mrb[35].mxu1  ;;  %v3084_v21 = vmax.f32 %v3076_v31, 0.0  ;;  %v8067_v31 = vld [vmem:[#allocation7_spill] sm:$0xff] }
 0x3a1   : > { %v3075_v40 = vadd.f32 %v7527_v28, %v3038_v29  ;;  %v3082_v56 = vmax.f32 %v3074_v44, 0.0  ;;  %v6682_v44 = vld [vmem:[%s8032_s7] sm:$0xff]   ;;  %v6683_v54 = vld [vmem:[%s8032_s7 + $0x8] sm:$0xff]   ;;  %v6685_v29 = vld [vmem:[%s8032_s7 + $0x18] sm:$0xff]  }
 0x3a2   : > { %v3085_v0 = vmax.f32 %v3077_v55, 0.0  ;;  %6307 = vmatprep.subr.bf16.mxu0 %v6682_v44  ;;  %v6684_v55 = vld [vmem:[%s8032_s7 + $0x10] sm:$0xff]  }
 0x3a3   : > { %v3083_v41 = vmax.f32 %v3075_v40, 0.0  ;;  %6308 = vmatpush3.bf16.msra.mxu0 %v6682_v44  ;;  %v6686_v40 = vld [vmem:[%s8032_s7 + $0x20] sm:$0xff]  }
 0x3a4   : > { %v3091_v42 = vpack.c.bf16 %v3085_v0, %v3084_v21  ;;  %6309 = vmatprep.subr.bf16.mxu0 %v6683_v54  ;;  %v6687_v21 = vld [vmem:[%s8032_s7 + $0x28] sm:$0xff]  }
 0x3a5   : > { %v3090_v11 = vpack.c.bf16 %v3083_v41, %v3082_v56  ;;  %v6033_v46 = vpop.f32.mrb[36].mxu1 }
 0x3a6   : > { %v3080_v51 = vadd.f32 %v6033_v46, %v7527_v28  ;;  %v3051_v61 = vpop.f32.mrb[37].mxu1 }
 0x3a7   : > { %v3078_v12 = vadd.f32 %v7527_v28, %v3051_v61  ;;  %v6034_v4 = vpop.f32.mrb[38].mxu1  ;;  %6043 = vmatprep.mubr.msk.bf16.mxu1 %vm1653_vm2, %v3090_v11  ;;  %6310 = vmatpush3.bf16.msra.mxu0 %v6683_v54 }
 0x3a8   : > { %v3081_v30 = vadd.f32 %v6034_v4, %v7527_v28  ;;  %v3054_v60 = vpop.f32.mrb[39].mxu1  ;;  %6044 = vmatmul.mubr.msk.bf16.vlgmr.msra.gmra.mrb[16].mxu1 %vm1653_vm2, %v3091_v42  ;;  %v3088_v45 = vmax.f32 %v3080_v51, 0.0  ;;  %6311 = vmatprep.subr.bf16.mxu0 %v6684_v55 }
 0x3a9   : > { %v3079_v17 = vadd.f32 %v7527_v28, %v3054_v60  ;;  %6116 = vmatpush3.bf16.msra.mxu1 %v7400_v48  ;;  %v3086_v7 = vmax.f32 %v3078_v12, 0.0  ;;  %v8068_v48 = vld [vmem:[#allocation6_spill] sm:$0xff] }
 0x3aa   : > { %v3089_v6 = vmax.f32 %v3081_v30, 0.0  ;;  %6117 = vmatprep.subr.bf16.mxu1 %v7414_v49 }
 0x3ab   : > { %v3087_v25 = vmax.f32 %v3079_v17, 0.0  ;;  %6312 = vmatpush3.bf16.msra.mxu0 %v6684_v55 }
 0x3ac   : > { %v3093_v26 = vpack.c.bf16 %v3089_v6, %v3088_v45  ;;  %6313 = vmatprep.subr.bf16.mxu0 %v6685_v29 }
 0x3ad   : > { %v3092_v24 = vpack.c.bf16 %v3087_v25, %v3086_v7  ;;  %6118 = vmatpush3.bf16.msra.mxu1 %v7414_v49  ;;  %v8069_v49 = vld [vmem:[#allocation9_spill] sm:$0xff] }
 0x3ae   : > { %6119 = vmatprep.subr.bf16.mxu1 %v7429_v36 }
 0x3af   : > { %6047 = vmatprep.mubr.msk.bf16.mxu1 %vm1653_vm2, %v3092_v24  ;;  %6314 = vmatpush3.bf16.msra.mxu0 %v6685_v29 }
 0x3b0   : > { %6048 = vmatmul.mubr.msk.bf16.gmra.mrb[20].mxu1 %vm1653_vm2, %v3093_v26  ;;  %6315 = vmatprep.subr.bf16.mxu0 %v6686_v40  ;;  %v6667_v26 = vld [vmem:[%s8030_s5 + $0xb0] sm:$0xff]  }
 0x3b1   : > { %6120 = vmatpush3.bf16.msra.mxu1 %v7429_v36  ;;  %6123 = vmatprep.mubr.msk.bf16.mxu1 %vm1653_vm2, %v8067_v31  ;;  %v8070_v36 = vld [vmem:[#allocation8_spill] sm:$0xff] }
 0x3b2   : > { %6553 = vmatprep.subr.msk.bf16.mxu1 %vm963_vm1, %v7446_v9  ;;  %v8072_v9 = vld [vmem:[#allocation2_spill] sm:$0xff] }
 0x3b3   : > { %6316 = vmatpush3.bf16.msra.mxu0 %v6686_v40 }
 0x3b4   : > { %6317 = vmatprep.subr.bf16.mxu0 %v6687_v21 }
 0x3b5   : > { %6122 = vmatpush3.bf16.msra.mxu1 %v6920_v38  ;;  %v8071_v38 = vld [vmem:[#allocation3_spill] sm:$0xff] }
 0x3b6   : > { %6131 = vmatprep.subr.bf16.mxu1 %v7570_v59 }
 0x3b7   : > { %6318 = vmatpush3.bf16.msra.mxu0 %v6687_v21 }
 0x3b8   : > { %6124 = vmatmul.mubr.msk.bf16.vlgmr.msra.gmra.mrb[40].mxu1 %vm1653_vm2, %v8068_v48 }
 0x3b9   : > { %6132 = vmatpush3.bf16.msra.mxu1 %v7570_v59  ;;  %6127 = vmatprep.mubr.msk.bf16.mxu1 %vm1653_vm2, %v8069_v49  ;;  %v8073_v59 = vld [vmem:[#allocation5_spill] sm:$0xff] }
 0x3ba   : > { %6133 = vmatprep.subr.bf16.mxu1 %v7581_v62 }
 0x3bd   : > { %6134 = vmatpush3.bf16.msra.mxu1 %v7581_v62  ;;  %v8074_v62 = vld [vmem:[#allocation4_spill] sm:$0xff] }
 0x3be   : > { %6135 = vmatprep.subr.bf16.mxu1 %v7676_v34 }
 0x3c0   : > { %6128 = vmatmul.mubr.msk.bf16.gmra.mrb[44].mxu1 %vm1653_vm2, %v8070_v36 }
 0x3c1   : > { %6136 = vmatpush3.bf16.msra.mxu1 %v7676_v34  ;;  %6139 = vmatprep.mubr.msk.bf16.mxu1 %vm1653_vm2, %v8071_v38  ;;  %v6665_v34 = vld [vmem:[%s8030_s5 + $0xa4] ss:$0 sps:$4 sm:$0xff]  }
 0x3c2   : > { %6554 = vmatprep.subr.msk.bf16.mxu1 %vm963_vm1, %v7687_v39  ;;  %v3893_v39 = vsel %vm963_vm1, %v6665_v34, 0 }
 0x3c5   : > { %6138 = vmatpush3.bf16.msra.mxu1 %v7179_v58  ;;  %v8075_v58 = vld [vmem:[#allocation11_spill] sm:$0xff] }
 0x3c6   : > { %6147 = vmatprep.subr.bf16.mxu1 %v7488_v52 }
 0x3c8   : > { %6140 = vmatmul.mubr.msk.bf16.vlgmr.msra.gmra.mrb[40].mxu1 %vm1653_vm2, %v8072_v9 }
 0x3c9   : > { %6148 = vmatpush3.bf16.msra.mxu1 %v7488_v52  ;;  %6143 = vmatprep.mubr.msk.bf16.mxu1 %vm1653_vm2, %v8073_v59  ;;  %v8076_v52 = vld [vmem:[#allocation10_spill] sm:$0xff]  ;;  %v6668_v59 = vld [vmem:[%s8030_s5 + $0xb8] sm:$0xff]  }
 0x3ca   : > { %6149 = vmatprep.subr.bf16.mxu1 %v7499_v35 }
 0x3cd   : > { %6150 = vmatpush3.bf16.msra.mxu1 %v7499_v35  ;;  %v8077_v35 = vld [vmem:[#allocation13_spill] sm:$0xff] }
 0x3ce   : > { %6151 = vmatprep.subr.bf16.mxu1 %v7506_v5 }
 0x3d0   : > { %6144 = vmatmul.mubr.msk.bf16.gmra.mrb[44].mxu1 %vm1653_vm2, %v8074_v62 }
 0x3d1   : > { %6152 = vmatpush3.bf16.msra.mxu1 %v7506_v5  ;;  %6155 = vmatprep.mubr.msk.bf16.mxu1 %vm1653_vm2, %v8075_v58  ;;  %v8078_v5 = vld [vmem:[#allocation12_spill] sm:$0xff] }
 0x3d2   : > { %6555 = vmatprep.subr.msk.bf16.mxu1 %vm963_vm1, %v7516_v23  ;;  %v6662_v23 = vld [vmem:[%s8030_s5 + $0x8c] sm:$0xff]  }
 0x3d5   : > { %6154 = vmatpush3.bf16.msra.mxu1 %v6961_v47  ;;  %v8079_v47 = vld [vmem:[#allocation15_spill] sm:$0xff] }
 0x3d6   : > { %6163 = vmatprep.subr.bf16.mxu1 %v7614_v14 }
 0x3d8   : > { %6156 = vmatmul.mubr.msk.bf16.vlgmr.msra.gmra.mrb[40].mxu1 %vm1653_vm2, %v8076_v52 }
 0x3d9   : > { %6164 = vmatpush3.bf16.msra.mxu1 %v7614_v14  ;;  %6159 = vmatprep.mubr.msk.bf16.mxu1 %vm1653_vm2, %v8077_v35  ;;  %v6663_v14 = vld [vmem:[%s8030_s5 + $0x94] sm:$0xff]  }
 0x3da   : > { %6165 = vmatprep.subr.bf16.mxu1 %v7625_v15 }
 0x3dd   : > { %6166 = vmatpush3.bf16.msra.mxu1 %v7625_v15  ;;  %v8080_v15 = vld [vmem:[#allocation14_spill] sm:$0xff] }
 0x3de   : > { %6167 = vmatprep.subr.bf16.mxu1 %v7632_v27 }
 0x3e0   : > { %6160 = vmatmul.mubr.msk.bf16.gmra.mrb[44].mxu1 %vm1653_vm2, %v8078_v5  ;;  %v6669_v5 = vld [vmem:[%s8030_s5 + $0xc0] ss:$0 sps:$4 sm:$0xff]  }
 0x3e1   : > { %6168 = vmatpush3.bf16.msra.mxu1 %v7632_v27  ;;  %6171 = vmatprep.mubr.msk.bf16.mxu1 %vm1653_vm2, %v8079_v47  ;;  %v8081_v27 = vld [vmem:[#allocation17_spill] sm:$0xff]  ;;  %v6670_v47 = vld [vmem:[%s8030_s5] sm:$0xff]  }
 0x3e2   : > { %6556 = vmatprep.subr.msk.bf16.mxu1 %vm963_vm1, %v7643_v33  ;;  %v8082_v33 = vld [vmem:[#allocation16_spill] sm:$0xff] }
 0x3e5   : > { %6170 = vmatpush3.bf16.msra.mxu1 %v7070_v1  ;;  %v6664_v1 = vld [vmem:[%s8030_s5 + $0x9c] sm:$0xff]  }
 0x3e6   : > { %6179 = vmatprep.subr.bf16.mxu1 %v6662_v23 }
 0x3e8   : > { %6172 = vmatmul.mubr.msk.bf16.vlgmr.msra.gmra.mrb[40].mxu1 %vm1653_vm2, %v8080_v15  ;;  %v6675_v15 = vld [vmem:[%s8030_s5 + $0x40] sm:$0xff]  }
 0x3e9   : > { %6175 = vmatprep.mubr.msk.bf16.mxu1 %vm1653_vm2, %v8081_v27  ;;  %6180 = vmatpush3.bf16.msra.mxu1 %v6662_v23  ;;  %v6671_v23 = vld [vmem:[%s8030_s5 + $0x8] sm:$0xff]   ;;  %v6679_v27 = vld [vmem:[%s8030_s5 + $0x78] sm:$0xff]  }
 0x3ea   : > { %6181 = vmatprep.subr.bf16.mxu1 %v6663_v14 }
 0x3ed   : > { %6182 = vmatpush3.bf16.msra.mxu1 %v6663_v14  ;;  %v6673_v14 = vld [vmem:[%s8030_s5 + $0x18] ss:$0 sps:$4 sm:$0xff]  }
 0x3ee   : > { %6183 = vmatprep.subr.bf16.mxu1 %v6664_v1 }
 0x3f0   : > { %6176 = vmatmul.mubr.msk.bf16.gmra.mrb[44].mxu1 %vm1653_vm2, %v8082_v33 }
 0x3f1   : > { %6184 = vmatpush3.bf16.msra.mxu1 %v6664_v1 }
 0x3f2   : > { %6557 = vmatprep.subr.msk.bf16.mxu1 %vm963_vm1, %v6665_v34 }
 0x3f5   : > { %6186 = vmatpush3.bf16.msra.mxu1 %v3893_v39 }
 0x3f6   : > { %6243 = vmatprep.subr.bf16.mxu1 %v6666_v57 }
 0x4bb   : > { %v6173_v0 = vpop.f32.mrb[40].mxu1 }
 0x4bc   : > { %v3833_v56 = vadd.f32 %v6173_v0, %v7527_v28  ;;  %v3792_v41 = vpop.f32.mrb[41].mxu1 }
 0x4bd   : > { %v3831_v42 = vadd.f32 %v7527_v28, %v3792_v41  ;;  %v6174_v11 = vpop.f32.mrb[42].mxu1 }
 0x4be   : > { %v3834_v46 = vadd.f32 %v6174_v11, %v7527_v28  ;;  %v3795_v51 = vpop.f32.mrb[43].mxu1  ;;  %v3841_v12 = vmax.f32 %v3833_v56, 0.0 }
 0x4bf   : > { %v3832_v61 = vadd.f32 %v7527_v28, %v3795_v51  ;;  %v3839_v30 = vmax.f32 %v3831_v42, 0.0 }
 0x4c0   : > { %v3842_v4 = vmax.f32 %v3834_v46, 0.0 }
 0x4c1   : > { %v3840_v60 = vmax.f32 %v3832_v61, 0.0 }
 0x4c2   : > { %v3848_v17 = vpack.c.bf16 %v3842_v4, %v3841_v12 }
 0x4c3   : > { %v3847_v45 = vpack.c.bf16 %v3840_v60, %v3839_v30  ;;  %v6177_v6 = vpop.f32.mrb[44].mxu1 }
 0x4c4   : > { %v3837_v7 = vadd.f32 %v6177_v6, %v7527_v28  ;;  %v3808_v25 = vpop.f32.mrb[45].mxu1  ;;  %v5300_v6 = vld [vmem:[%s8033_s8] ss:$0 sm:$0xff] }
 0x4c5   : > { %v3835_v24 = vadd.f32 %v7527_v28, %v3808_v25  ;;  %v6178_v31 = vpop.f32.mrb[46].mxu1  ;;  %6187 = vmatprep.mubr.msk.bf16.mxu1 %vm1653_vm2, %v3847_v45 }
 0x4c6   : > { %v3838_v48 = vadd.f32 %v6178_v31, %v7527_v28  ;;  %v3811_v49 = vpop.f32.mrb[47].mxu1  ;;  %6188 = vmatmul.mubr.msk.bf16.vlgmr.msra.gmra.mrb[16].mxu1 %vm1653_vm2, %v3848_v17  ;;  %v3845_v38 = vmax.f32 %v3837_v7, 0.0 }
 0x4c7   : > { %v3836_v36 = vadd.f32 %v7527_v28, %v3811_v49  ;;  %6244 = vmatpush3.bf16.msra.mxu1 %v6666_v57  ;;  %v3843_v62 = vmax.f32 %v3835_v24, 0.0  ;;  %v4237_v28 = vsel %vm963_vm1, %v6669_v5, 0 }
 0x4c8   : > { %v3846_v9 = vmax.f32 %v3838_v48, 0.0  ;;  %6245 = vmatprep.subr.bf16.mxu1 %v6667_v26 }
 0x4c9   : > { %v3844_v58 = vmax.f32 %v3836_v36, 0.0 }
 0x4ca   : > { %v3850_v52 = vpack.c.bf16 %v3846_v9, %v3845_v38 }
 0x4cb   : > { %v3849_v35 = vpack.c.bf16 %v3844_v58, %v3843_v62  ;;  %6246 = vmatpush3.bf16.msra.mxu1 %v6667_v26 }
 0x4cc   : > { %6247 = vmatprep.subr.bf16.mxu1 %v6668_v59 }
 0x4cd   : > { %6191 = vmatprep.mubr.msk.bf16.mxu1 %vm1653_vm2, %v3849_v35 }
 0x4ce   : > { %6192 = vmatmul.mubr.msk.bf16.gmra.mrb[20].mxu1 %vm1653_vm2, %v3850_v52 }
 0x4cf   : > { %6248 = vmatpush3.bf16.msra.mxu1 %v6668_v59  ;;  %6251 = vmatprep.mubr.msk.bf16.mxu1 %vm1653_vm2, %v7788_v50  ;;  %v6672_v50 = vld [vmem:[%s8030_s5 + $0x10] sm:$0xff]  }
 0x4d0   : > { %6561 = vmatprep.subr.msk.bf16.mxu1 %vm963_vm1, %v6669_v5 }
 0x4d3   : > { %6250 = vmatpush3.bf16.msra.mxu1 %v4237_v28 }
 0x4d4   : > { %6259 = vmatprep.subr.bf16.mxu1 %v6670_v47 }
 0x4d6   : > { %6252 = vmatmul.mubr.msk.bf16.vlgmr.msra.gmra.mrb[16].mxu1 %vm1653_vm2, %v7785_v19  ;;  %v4338_v19 = vsel %vm963_vm1, %v6673_v14, 0 }
 0x4d7   : > { %6260 = vmatpush3.bf16.msra.mxu1 %v6670_v47  ;;  %6255 = vmatprep.mubr.msk.bf16.mxu1 %vm1653_vm2, %v7793_v3  ;;  %v6674_v3 = vld [vmem:[%s8030_s5 + $0x38] sm:$0xff]  }
 0x4d8   : > { %6261 = vmatprep.subr.bf16.mxu1 %v6671_v23 }
 0x4db   : > { %6262 = vmatpush3.bf16.msra.mxu1 %v6671_v23 }
 0x4dc   : > { %6263 = vmatprep.subr.bf16.mxu1 %v6672_v50 }
 0x4de   : > { %6256 = vmatmul.mubr.msk.bf16.gmra.mrb[20].mxu1 %vm1653_vm2, %v7791_v2  ;;  %v6677_v2 = vld [vmem:[%s8030_s5 + $0x50] ss:$0 sps:$4 sm:$0xff]  }
 0x4df   : > { %6264 = vmatpush3.bf16.msra.mxu1 %v6672_v50  ;;  %6267 = vmatprep.mubr.msk.bf16.mxu1 %vm1653_vm2, %v7535_v8  ;;  %v6676_v8 = vld [vmem:[%s8030_s5 + $0x48] sm:$0xff]  }
 0x4e0   : > { %6562 = vmatprep.subr.msk.bf16.mxu1 %vm963_vm1, %v6673_v14 }
 0x4e3   : > { %6266 = vmatpush3.bf16.msra.mxu1 %v4338_v19 }
 0x4e4   : > { %6275 = vmatprep.subr.bf16.mxu1 %v6674_v3 }
 0x4e6   : > { %6268 = vmatmul.mubr.msk.bf16.vlgmr.msra.gmra.mrb[16].mxu1 %vm1653_vm2, %v7533_v32  ;;  %v4439_v32 = vsel %vm963_vm1, %v6677_v2, 0 }
 0x4e7   : > { %6276 = vmatpush3.bf16.msra.mxu1 %v6674_v3  ;;  %6271 = vmatprep.mubr.msk.bf16.mxu1 %vm1653_vm2, %v7543_v37  ;;  %v6678_v37 = vld [vmem:[%s8030_s5 + $0x70] sm:$0xff]  }
 0x4e8   : > { %6277 = vmatprep.subr.bf16.mxu1 %v6675_v15 }
 0x4eb   : > { %6278 = vmatpush3.bf16.msra.mxu1 %v6675_v15 }
 0x4ec   : > { %6279 = vmatprep.subr.bf16.mxu1 %v6676_v8 }
 0x4ee   : > { %6272 = vmatmul.mubr.msk.bf16.gmra.mrb[20].mxu1 %vm1653_vm2, %v7541_v13  ;;  %v6680_v13 = vld [vmem:[%s8030_s5 + $0x80] sm:$0xff]  }
 0x4ef   : > { %6280 = vmatpush3.bf16.msra.mxu1 %v6676_v8  ;;  %6283 = vmatprep.mubr.msk.bf16.mxu1 %vm1653_vm2, %v7769_v16  ;;  %v6681_v16 = vld [vmem:[%s8030_s5 + $0x88] ss:$0 sps:$4 sm:$0xff]  }
 0x4f0   : > { %6563 = vmatprep.subr.msk.bf16.mxu1 %vm963_vm1, %v6677_v2 }
 0x4f3   : > { %6282 = vmatpush3.bf16.msra.mxu1 %v4439_v32 }
 0x4f4   : > { %6291 = vmatprep.subr.bf16.mxu1 %v6678_v37 }
 0x4f6   : > { %6284 = vmatmul.mubr.msk.bf16.vlgmr.msra.gmra.mrb[16].mxu1 %vm1653_vm2, %v7767_v63  ;;  %v4540_v63 = vsel %vm963_vm1, %v6681_v16, 0 }
 0x4f7   : > { %6292 = vmatpush3.bf16.msra.mxu1 %v6678_v37  ;;  %6287 = vmatprep.mubr.msk.bf16.mxu1 %vm1653_vm2, %v7777_v43 }
 0x4f8   : > { %6293 = vmatprep.subr.bf16.mxu1 %v6679_v27 }
 0x4fb   : > { %6294 = vmatpush3.bf16.msra.mxu1 %v6679_v27 }
 0x4fc   : > { %6295 = vmatprep.subr.bf16.mxu1 %v6680_v13 }
 0x4fe   : > { %6288 = vmatmul.mubr.msk.bf16.gmra.mrb[20].mxu1 %vm1653_vm2, %v7775_v20  ;;  %v6688_v20 = vld [vmem:[%s8032_s7 + $0x30] sm:$0xff]  }
 0x4ff   : > { %6296 = vmatpush3.bf16.msra.mxu1 %v6680_v13  ;;  %6299 = vmatprep.mubr.msk.bf16.mxu1 %vm1653_vm2, %v7747_v53  ;;  %v6689_v53 = vld [vmem:[%s8032_s7 + $0x38] sm:$0xff]  }
 0x500   : > { %6564 = vmatprep.subr.msk.bf16.mxu1 %vm963_vm1, %v6681_v16  ;;  %6319 = vmatprep.subr.bf16.mxu0 %v6688_v20 }
 0x501   : > { %6320 = vmatpush3.bf16.msra.mxu0 %v6688_v20 }
 0x502   : > { %6321 = vmatprep.subr.bf16.mxu0 %v6689_v53 }
 0x503   : > { %6298 = vmatpush3.bf16.msra.mxu1 %v4540_v63 }
 0x505   : > { %6322 = vmatpush3.bf16.msra.mxu0 %v6689_v53 }
 0x506   : > { %6300 = vmatmul.mubr.msk.bf16.vlgmr.msra.gmra.mrb[16].mxu1 %vm1653_vm2, %v7744_v22  ;;  %v5299_v22 = vld [vmem:[%s8031_s6] ss:$0 sm:$0xff] }
 0x507   : > { %6303 = vmatprep.mubr.msk.bf16.mxu1 %vm1653_vm2, %v7752_v10 }
 0x50e   : > { %6304 = vmatmul.mubr.msk.bf16.gmra.mrb[20].mxu1 %vm1653_vm2, %v7750_v18 }
 0x5d9   : > { %v6301_v10 = vpop.f32.mrb[16].mxu1 }
 0x5da   : > { %v4640_v43 = vadd.f32 %v6301_v10, %v5299_v22  ;;  %v4576_v33 = vpop.f32.mrb[17].mxu1 }
 0x5db   : > { %v4638_v18 = vadd.f32 %v5299_v22, %v4576_v33  ;;  %v6302_v1 = vpop.f32.mrb[18].mxu1 }
 0x5dc   : > { %v4641_v34 = vadd.f32 %v6302_v1, %v5299_v22  ;;  %v4579_v39 = vpop.f32.mrb[19].mxu1  ;;  %v4648_v44 = vmax.f32 %v4640_v43, 0.0 }
 0x5dd   : > { %v4639_v57 = vadd.f32 %v5299_v22, %v4579_v39  ;;  %v4646_v55 = vmax.f32 %v4638_v18, 0.0 }
 0x5de   : > { %v4649_v54 = vmax.f32 %v4641_v34, 0.0 }
 0x5df   : > { %v4647_v29 = vmax.f32 %v4639_v57, 0.0 }
 0x5e0   : > { %v4655_v40 = vpack.c.bf16 %v4649_v54, %v4648_v44 }
 0x5e1   : > { %v4654_v21 = vpack.c.bf16 %v4647_v29, %v4646_v55  ;;  %v6305_v0 = vpop.f32.mrb[20].mxu1 }
 0x5e2   : > { %v4644_v56 = vadd.f32 %v6305_v0, %v5299_v22  ;;  %v4592_v41 = vpop.f32.mrb[21].mxu1 }
 0x5e3   : > { %v4642_v42 = vadd.f32 %v5299_v22, %v4592_v41  ;;  %v6306_v11 = vpop.f32.mrb[22].mxu1  ;;  %6323 = vmatprep.mubr.bf16.mxu0 %v4654_v21 }
 0x5e4   : > { %v4645_v46 = vadd.f32 %v6306_v11, %v5299_v22  ;;  %v4595_v51 = vpop.f32.mrb[23].mxu1  ;;  %6324 = vmatmul.mubr.bf16.vlgmr.msra.gmra.mrb[136].mxu0 %v4655_v40  ;;  %v4652_v12 = vmax.f32 %v4644_v56, 0.0 }
 0x5e5   : > { %v4643_v61 = vadd.f32 %v5299_v22, %v4595_v51  ;;  %v4650_v30 = vmax.f32 %v4642_v42, 0.0 }
 0x5e6   : > { %v4653_v4 = vmax.f32 %v4645_v46, 0.0 }
 0x5e7   : > { %v4651_v60 = vmax.f32 %v4643_v61, 0.0 }
 0x5e8   : > { %v4657_v17 = vpack.c.bf16 %v4653_v4, %v4652_v12 }
 0x5e9   : > { %v4656_v45 = vpack.c.bf16 %v4651_v60, %v4650_v30 }
 0x5eb   : > { %6327 = vmatprep.mubr.bf16.mxu0 %v4656_v45 }
 0x5ec   : > { %6328 = vmatmul.mubr.bf16.gmra.mrb[140].mxu0 %v4657_v17 }
 0x6b7   : > { %v6325_v7 = vpop.f32.mrb[136].mxu0 }
 0x6b8   : > { %v4772_v25 = vadd.f32 %v6325_v7, %v5300_v6  ;;  %v4763_v26 = vpop.f32.mrb[137].mxu0 }
 0x6b9   : > { %v4764_v24 = vadd.f32 %v5300_v6, %v4763_v26  ;;  %v6326_v31 = vpop.f32.mrb[138].mxu0 }
 0x6ba   : > { %4798 = vmax.xlane.f32.xlu1 %v4772_v25  ;;  %v4766_v48 = vpop.f32.mrb[139].mxu0  ;;  %v4775_v49 = vadd.f32 %v6326_v31, %v5300_v6 }
 0x6bb   : > { %4794 = vmax.xlane.f32.xlu0 %v4764_v24  ;;  %v4767_v36 = vadd.f32 %v5300_v6, %v4766_v48 }
 0x6be   : > { %4800 = vmax.xlane.f32.xlu1 %v4775_v49 }
 0x6bf   : > { %4796 = vmax.xlane.f32.xlu0 %v4767_v36  ;;  %v6329_v38 = vpop.f32.mrb[140].mxu0 }
 0x6c0   : > { %v4779_v9 = vpop.f32.mrb[141].mxu0  ;;  %v4788_v35 = vadd.f32 %v6329_v38, %v5300_v6 }
 0x6c1   : > { %v4780_v59 = vadd.f32 %v5300_v6, %v4779_v9  ;;  %v6330_v62 = vpop.f32.mrb[142].mxu0 }
 0x6c2   : > { %v4782_v58 = vpop.f32.mrb[143].mxu0  ;;  %v4791_v5 = vadd.f32 %v6330_v62, %v5300_v6 }
 0x6c3   : > { %v4783_v52 = vadd.f32 %v5300_v6, %v4782_v58  ;;  %4802 = vmax.xlane.f32.xlu0 %v4780_v59 }
 0x6c5   : > { %4804 = vmax.xlane.f32.xlu1 %v4783_v52 }
 0x6c7   : > { %4806 = vmax.xlane.f32.xlu0 %v4788_v35 }
 0x6c9   : > { %4808 = vmax.xlane.f32.xlu1 %v4791_v5 }
 0x747   : > { %v4799_v28 = vpop.xlane.xlu1 %4798 }
 0x748   : > { %v4812_v47 = vsub.f32 %v4772_v25, %v4799_v28  ;;  %v4795_v23 = vpop.xlane.xlu0 %4794 }
 0x749   : > { %v4810_v50 = vsub.f32 %v4764_v24, %v4795_v23 }
 0x74a   : > { %v4822_v14 = vmul.f32 1.442695, %v4812_v47 }
 0x74b   : > { %v4818_v19 = vmul.f32 1.442695, %v4810_v50  ;;  %v4801_v3 = vpop.xlane.xlu1 %4800 }
 0x74c   : > { %6690 = vpow2.f32 %v4822_v14  ;;  %v4813_v15 = vsub.f32 %v4775_v49, %v4801_v3  ;;  %v4797_v8 = vpop.xlane.xlu0 %4796 }
 0x74d   : > { %v4811_v2 = vsub.f32 %v4767_v36, %v4797_v8  ;;  %6692 = vpow2.f32 %v4818_v19 }
 0x74e   : > { %v4824_v32 = vmul.f32 1.442695, %v4813_v15 }
 0x74f   : > { %v4820_v37 = vmul.f32 1.442695, %v4811_v2 }
 0x750   : > { %6694 = vpow2.f32 %v4824_v32  ;;  %v4803_v27 = vpop.xlane.xlu0 %4802 }
 0x751   : > { %v4814_v13 = vsub.f32 %v4780_v59, %v4803_v27  ;;  %6696 = vpow2.f32 %v4820_v37 }
 0x752   : > { %v4805_v16 = vpop.xlane.xlu1 %4804 }
 0x753   : > { %v4826_v63 = vmul.f32 1.442695, %v4814_v13  ;;  %v4815_v20 = vsub.f32 %v4783_v52, %v4805_v16 }
 0x754   : > { %v4807_v53 = vpop.xlane.xlu0 %4806 }
 0x755   : > { %6698 = vpow2.f32 %v4826_v63  ;;  %v4828_v22 = vmul.f32 1.442695, %v4815_v20  ;;  %v4816_v10 = vsub.f32 %v4788_v35, %v4807_v53 }
 0x756   : > { %v6691_v43 = vpop.eup %6690  ;;  %v4809_v33 = vpop.xlane.xlu1 %4808 }
 0x757   : > { %6700 = vpow2.f32 %v4828_v22  ;;  %v4830_v18 = vmul.f32 1.442695, %v4816_v10  ;;  %v4817_v1 = vsub.f32 %v4791_v5, %v4809_v33  ;;  %4838 = vadd.xlane.f32.xlu0 %v6691_v43  ;;  %v6693_v34 = vpop.eup %6692 }
 0x759   : > { %6702 = vpow2.f32 %v4830_v18  ;;  %v4832_v39 = vmul.f32 1.442695, %v4817_v1 }
 0x75a   : > { %v6695_v57 = vpop.eup %6694 }
 0x75b   : > { %6704 = vpow2.f32 %v4832_v39  ;;  %4840 = vadd.xlane.f32.xlu1 %v6695_v57  ;;  %4834 = vadd.xlane.f32.xlu0 %v6693_v34  ;;  %v6697_v44 = vpop.eup %6696 }
 0x75f   : > { %v6699_v54 = vpop.eup %6698  ;;  %4836 = vadd.xlane.f32.xlu1 %v6697_v44 }
 0x760   : > { %4842 = vadd.xlane.f32.xlu0 %v6699_v54 }
 0x761   : > { %v6701_v55 = vpop.eup %6700 }
 0x763   : > { %v6703_v29 = vpop.eup %6702  ;;  %4844 = vadd.xlane.f32.xlu1 %v6701_v55 }
 0x764   : > { %4846 = vadd.xlane.f32.xlu0 %v6703_v29 }
 0x765   : > { %v6705_v40 = vpop.eup %6704 }
 0x767   : > { %4848 = vadd.xlane.f32.xlu1 %v6705_v40 }
 0x7e4   : > { %v4839_v21 = vpop.xlane.xlu0 %4838 }
 0x7e5   : > { %6706 = vrcp.f32 %v4839_v21 }
 0x7e8   : > { %v4841_v0 = vpop.xlane.xlu1 %4840  ;;  %v4835_v56 = vpop.xlane.xlu0 %4834 }
 0x7e9   : > { %6708 = vrcp.f32 %v4841_v0 }
 0x7ea   : > { %6710 = vrcp.f32 %v4835_v56 }
 0x7ec   : > { %v4837_v41 = vpop.xlane.xlu1 %4836 }
 0x7ed   : > { %6712 = vrcp.f32 %v4837_v41  ;;  %v4843_v42 = vpop.xlane.xlu0 %4842 }
 0x7ee   : > { %6714 = vrcp.f32 %v4843_v42 }
 0x7ef   : > { %v6707_v11 = vpop.eup %6706 }
 0x7f0   : > { %v4855_v46 = vmul.f32 %v6707_v11, %v6691_v43  ;;  %v4845_v51 = vpop.xlane.xlu1 %4844 }
 0x7f1   : > { %6716 = vrcp.f32 %v4845_v51  ;;  %v4847_v61 = vpop.xlane.xlu0 %4846 }
 0x7f2   : > { %4868 = vst [vmem:[%s332_s12 + $0x10] sm:$0xff] %v4855_v46  ;;  %6718 = vrcp.f32 %v4847_v61 }
 0x7f3   : > { %v6709_v12 = vpop.eup %6708 }
 0x7f4   : > { %v6711_v4 = vpop.eup %6710  ;;  %v4857_v30 = vmul.f32 %v6709_v12, %v6695_v57  ;;  %v4849_v60 = vpop.xlane.xlu1 %4848 }
 0x7f5   : > { %v4851_v17 = vmul.f32 %v6711_v4, %v6693_v34  ;;  %6720 = vrcp.f32 %v4849_v60 }
 0x7f6   : > { %4869 = vst [vmem:[%s332_s12 + $0x18] sm:$0xff] %v4857_v30 }
 0x7f7   : > { %v6713_v45 = vpop.eup %6712  ;;  %4866 = vst [vmem:[%s332_s12] sm:$0xff] %v4851_v17 }
 0x7f8   : > { %v6715_v6 = vpop.eup %6714  ;;  %v4853_v7 = vmul.f32 %v6713_v45, %v6697_v44 }
 0x7f9   : > { %v4859_v25 = vmul.f32 %v6715_v6, %v6699_v54 }
 0x7fa   : > { %4867 = vst [vmem:[%s332_s12 + $0x8] sm:$0xff] %v4853_v7 }
 0x7fb   : > { %v6717_v26 = vpop.eup %6716  ;;  %4870 = vst [vmem:[%s332_s12 + $0x20] sm:$0xff] %v4859_v25 }
 0x7fc   : > { %v6719_v24 = vpop.eup %6718  ;;  %v4861_v31 = vmul.f32 %v6717_v26, %v6701_v55 }
 0x7fd   : > { %v4863_v48 = vmul.f32 %v6719_v24, %v6703_v29 }
 0x7fe   : > { %4871 = vst [vmem:[%s332_s12 + $0x28] sm:$0xff] %v4861_v31 }
 0x7ff   : > { %v6721_v49 = vpop.eup %6720  ;;  %4872 = vst [vmem:[%s332_s12 + $0x30] sm:$0xff] %v4863_v48 }
 0x800   : > { %v4865_v36 = vmul.f32 %v6721_v49, %v6705_v40 }
 0x802   : > { %4873 = vst [vmem:[%s332_s12 + $0x38] sm:$0xff] %v4865_v36 }
 0x803 PF: > { %s19_s30 = sadd.s32 1, %s6745_s30  }
 0x804   : > { %p16_p5 = scmp.ge.s32.totalorder %s19_s30, 4  }
 0x806   :  { %18 = sbr.rel (!%p16_p5) target bundleno = 1 (0x1), region = 95 }

</bundles_post_ra>
